<compile_context>
chip_gen: v7x
topology: tpu7x:2x2x1
jax: 0.10.0
libtpu: 0.0.40
codegen_flags: <defaults>
</compile_context>

<pallas_src>
import functools

import numpy as np
import jax
import jax.numpy as jnp
from jax.experimental import pallas as pl
from jax.experimental.pallas import tpu as pltpu


_TM_MAX = 512  # M-tile rows for the conv matmuls (multiple of 8, fits VMEM easily)


def _round_up(x, m):
    return ((x + m - 1) // m) * m


# ----------------------------- Pallas kernels ------------------------------ #

def _conv_mm_kernel(*refs, has_bias, has_affine, relu, has_res):
    """Fused (tm,K)@(K,N) matmul with optional bias / BN affine+ReLU / residual."""
    idx = 0
    a_ref = refs[idx]; idx += 1
    b_ref = refs[idx]; idx += 1
    bias_ref = scale_ref = shift_ref = res_ref = None
    if has_bias:
        bias_ref = refs[idx]; idx += 1
    if has_affine:
        scale_ref = refs[idx]; shift_ref = refs[idx + 1]; idx += 2
    if has_res:
        res_ref = refs[idx]; idx += 1
    o_ref = refs[idx]

    acc = jnp.dot(a_ref[...], b_ref[...], preferred_element_type=jnp.float32)
    if has_bias:
        acc = acc + bias_ref[...]
    if has_affine:
        acc = acc * scale_ref[...] + shift_ref[...]
    if relu:
        acc = jnp.maximum(acc, 0.0)
    if has_res:
        acc = acc + res_ref[...].astype(jnp.float32)
    o_ref[...] = acc.astype(o_ref.dtype)


def _tail_kernel(x_ref, scale_ref, shift_ref, w_ref, b_ref, o_ref):
    """Final BN (folded) + global spatial mean + logits Linear, fused."""
    x = x_ref[...].astype(jnp.float32)              # (N, H*W, C)
    pooled = jnp.mean(x, axis=1)                    # (N, C)
    pooled = pooled * scale_ref[...] + shift_ref[...]   # BN commutes with the mean
    o_ref[...] = (
        jnp.dot(pooled, w_ref[...], preferred_element_type=jnp.float32)
        + b_ref[...]
    )


# ------------------------------ Conv via im2col ----------------------------- #

def _im2col(x, kh, kw, stride, pad):
    """x: (N, H, W, C) -> (N*Ho*Wo, kh*kw*C) patch matrix (plain-JAX glue)."""
    if pad > 0:
        x = jnp.pad(x, ((0, 0), (pad, pad), (pad, pad), (0, 0)))
    N, Hp, Wp, C = x.shape
    Ho = (Hp - kh) // stride + 1
    Wo = (Wp - kw) // stride + 1
    patches = []
    for i in range(kh):
        for j in range(kw):
            patches.append(
                x[:, i:i + (Ho - 1) * stride + 1:stride,
                  j:j + (Wo - 1) * stride + 1:stride, :]
            )
    cols = jnp.concatenate(patches, axis=-1)        # (N, Ho, Wo, kh*kw*C)
    return cols.reshape(N * Ho * Wo, kh * kw * C), Ho, Wo


def conv2d_fused(x, w, *, stride, pad, bias=None,
                 out_scale=None, out_shift=None, out_relu=False,
                 residual=None, out_dtype=jnp.bfloat16):
    """x: (N,H,W,Cin) bf16, w: (KH,KW,Cin,Cout) f32 [HWIO].

    Returns (N,Ho,Wo,Cout) in `out_dtype`. Epilogue options are fused into the
    single Pallas matmul kernel.
    """
    N = x.shape[0]
    kh, kw, cin, cout = w.shape
    cols, Ho, Wo = _im2col(x.astype(jnp.bfloat16), kh, kw, stride, pad)
    M, K = cols.shape
    wm = w.reshape(kh * kw * cin, cout).astype(jnp.bfloat16)

    # --- M tiling (all parallelism/tiling goes to M; K and N stay whole) ---
    tm = _TM_MAX if M >= _TM_MAX else _round_up(M, 8)
    M_pad = _round_up(M, tm)
    if M_pad != M:
        cols = jnp.pad(cols, ((0, M_pad - M), (0, 0)))
    num_tiles = M_pad // tm

    operands = [cols, wm]
    in_specs = [
        pl.BlockSpec((tm, K), lambda i: (i, 0)),
        pl.BlockSpec((K, cout), lambda i: (0, 0)),
    ]

    has_bias = bias is not None
    if has_bias:
        operands.append(bias.reshape(1, cout).astype(jnp.float32))
        in_specs.append(pl.BlockSpec((1, cout), lambda i: (0, 0)))

    has_affine = out_scale is not None
    if has_affine:
        operands.append(out_scale.reshape(1, cout).astype(jnp.float32))
        operands.append(out_shift.reshape(1, cout).astype(jnp.float32))
        in_specs.append(pl.BlockSpec((1, cout), lambda i: (0, 0)))
        in_specs.append(pl.BlockSpec((1, cout), lambda i: (0, 0)))

    has_res = residual is not None
    if has_res:
        res2 = residual.reshape(-1, cout).astype(jnp.bfloat16)
        if M_pad != M:
            res2 = jnp.pad(res2, ((0, M_pad - M), (0, 0)))
        operands.append(res2)
        in_specs.append(pl.BlockSpec((tm, cout), lambda i: (i, 0)))

    out = pl.pallas_call(
        functools.partial(_conv_mm_kernel, has_bias=has_bias,
                          has_affine=has_affine, relu=out_relu, has_res=has_res),
        out_shape=jax.ShapeDtypeStruct((M_pad, cout), out_dtype),
        grid=(num_tiles,),
        in_specs=in_specs,
        out_specs=pl.BlockSpec((tm, cout), lambda i: (i, 0)),
        compiler_params=pltpu.CompilerParams(
            dimension_semantics=("parallel",)),   # megacore-shardable on v7x
    )(*operands)

    if M_pad != M:
        out = out[:M]
    return out.reshape(N, Ho, Wo, cout)


# ----------------------------- Parameter init ------------------------------ #

def _init_conv(key, kh, kw, cin, cout, use_bias):
    kw_, kb_ = jax.random.split(key)
    fan_in = kh * kw * cin
    bound = 1.0 / np.sqrt(fan_in)
    w = jax.random.uniform(kw_, (kh, kw, cin, cout), jnp.float32, -bound, bound)
    if use_bias:
        b = jax.random.uniform(kb_, (cout,), jnp.float32, -bound, bound)
    else:
        b = None
    return w, b


def _init_bn(key, c, eps=1e-5):
    kg, kb, km, kv = jax.random.split(key, 4)
    gamma = jax.random.uniform(kg, (c,), jnp.float32, 0.5, 1.5)
    beta = 0.1 * jax.random.normal(kb, (c,), jnp.float32)
    mean = 0.1 * jax.random.normal(km, (c,), jnp.float32)
    var = jax.random.uniform(kv, (c,), jnp.float32, 0.5, 1.5)
    scale = gamma / jnp.sqrt(var + eps)
    shift = beta - mean * scale
    return scale, shift


def _init_block(key, in_planes, out_planes, stride):
    keys = jax.random.split(key, 5)
    has_skip = (stride != 1 or in_planes != out_planes)
    p = {}
    p["bn0"] = _init_bn(keys[0], in_planes)
    p["conv0_w"], _ = _init_conv(keys[1], 3, 3, in_planes, out_planes, False)
    p["bn1"] = _init_bn(keys[2], out_planes)
    p["conv1_w"], _ = _init_conv(keys[3], 3, 3, out_planes, out_planes, False)
    if has_skip:
        p["skip_w"], _ = _init_conv(keys[4], 1, 1, in_planes, out_planes, False)
    return p, (stride, has_skip)


def init_params(key, num_units, num_classes):
    keys = jax.random.split(key, 4 + sum(num_units))
    params = {}
    params["conv0_w"], params["conv0_b"] = _init_conv(keys[0], 3, 3, 3, 16, True)

    strides = ([1] * num_units[0] + [2] + [1] * (num_units[1] - 1)
               + [2] + [1] * (num_units[2] - 1))
    channels = [16] * num_units[0] + [32] * num_units[1] + [64] * num_units[2]

    blocks, cfg = [], []
    in_planes = 16
    for idx, (s, c) in enumerate(zip(strides, channels)):
        bp, bc = _init_block(keys[1 + idx], in_planes, c, s)
        blocks.append(bp)
        cfg.append(bc)
        in_planes = c
    params["blocks"] = blocks
    params["bn_final"] = _init_bn(keys[-3], 64)

    kw_, kb_ = jax.random.split(keys[-1])
    bound = 1.0 / np.sqrt(64)
    params["logit_w"] = jax.random.uniform(
        kw_, (64, num_classes), jnp.float32, -bound, bound)
    params["logit_b"] = jax.random.uniform(
        kb_, (num_classes,), jnp.float32, -bound, bound)
    return params, tuple(cfg)


# ------------------------------- Forward pass ------------------------------ #

def preact_block(x, p, stride, has_skip):
    # u = relu(bn0(x)); fused by XLA into the im2col producers (no extra pass).
    scale0, shift0 = p["bn0"]
    u = jnp.maximum(x.astype(jnp.float32) * scale0 + shift0, 0.0)
    u = u.astype(jnp.bfloat16)

    if has_skip:
        shortcut = conv2d_fused(u, p["skip_w"], stride=stride, pad=0)
    else:
        shortcut = x

    # conv0 with bn1+ReLU fused into the matmul epilogue.
    v = conv2d_fused(u, p["conv0_w"], stride=stride, pad=1,
                     out_scale=p["bn1"][0], out_shift=p["bn1"][1], out_relu=True)
    # conv1 with the residual add fused into the matmul epilogue.
    y = conv2d_fused(v, p["conv1_w"], stride=1, pad=1, residual=shortcut)
    return y


def _forward(x_nchw, params, block_cfg):
    x = jnp.transpose(x_nchw, (0, 2, 3, 1)).astype(jnp.bfloat16)  # NCHW -> NHWC
    out = conv2d_fused(x, params["conv0_w"], stride=1, pad=1,
                       bias=params["conv0_b"])
    for bp, (stride, has_skip) in zip(params["blocks"], block_cfg):
        out = preact_block(out, bp, stride, has_skip)

    # Fused tail: final BN + global mean pool + logits Linear in one kernel.
    N, H, W, C = out.shape
    nc = params["logit_w"].shape[1]
    x3 = out.reshape(N, H * W, C)
    scale, shift = params["bn_final"]
    logits = pl.pallas_call(
        _tail_kernel,
        out_shape=jax.ShapeDtypeStruct((N, nc), jnp.float32),
        grid=(1,),
        in_specs=[
            pl.BlockSpec((N, H * W, C), lambda i: (0, 0, 0)),
            pl.BlockSpec((1, C), lambda i: (0, 0)),
            pl.BlockSpec((1, C), lambda i: (0, 0)),
            pl.BlockSpec((C, nc), lambda i: (0, 0)),
            pl.BlockSpec((1, nc), lambda i: (0, 0)),
        ],
        out_specs=pl.BlockSpec((N, nc), lambda i: (0, 0)),
        compiler_params=pltpu.CompilerParams(
            dimension_semantics=("arbitrary",)),
    )(x3, scale.reshape(1, C), shift.reshape(1, C),
      params["logit_w"], params["logit_b"].reshape(1, nc))
    return logits


preact_resnet_forward = jax.jit(_forward, static_argnums=(2,))


# ---------------------------------- Main ----------------------------------- #

if __name__ == "__main__":
    num_units = [1, 1, 1]     # one block per stage: channels 16 -> 32 -> 64
    num_classes = 10

    x = jax.random.normal(jax.random.PRNGKey(0), (2, 3, 16, 16), jnp.float32)
    params, block_cfg = init_params(jax.random.PRNGKey(1), num_units, num_classes)

    logits = preact_resnet_forward(x, params, block_cfg)
    logits = jax.block_until_ready(logits)

    assert logits.shape == (2, num_classes), logits.shape
    assert bool(jnp.all(jnp.isfinite(logits)))
    print("KERNEL_OK")
</pallas_src>

<mosaic_0001>
module attributes {stable_mosaic.version = 11 : i64} {
  func.func @_conv_mm_kernel(%arg0: i32, %arg1: memref<512x27xbf16, #tpu.memory_space<vmem>>, %arg2: memref<27x16xbf16, #tpu.memory_space<vmem>>, %arg3: memref<1x16xf32, #tpu.memory_space<vmem>>, %arg4: memref<512x16xbf16, #tpu.memory_space<vmem>>) attributes {dimension_semantics = [#tpu.dimension_semantics<parallel>], iteration_bounds = array<i64: 1>, scalar_prefetch = 0 : i64, scratch_operands = 0 : i64, tpu.core_type = #tpu.core_type<tc>, window_params = [{transform_indices = @transform_0, window_bounds = array<i64: 512, 27>}, {pipeline_mode = #tpu.pipeline_mode<synchronous>, transform_indices = @transform_1, window_bounds = array<i64: 27, 16>}, {pipeline_mode = #tpu.pipeline_mode<synchronous>, transform_indices = @transform_2, window_bounds = array<i64: 1, 16>}, {transform_indices = @transform_3, window_bounds = array<i64: 512, 16>}]} {
    %c0 = arith.constant 0 : index
    %c0_0 = arith.constant 0 : index
    %0 = vector.load %arg1[%c0, %c0_0] : memref<512x27xbf16, #tpu.memory_space<vmem>>, vector<512x27xbf16>
    %c0_1 = arith.constant 0 : index
    %c0_2 = arith.constant 0 : index
    %1 = vector.load %arg2[%c0_1, %c0_2] : memref<27x16xbf16, #tpu.memory_space<vmem>>, vector<27x16xbf16>
    %cst = arith.constant dense<0.000000e+00> : vector<512x16xf32>
    %2 = tpu.matmul %0, %1, %cst {dimension_numbers = #tpu.dot_dimension_numbers<[1], [0], [0], [1], [0, 0, 1, 1], [], []>} : vector<512x27xbf16>, vector<27x16xbf16>, vector<512x16xf32> -> vector<512x16xf32>
    %c0_3 = arith.constant 0 : index
    %c0_4 = arith.constant 0 : index
    %3 = vector.load %arg3[%c0_3, %c0_4] : memref<1x16xf32, #tpu.memory_space<vmem>>, vector<1x16xf32>
    %4 = vector.broadcast %3 : vector<1x16xf32> to vector<512x16xf32>
    %5 = arith.addf %2, %4 : vector<512x16xf32>
    %6 = arith.truncf %5 : vector<512x16xf32> to vector<512x16xbf16>
    %c0_5 = arith.constant 0 : index
    %c0_6 = arith.constant 0 : index
    %7 = vector.load %arg4[%c0_5, %c0_6] : memref<512x16xbf16, #tpu.memory_space<vmem>>, vector<512x16xbf16>
    tpu.vector_store %arg4[%c0_5, %c0_6], %6 {strides = array<i32>} : memref<512x16xbf16, #tpu.memory_space<vmem>>, vector<512x16xbf16>,
    return
  }
  func.func @transform_0(%arg0: i32) -> (i32, i32) {
    %c0_i32 = arith.constant 0 : i32
    %c0_i32_0 = arith.constant 0 : i32
    return %arg0, %c0_i32 : i32, i32
  }
  func.func @transform_1(%arg0: i32) -> (i32, i32) {
    %c0_i32 = arith.constant 0 : i32
    %c0_i32_0 = arith.constant 0 : i32
    %c0_i32_1 = arith.constant 0 : i32
    return %c0_i32, %c0_i32_0 : i32, i32
  }
  func.func @transform_2(%arg0: i32) -> (i32, i32) {
    %c0_i32 = arith.constant 0 : i32
    %c0_i32_0 = arith.constant 0 : i32
    %c0_i32_1 = arith.constant 0 : i32
    return %c0_i32, %c0_i32_0 : i32, i32
  }
  func.func @transform_3(%arg0: i32) -> (i32, i32) {
    %c0_i32 = arith.constant 0 : i32
    %c0_i32_0 = arith.constant 0 : i32
    return %arg0, %c0_i32 : i32, i32
  }
}

module attributes {stable_mosaic.version = 11 : i64} {
  func.func @_conv_mm_kernel(%arg0: i32, %arg1: memref<512x144xbf16, #tpu.memory_space<vmem>>, %arg2: memref<144x16xbf16, #tpu.memory_space<vmem>>, %arg3: memref<1x16xf32, #tpu.memory_space<vmem>>, %arg4: memref<1x16xf32, #tpu.memory_space<vmem>>, %arg5: memref<512x16xbf16, #tpu.memory_space<vmem>>) attributes {dimension_semantics = [#tpu.dimension_semantics<parallel>], iteration_bounds = array<i64: 1>, scalar_prefetch = 0 : i64, scratch_operands = 0 : i64, tpu.core_type = #tpu.core_type<tc>, window_params = [{transform_indices = @transform_0, window_bounds = array<i64: 512, 144>}, {pipeline_mode = #tpu.pipeline_mode<synchronous>, transform_indices = @transform_1, window_bounds = array<i64: 144, 16>}, {pipeline_mode = #tpu.pipeline_mode<synchronous>, transform_indices = @transform_2, window_bounds = array<i64: 1, 16>}, {pipeline_mode = #tpu.pipeline_mode<synchronous>, transform_indices = @transform_3, window_bounds = array<i64: 1, 16>}, {transform_indices = @transform_4, window_bounds = array<i64: 512, 16>}]} {
    %c0 = arith.constant 0 : index
    %c0_0 = arith.constant 0 : index
    %0 = vector.load %arg1[%c0, %c0_0] : memref<512x144xbf16, #tpu.memory_space<vmem>>, vector<512x144xbf16>
    %c0_1 = arith.constant 0 : index
    %c0_2 = arith.constant 0 : index
    %1 = vector.load %arg2[%c0_1, %c0_2] : memref<144x16xbf16, #tpu.memory_space<vmem>>, vector<144x16xbf16>
    %cst = arith.constant dense<0.000000e+00> : vector<512x16xf32>
    %2 = tpu.matmul %0, %1, %cst {dimension_numbers = #tpu.dot_dimension_numbers<[1], [0], [0], [1], [0, 0, 1, 1], [], []>} : vector<512x144xbf16>, vector<144x16xbf16>, vector<512x16xf32> -> vector<512x16xf32>
    %c0_3 = arith.constant 0 : index
    %c0_4 = arith.constant 0 : index
    %3 = vector.load %arg3[%c0_3, %c0_4] : memref<1x16xf32, #tpu.memory_space<vmem>>, vector<1x16xf32>
    %4 = vector.broadcast %3 : vector<1x16xf32> to vector<512x16xf32>
    %5 = arith.mulf %2, %4 : vector<512x16xf32>
    %c0_5 = arith.constant 0 : index
    %c0_6 = arith.constant 0 : index
    %6 = vector.load %arg4[%c0_5, %c0_6] : memref<1x16xf32, #tpu.memory_space<vmem>>, vector<1x16xf32>
    %7 = vector.broadcast %6 : vector<1x16xf32> to vector<512x16xf32>
    %8 = arith.addf %5, %7 : vector<512x16xf32>
    %cst_7 = arith.constant 0.000000e+00 : f32
    %9 = vector.broadcast %cst_7 : f32 to vector<512x16xf32>
    %10 = arith.maximumf %8, %9 : vector<512x16xf32>
    %11 = arith.truncf %10 : vector<512x16xf32> to vector<512x16xbf16>
    %c0_8 = arith.constant 0 : index
    %c0_9 = arith.constant 0 : index
    %12 = vector.load %arg5[%c0_8, %c0_9] : memref<512x16xbf16, #tpu.memory_space<vmem>>, vector<512x16xbf16>
    tpu.vector_store %arg5[%c0_8, %c0_9], %11 {strides = array<i32>} : memref<512x16xbf16, #tpu.memory_space<vmem>>, vector<512x16xbf16>,
    return
  }
  func.func @transform_0(%arg0: i32) -> (i32, i32) {
    %c0_i32 = arith.constant 0 : i32
    %c0_i32_0 = arith.constant 0 : i32
    return %arg0, %c0_i32 : i32, i32
  }
  func.func @transform_1(%arg0: i32) -> (i32, i32) {
    %c0_i32 = arith.constant 0 : i32
    %c0_i32_0 = arith.constant 0 : i32
    %c0_i32_1 = arith.constant 0 : i32
    return %c0_i32, %c0_i32_0 : i32, i32
  }
  func.func @transform_2(%arg0: i32) -> (i32, i32) {
    %c0_i32 = arith.constant 0 : i32
    %c0_i32_0 = arith.constant 0 : i32
    %c0_i32_1 = arith.constant 0 : i32
    return %c0_i32, %c0_i32_0 : i32, i32
  }
  func.func @transform_3(%arg0: i32) -> (i32, i32) {
    %c0_i32 = arith.constant 0 : i32
    %c0_i32_0 = arith.constant 0 : i32
    %c0_i32_1 = arith.constant 0 : i32
    return %c0_i32, %c0_i32_0 : i32, i32
  }
  func.func @transform_4(%arg0: i32) -> (i32, i32) {
    %c0_i32 = arith.constant 0 : i32
    %c0_i32_0 = arith.constant 0 : i32
    return %arg0, %c0_i32 : i32, i32
  }
}

module attributes {stable_mosaic.version = 11 : i64} {
  func.func @_conv_mm_kernel(%arg0: i32, %arg1: memref<512x144xbf16, #tpu.memory_space<vmem>>, %arg2: memref<144x16xbf16, #tpu.memory_space<vmem>>, %arg3: memref<512x16xbf16, #tpu.memory_space<vmem>>, %arg4: memref<512x16xbf16, #tpu.memory_space<vmem>>) attributes {dimension_semantics = [#tpu.dimension_semantics<parallel>], iteration_bounds = array<i64: 1>, scalar_prefetch = 0 : i64, scratch_operands = 0 : i64, tpu.core_type = #tpu.core_type<tc>, window_params = [{transform_indices = @transform_0, window_bounds = array<i64: 512, 144>}, {pipeline_mode = #tpu.pipeline_mode<synchronous>, transform_indices = @transform_1, window_bounds = array<i64: 144, 16>}, {transform_indices = @transform_2, window_bounds = array<i64: 512, 16>}, {transform_indices = @transform_3, window_bounds = array<i64: 512, 16>}]} {
    %c0 = arith.constant 0 : index
    %c0_0 = arith.constant 0 : index
    %0 = vector.load %arg1[%c0, %c0_0] : memref<512x144xbf16, #tpu.memory_space<vmem>>, vector<512x144xbf16>
    %c0_1 = arith.constant 0 : index
    %c0_2 = arith.constant 0 : index
    %1 = vector.load %arg2[%c0_1, %c0_2] : memref<144x16xbf16, #tpu.memory_space<vmem>>, vector<144x16xbf16>
    %cst = arith.constant dense<0.000000e+00> : vector<512x16xf32>
    %2 = tpu.matmul %0, %1, %cst {dimension_numbers = #tpu.dot_dimension_numbers<[1], [0], [0], [1], [0, 0, 1, 1], [], []>} : vector<512x144xbf16>, vector<144x16xbf16>, vector<512x16xf32> -> vector<512x16xf32>
    %c0_3 = arith.constant 0 : index
    %c0_4 = arith.constant 0 : index
    %3 = vector.load %arg3[%c0_3, %c0_4] : memref<512x16xbf16, #tpu.memory_space<vmem>>, vector<512x16xbf16>
    %4 = arith.extf %3 : vector<512x16xbf16> to vector<512x16xf32>
    %5 = arith.addf %2, %4 : vector<512x16xf32>
    %6 = arith.truncf %5 : vector<512x16xf32> to vector<512x16xbf16>
    %c0_5 = arith.constant 0 : index
    %c0_6 = arith.constant 0 : index
    %7 = vector.load %arg4[%c0_5, %c0_6] : memref<512x16xbf16, #tpu.memory_space<vmem>>, vector<512x16xbf16>
    tpu.vector_store %arg4[%c0_5, %c0_6], %6 {strides = array<i32>} : memref<512x16xbf16, #tpu.memory_space<vmem>>, vector<512x16xbf16>,
    return
  }
  func.func @transform_0(%arg0: i32) -> (i32, i32) {
    %c0_i32 = arith.constant 0 : i32
    %c0_i32_0 = arith.constant 0 : i32
    return %arg0, %c0_i32 : i32, i32
  }
  func.func @transform_1(%arg0: i32) -> (i32, i32) {
    %c0_i32 = arith.constant 0 : i32
    %c0_i32_0 = arith.constant 0 : i32
    %c0_i32_1 = arith.constant 0 : i32
    return %c0_i32, %c0_i32_0 : i32, i32
  }
  func.func @transform_2(%arg0: i32) -> (i32, i32) {
    %c0_i32 = arith.constant 0 : i32
    %c0_i32_0 = arith.constant 0 : i32
    return %arg0, %c0_i32 : i32, i32
  }
  func.func @transform_3(%arg0: i32) -> (i32, i32) {
    %c0_i32 = arith.constant 0 : i32
    %c0_i32_0 = arith.constant 0 : i32
    return %arg0, %c0_i32 : i32, i32
  }
}

module attributes {stable_mosaic.version = 11 : i64} {
  func.func @_conv_mm_kernel(%arg0: i32, %arg1: memref<128x144xbf16, #tpu.memory_space<vmem>>, %arg2: memref<144x32xbf16, #tpu.memory_space<vmem>>, %arg3: memref<1x32xf32, #tpu.memory_space<vmem>>, %arg4: memref<1x32xf32, #tpu.memory_space<vmem>>, %arg5: memref<128x32xbf16, #tpu.memory_space<vmem>>) attributes {dimension_semantics = [#tpu.dimension_semantics<parallel>], iteration_bounds = array<i64: 1>, scalar_prefetch = 0 : i64, scratch_operands = 0 : i64, tpu.core_type = #tpu.core_type<tc>, window_params = [{transform_indices = @transform_0, window_bounds = array<i64: 128, 144>}, {pipeline_mode = #tpu.pipeline_mode<synchronous>, transform_indices = @transform_1, window_bounds = array<i64: 144, 32>}, {pipeline_mode = #tpu.pipeline_mode<synchronous>, transform_indices = @transform_2, window_bounds = array<i64: 1, 32>}, {pipeline_mode = #tpu.pipeline_mode<synchronous>, transform_indices = @transform_3, window_bounds = array<i64: 1, 32>}, {transform_indices = @transform_4, window_bounds = array<i64: 128, 32>}]} {
    %c0 = arith.constant 0 : index
    %c0_0 = arith.constant 0 : index
    %0 = vector.load %arg1[%c0, %c0_0] : memref<128x144xbf16, #tpu.memory_space<vmem>>, vector<128x144xbf16>
    %c0_1 = arith.constant 0 : index
    %c0_2 = arith.constant 0 : index
    %1 = vector.load %arg2[%c0_1, %c0_2] : memref<144x32xbf16, #tpu.memory_space<vmem>>, vector<144x32xbf16>
    %cst = arith.constant dense<0.000000e+00> : vector<128x32xf32>
    %2 = tpu.matmul %0, %1, %cst {dimension_numbers = #tpu.dot_dimension_numbers<[1], [0], [0], [1], [0, 0, 1, 1], [], []>} : vector<128x144xbf16>, vector<144x32xbf16>, vector<128x32xf32> -> vector<128x32xf32>
    %c0_3 = arith.constant 0 : index
    %c0_4 = arith.constant 0 : index
    %3 = vector.load %arg3[%c0_3, %c0_4] : memref<1x32xf32, #tpu.memory_space<vmem>>, vector<1x32xf32>
    %4 = vector.broadcast %3 : vector<1x32xf32> to vector<128x32xf32>
    %5 = arith.mulf %2, %4 : vector<128x32xf32>
    %c0_5 = arith.constant 0 : index
    %c0_6 = arith.constant 0 : index
    %6 = vector.load %arg4[%c0_5, %c0_6] : memref<1x32xf32, #tpu.memory_space<vmem>>, vector<1x32xf32>
    %7 = vector.broadcast %6 : vector<1x32xf32> to vector<128x32xf32>
    %8 = arith.addf %5, %7 : vector<128x32xf32>
    %cst_7 = arith.constant 0.000000e+00 : f32
    %9 = vector.broadcast %cst_7 : f32 to vector<128x32xf32>
    %10 = arith.maximumf %8, %9 : vector<128x32xf32>
    %11 = arith.truncf %10 : vector<128x32xf32> to vector<128x32xbf16>
    %c0_8 = arith.constant 0 : index
    %c0_9 = arith.constant 0 : index
    %12 = vector.load %arg5[%c0_8, %c0_9] : memref<128x32xbf16, #tpu.memory_space<vmem>>, vector<128x32xbf16>
    tpu.vector_store %arg5[%c0_8, %c0_9], %11 {strides = array<i32>} : memref<128x32xbf16, #tpu.memory_space<vmem>>, vector<128x32xbf16>,
    return
  }
  func.func @transform_0(%arg0: i32) -> (i32, i32) {
    %c0_i32 = arith.constant 0 : i32
    %c0_i32_0 = arith.constant 0 : i32
    return %arg0, %c0_i32 : i32, i32
  }
  func.func @transform_1(%arg0: i32) -> (i32, i32) {
    %c0_i32 = arith.constant 0 : i32
    %c0_i32_0 = arith.constant 0 : i32
    %c0_i32_1 = arith.constant 0 : i32
    return %c0_i32, %c0_i32_0 : i32, i32
  }
  func.func @transform_2(%arg0: i32) -> (i32, i32) {
    %c0_i32 = arith.constant 0 : i32
    %c0_i32_0 = arith.constant 0 : i32
    %c0_i32_1 = arith.constant 0 : i32
    return %c0_i32, %c0_i32_0 : i32, i32
  }
  func.func @transform_3(%arg0: i32) -> (i32, i32) {
    %c0_i32 = arith.constant 0 : i32
    %c0_i32_0 = arith.constant 0 : i32
    %c0_i32_1 = arith.constant 0 : i32
    return %c0_i32, %c0_i32_0 : i32, i32
  }
  func.func @transform_4(%arg0: i32) -> (i32, i32) {
    %c0_i32 = arith.constant 0 : i32
    %c0_i32_0 = arith.constant 0 : i32
    return %arg0, %c0_i32 : i32, i32
  }
}

module attributes {stable_mosaic.version = 11 : i64} {
  func.func @_conv_mm_kernel(%arg0: i32, %arg1: memref<128x16xbf16, #tpu.memory_space<vmem>>, %arg2: memref<16x32xbf16, #tpu.memory_space<vmem>>, %arg3: memref<128x32xbf16, #tpu.memory_space<vmem>>) attributes {dimension_semantics = [#tpu.dimension_semantics<parallel>], iteration_bounds = array<i64: 1>, scalar_prefetch = 0 : i64, scratch_operands = 0 : i64, tpu.core_type = #tpu.core_type<tc>, window_params = [{transform_indices = @transform_0, window_bounds = array<i64: 128, 16>}, {pipeline_mode = #tpu.pipeline_mode<synchronous>, transform_indices = @transform_1, window_bounds = array<i64: 16, 32>}, {transform_indices = @transform_2, window_bounds = array<i64: 128, 32>}]} {
    %c0 = arith.constant 0 : index
    %c0_0 = arith.constant 0 : index
    %0 = vector.load %arg1[%c0, %c0_0] : memref<128x16xbf16, #tpu.memory_space<vmem>>, vector<128x16xbf16>
    %c0_1 = arith.constant 0 : index
    %c0_2 = arith.constant 0 : index
    %1 = vector.load %arg2[%c0_1, %c0_2] : memref<16x32xbf16, #tpu.memory_space<vmem>>, vector<16x32xbf16>
    %cst = arith.constant dense<0.000000e+00> : vector<128x32xf32>
    %2 = tpu.matmul %0, %1, %cst {dimension_numbers = #tpu.dot_dimension_numbers<[1], [0], [0], [1], [0, 0, 1, 1], [], []>} : vector<128x16xbf16>, vector<16x32xbf16>, vector<128x32xf32> -> vector<128x32xf32>
    %3 = arith.truncf %2 : vector<128x32xf32> to vector<128x32xbf16>
    %c0_3 = arith.constant 0 : index
    %c0_4 = arith.constant 0 : index
    %4 = vector.load %arg3[%c0_3, %c0_4] : memref<128x32xbf16, #tpu.memory_space<vmem>>, vector<128x32xbf16>
    tpu.vector_store %arg3[%c0_3, %c0_4], %3 {strides = array<i32>} : memref<128x32xbf16, #tpu.memory_space<vmem>>, vector<128x32xbf16>,
    return
  }
  func.func @transform_0(%arg0: i32) -> (i32, i32) {
    %c0_i32 = arith.constant 0 : i32
    %c0_i32_0 = arith.constant 0 : i32
    return %arg0, %c0_i32 : i32, i32
  }
  func.func @transform_1(%arg0: i32) -> (i32, i32) {
    %c0_i32 = arith.constant 0 : i32
    %c0_i32_0 = arith.constant 0 : i32
    %c0_i32_1 = arith.constant 0 : i32
    return %c0_i32, %c0_i32_0 : i32, i32
  }
  func.func @transform_2(%arg0: i32) -> (i32, i32) {
    %c0_i32 = arith.constant 0 : i32
    %c0_i32_0 = arith.constant 0 : i32
    return %arg0, %c0_i32 : i32, i32
  }
}

module attributes {stable_mosaic.version = 11 : i64} {
  func.func @_conv_mm_kernel(%arg0: i32, %arg1: memref<128x288xbf16, #tpu.memory_space<vmem>>, %arg2: memref<288x32xbf16, #tpu.memory_space<vmem>>, %arg3: memref<128x32xbf16, #tpu.memory_space<vmem>>, %arg4: memref<128x32xbf16, #tpu.memory_space<vmem>>) attributes {dimension_semantics = [#tpu.dimension_semantics<parallel>], iteration_bounds = array<i64: 1>, scalar_prefetch = 0 : i64, scratch_operands = 0 : i64, tpu.core_type = #tpu.core_type<tc>, window_params = [{transform_indices = @transform_0, window_bounds = array<i64: 128, 288>}, {pipeline_mode = #tpu.pipeline_mode<synchronous>, transform_indices = @transform_1, window_bounds = array<i64: 288, 32>}, {transform_indices = @transform_2, window_bounds = array<i64: 128, 32>}, {transform_indices = @transform_3, window_bounds = array<i64: 128, 32>}]} {
    %c0 = arith.constant 0 : index
    %c0_0 = arith.constant 0 : index
    %0 = vector.load %arg1[%c0, %c0_0] : memref<128x288xbf16, #tpu.memory_space<vmem>>, vector<128x288xbf16>
    %c0_1 = arith.constant 0 : index
    %c0_2 = arith.constant 0 : index
    %1 = vector.load %arg2[%c0_1, %c0_2] : memref<288x32xbf16, #tpu.memory_space<vmem>>, vector<288x32xbf16>
    %cst = arith.constant dense<0.000000e+00> : vector<128x32xf32>
    %2 = tpu.matmul %0, %1, %cst {dimension_numbers = #tpu.dot_dimension_numbers<[1], [0], [0], [1], [0, 0, 1, 1], [], []>} : vector<128x288xbf16>, vector<288x32xbf16>, vector<128x32xf32> -> vector<128x32xf32>
    %c0_3 = arith.constant 0 : index
    %c0_4 = arith.constant 0 : index
    %3 = vector.load %arg3[%c0_3, %c0_4] : memref<128x32xbf16, #tpu.memory_space<vmem>>, vector<128x32xbf16>
    %4 = arith.extf %3 : vector<128x32xbf16> to vector<128x32xf32>
    %5 = arith.addf %2, %4 : vector<128x32xf32>
    %6 = arith.truncf %5 : vector<128x32xf32> to vector<128x32xbf16>
    %c0_5 = arith.constant 0 : index
    %c0_6 = arith.constant 0 : index
    %7 = vector.load %arg4[%c0_5, %c0_6] : memref<128x32xbf16, #tpu.memory_space<vmem>>, vector<128x32xbf16>
    tpu.vector_store %arg4[%c0_5, %c0_6], %6 {strides = array<i32>} : memref<128x32xbf16, #tpu.memory_space<vmem>>, vector<128x32xbf16>,
    return
  }
  func.func @transform_0(%arg0: i32) -> (i32, i32) {
    %c0_i32 = arith.constant 0 : i32
    %c0_i32_0 = arith.constant 0 : i32
    return %arg0, %c0_i32 : i32, i32
  }
  func.func @transform_1(%arg0: i32) -> (i32, i32) {
    %c0_i32 = arith.constant 0 : i32
    %c0_i32_0 = arith.constant 0 : i32
    %c0_i32_1 = arith.constant 0 : i32
    return %c0_i32, %c0_i32_0 : i32, i32
  }
  func.func @transform_2(%arg0: i32) -> (i32, i32) {
    %c0_i32 = arith.constant 0 : i32
    %c0_i32_0 = arith.constant 0 : i32
    return %arg0, %c0_i32 : i32, i32
  }
  func.func @transform_3(%arg0: i32) -> (i32, i32) {
    %c0_i32 = arith.constant 0 : i32
    %c0_i32_0 = arith.constant 0 : i32
    return %arg0, %c0_i32 : i32, i32
  }
}

module attributes {stable_mosaic.version = 11 : i64} {
  func.func @_conv_mm_kernel(%arg0: i32, %arg1: memref<32x288xbf16, #tpu.memory_space<vmem>>, %arg2: memref<288x64xbf16, #tpu.memory_space<vmem>>, %arg3: memref<1x64xf32, #tpu.memory_space<vmem>>, %arg4: memref<1x64xf32, #tpu.memory_space<vmem>>, %arg5: memref<32x64xbf16, #tpu.memory_space<vmem>>) attributes {dimension_semantics = [#tpu.dimension_semantics<parallel>], iteration_bounds = array<i64: 1>, scalar_prefetch = 0 : i64, scratch_operands = 0 : i64, tpu.core_type = #tpu.core_type<tc>, window_params = [{transform_indices = @transform_0, window_bounds = array<i64: 32, 288>}, {pipeline_mode = #tpu.pipeline_mode<synchronous>, transform_indices = @transform_1, window_bounds = array<i64: 288, 64>}, {pipeline_mode = #tpu.pipeline_mode<synchronous>, transform_indices = @transform_2, window_bounds = array<i64: 1, 64>}, {pipeline_mode = #tpu.pipeline_mode<synchronous>, transform_indices = @transform_3, window_bounds = array<i64: 1, 64>}, {transform_indices = @transform_4, window_bounds = array<i64: 32, 64>}]} {
    %c0 = arith.constant 0 : index
    %c0_0 = arith.constant 0 : index
    %0 = vector.load %arg1[%c0, %c0_0] : memref<32x288xbf16, #tpu.memory_space<vmem>>, vector<32x288xbf16>
    %c0_1 = arith.constant 0 : index
    %c0_2 = arith.constant 0 : index
    %1 = vector.load %arg2[%c0_1, %c0_2] : memref<288x64xbf16, #tpu.memory_space<vmem>>, vector<288x64xbf16>
    %cst = arith.constant dense<0.000000e+00> : vector<32x64xf32>
    %2 = tpu.matmul %0, %1, %cst {dimension_numbers = #tpu.dot_dimension_numbers<[1], [0], [0], [1], [0, 0, 1, 1], [], []>} : vector<32x288xbf16>, vector<288x64xbf16>, vector<32x64xf32> -> vector<32x64xf32>
    %c0_3 = arith.constant 0 : index
    %c0_4 = arith.constant 0 : index
    %3 = vector.load %arg3[%c0_3, %c0_4] : memref<1x64xf32, #tpu.memory_space<vmem>>, vector<1x64xf32>
    %4 = vector.broadcast %3 : vector<1x64xf32> to vector<32x64xf32>
    %5 = arith.mulf %2, %4 : vector<32x64xf32>
    %c0_5 = arith.constant 0 : index
    %c0_6 = arith.constant 0 : index
    %6 = vector.load %arg4[%c0_5, %c0_6] : memref<1x64xf32, #tpu.memory_space<vmem>>, vector<1x64xf32>
    %7 = vector.broadcast %6 : vector<1x64xf32> to vector<32x64xf32>
    %8 = arith.addf %5, %7 : vector<32x64xf32>
    %cst_7 = arith.constant 0.000000e+00 : f32
    %9 = vector.broadcast %cst_7 : f32 to vector<32x64xf32>
    %10 = arith.maximumf %8, %9 : vector<32x64xf32>
    %11 = arith.truncf %10 : vector<32x64xf32> to vector<32x64xbf16>
    %c0_8 = arith.constant 0 : index
    %c0_9 = arith.constant 0 : index
    %12 = vector.load %arg5[%c0_8, %c0_9] : memref<32x64xbf16, #tpu.memory_space<vmem>>, vector<32x64xbf16>
    tpu.vector_store %arg5[%c0_8, %c0_9], %11 {strides = array<i32>} : memref<32x64xbf16, #tpu.memory_space<vmem>>, vector<32x64xbf16>,
    return
  }
  func.func @transform_0(%arg0: i32) -> (i32, i32) {
    %c0_i32 = arith.constant 0 : i32
    %c0_i32_0 = arith.constant 0 : i32
    return %arg0, %c0_i32 : i32, i32
  }
  func.func @transform_1(%arg0: i32) -> (i32, i32) {
    %c0_i32 = arith.constant 0 : i32
    %c0_i32_0 = arith.constant 0 : i32
    %c0_i32_1 = arith.constant 0 : i32
    return %c0_i32, %c0_i32_0 : i32, i32
  }
  func.func @transform_2(%arg0: i32) -> (i32, i32) {
    %c0_i32 = arith.constant 0 : i32
    %c0_i32_0 = arith.constant 0 : i32
    %c0_i32_1 = arith.constant 0 : i32
    return %c0_i32, %c0_i32_0 : i32, i32
  }
  func.func @transform_3(%arg0: i32) -> (i32, i32) {
    %c0_i32 = arith.constant 0 : i32
    %c0_i32_0 = arith.constant 0 : i32
    %c0_i32_1 = arith.constant 0 : i32
    return %c0_i32, %c0_i32_0 : i32, i32
  }
  func.func @transform_4(%arg0: i32) -> (i32, i32) {
    %c0_i32 = arith.constant 0 : i32
    %c0_i32_0 = arith.constant 0 : i32
    return %arg0, %c0_i32 : i32, i32
  }
}

module attributes {stable_mosaic.version = 11 : i64} {
  func.func @_conv_mm_kernel(%arg0: i32, %arg1: memref<32x32xbf16, #tpu.memory_space<vmem>>, %arg2: memref<32x64xbf16, #tpu.memory_space<vmem>>, %arg3: memref<32x64xbf16, #tpu.memory_space<vmem>>) attributes {dimension_semantics = [#tpu.dimension_semantics<parallel>], iteration_bounds = array<i64: 1>, scalar_prefetch = 0 : i64, scratch_operands = 0 : i64, tpu.core_type = #tpu.core_type<tc>, window_params = [{transform_indices = @transform_0, window_bounds = array<i64: 32, 32>}, {pipeline_mode = #tpu.pipeline_mode<synchronous>, transform_indices = @transform_1, window_bounds = array<i64: 32, 64>}, {transform_indices = @transform_2, window_bounds = array<i64: 32, 64>}]} {
    %c0 = arith.constant 0 : index
    %c0_0 = arith.constant 0 : index
    %0 = vector.load %arg1[%c0, %c0_0] : memref<32x32xbf16, #tpu.memory_space<vmem>>, vector<32x32xbf16>
    %c0_1 = arith.constant 0 : index
    %c0_2 = arith.constant 0 : index
    %1 = vector.load %arg2[%c0_1, %c0_2] : memref<32x64xbf16, #tpu.memory_space<vmem>>, vector<32x64xbf16>
    %cst = arith.constant dense<0.000000e+00> : vector<32x64xf32>
    %2 = tpu.matmul %0, %1, %cst {dimension_numbers = #tpu.dot_dimension_numbers<[1], [0], [0], [1], [0, 0, 1, 1], [], []>} : vector<32x32xbf16>, vector<32x64xbf16>, vector<32x64xf32> -> vector<32x64xf32>
    %3 = arith.truncf %2 : vector<32x64xf32> to vector<32x64xbf16>
    %c0_3 = arith.constant 0 : index
    %c0_4 = arith.constant 0 : index
    %4 = vector.load %arg3[%c0_3, %c0_4] : memref<32x64xbf16, #tpu.memory_space<vmem>>, vector<32x64xbf16>
    tpu.vector_store %arg3[%c0_3, %c0_4], %3 {strides = array<i32>} : memref<32x64xbf16, #tpu.memory_space<vmem>>, vector<32x64xbf16>,
    return
  }
  func.func @transform_0(%arg0: i32) -> (i32, i32) {
    %c0_i32 = arith.constant 0 : i32
    %c0_i32_0 = arith.constant 0 : i32
    return %arg0, %c0_i32 : i32, i32
  }
  func.func @transform_1(%arg0: i32) -> (i32, i32) {
    %c0_i32 = arith.constant 0 : i32
    %c0_i32_0 = arith.constant 0 : i32
    %c0_i32_1 = arith.constant 0 : i32
    return %c0_i32, %c0_i32_0 : i32, i32
  }
  func.func @transform_2(%arg0: i32) -> (i32, i32) {
    %c0_i32 = arith.constant 0 : i32
    %c0_i32_0 = arith.constant 0 : i32
    return %arg0, %c0_i32 : i32, i32
  }
}

module attributes {stable_mosaic.version = 11 : i64} {
  func.func @_conv_mm_kernel(%arg0: i32, %arg1: memref<32x576xbf16, #tpu.memory_space<vmem>>, %arg2: memref<576x64xbf16, #tpu.memory_space<vmem>>, %arg3: memref<32x64xbf16, #tpu.memory_space<vmem>>, %arg4: memref<32x64xbf16, #tpu.memory_space<vmem>>) attributes {dimension_semantics = [#tpu.dimension_semantics<parallel>], iteration_bounds = array<i64: 1>, scalar_prefetch = 0 : i64, scratch_operands = 0 : i64, tpu.core_type = #tpu.core_type<tc>, window_params = [{transform_indices = @transform_0, window_bounds = array<i64: 32, 576>}, {pipeline_mode = #tpu.pipeline_mode<synchronous>, transform_indices = @transform_1, window_bounds = array<i64: 576, 64>}, {transform_indices = @transform_2, window_bounds = array<i64: 32, 64>}, {transform_indices = @transform_3, window_bounds = array<i64: 32, 64>}]} {
    %c0 = arith.constant 0 : index
    %c0_0 = arith.constant 0 : index
    %0 = vector.load %arg1[%c0, %c0_0] : memref<32x576xbf16, #tpu.memory_space<vmem>>, vector<32x576xbf16>
    %c0_1 = arith.constant 0 : index
    %c0_2 = arith.constant 0 : index
    %1 = vector.load %arg2[%c0_1, %c0_2] : memref<576x64xbf16, #tpu.memory_space<vmem>>, vector<576x64xbf16>
    %cst = arith.constant dense<0.000000e+00> : vector<32x64xf32>
    %2 = tpu.matmul %0, %1, %cst {dimension_numbers = #tpu.dot_dimension_numbers<[1], [0], [0], [1], [0, 0, 1, 1], [], []>} : vector<32x576xbf16>, vector<576x64xbf16>, vector<32x64xf32> -> vector<32x64xf32>
    %c0_3 = arith.constant 0 : index
    %c0_4 = arith.constant 0 : index
    %3 = vector.load %arg3[%c0_3, %c0_4] : memref<32x64xbf16, #tpu.memory_space<vmem>>, vector<32x64xbf16>
    %4 = arith.extf %3 : vector<32x64xbf16> to vector<32x64xf32>
    %5 = arith.addf %2, %4 : vector<32x64xf32>
    %6 = arith.truncf %5 : vector<32x64xf32> to vector<32x64xbf16>
    %c0_5 = arith.constant 0 : index
    %c0_6 = arith.constant 0 : index
    %7 = vector.load %arg4[%c0_5, %c0_6] : memref<32x64xbf16, #tpu.memory_space<vmem>>, vector<32x64xbf16>
    tpu.vector_store %arg4[%c0_5, %c0_6], %6 {strides = array<i32>} : memref<32x64xbf16, #tpu.memory_space<vmem>>, vector<32x64xbf16>,
    return
  }
  func.func @transform_0(%arg0: i32) -> (i32, i32) {
    %c0_i32 = arith.constant 0 : i32
    %c0_i32_0 = arith.constant 0 : i32
    return %arg0, %c0_i32 : i32, i32
  }
  func.func @transform_1(%arg0: i32) -> (i32, i32) {
    %c0_i32 = arith.constant 0 : i32
    %c0_i32_0 = arith.constant 0 : i32
    %c0_i32_1 = arith.constant 0 : i32
    return %c0_i32, %c0_i32_0 : i32, i32
  }
  func.func @transform_2(%arg0: i32) -> (i32, i32) {
    %c0_i32 = arith.constant 0 : i32
    %c0_i32_0 = arith.constant 0 : i32
    return %arg0, %c0_i32 : i32, i32
  }
  func.func @transform_3(%arg0: i32) -> (i32, i32) {
    %c0_i32 = arith.constant 0 : i32
    %c0_i32_0 = arith.constant 0 : i32
    return %arg0, %c0_i32 : i32, i32
  }
}

module attributes {stable_mosaic.version = 11 : i64} {
  func.func @_tail_kernel(%arg0: i32, %arg1: memref<2x16x64xbf16, #tpu.memory_space<vmem>>, %arg2: memref<1x64xf32, #tpu.memory_space<vmem>>, %arg3: memref<1x64xf32, #tpu.memory_space<vmem>>, %arg4: memref<64x10xf32, #tpu.memory_space<vmem>>, %arg5: memref<1x10xf32, #tpu.memory_space<vmem>>, %arg6: memref<2x10xf32, #tpu.memory_space<vmem>>) attributes {dimension_semantics = [#tpu.dimension_semantics<arbitrary>], iteration_bounds = array<i64: 1>, scalar_prefetch = 0 : i64, scratch_operands = 0 : i64, tpu.core_type = #tpu.core_type<tc>, window_params = [{pipeline_mode = #tpu.pipeline_mode<synchronous>, transform_indices = @transform_0, window_bounds = array<i64: 2, 16, 64>}, {pipeline_mode = #tpu.pipeline_mode<synchronous>, transform_indices = @transform_1, window_bounds = array<i64: 1, 64>}, {pipeline_mode = #tpu.pipeline_mode<synchronous>, transform_indices = @transform_2, window_bounds = array<i64: 1, 64>}, {pipeline_mode = #tpu.pipeline_mode<synchronous>, transform_indices = @transform_3, window_bounds = array<i64: 64, 10>}, {pipeline_mode = #tpu.pipeline_mode<synchronous>, transform_indices = @transform_4, window_bounds = array<i64: 1, 10>}, {pipeline_mode = #tpu.pipeline_mode<synchronous>, transform_indices = @transform_5, window_bounds = array<i64: 2, 10>}]} {
    %c0 = arith.constant 0 : index
    %c0_0 = arith.constant 0 : index
    %c0_1 = arith.constant 0 : index
    %0 = vector.load %arg1[%c0, %c0_0, %c0_1] : memref<2x16x64xbf16, #tpu.memory_space<vmem>>, vector<2x16x64xbf16>
    %1 = arith.extf %0 : vector<2x16x64xbf16> to vector<2x16x64xf32>
    %cst = arith.constant dense<0.000000e+00> : vector<2x64xf32>
    %2 = vector.multi_reduction <add>, %1, %cst [1] : vector<2x16x64xf32> to vector<2x64xf32>
    %cst_2 = arith.constant 1.600000e+01 : f32
    %3 = vector.broadcast %cst_2 : f32 to vector<2x64xf32>
    %4 = arith.divf %2, %3 : vector<2x64xf32>
    %c0_3 = arith.constant 0 : index
    %c0_4 = arith.constant 0 : index
    %5 = vector.load %arg2[%c0_3, %c0_4] : memref<1x64xf32, #tpu.memory_space<vmem>>, vector<1x64xf32>
    %6 = vector.broadcast %5 : vector<1x64xf32> to vector<2x64xf32>
    %7 = arith.mulf %4, %6 : vector<2x64xf32>
    %c0_5 = arith.constant 0 : index
    %c0_6 = arith.constant 0 : index
    %8 = vector.load %arg3[%c0_5, %c0_6] : memref<1x64xf32, #tpu.memory_space<vmem>>, vector<1x64xf32>
    %9 = vector.broadcast %8 : vector<1x64xf32> to vector<2x64xf32>
    %10 = arith.addf %7, %9 : vector<2x64xf32>
    %c0_7 = arith.constant 0 : index
    %c0_8 = arith.constant 0 : index
    %11 = vector.load %arg4[%c0_7, %c0_8] : memref<64x10xf32, #tpu.memory_space<vmem>>, vector<64x10xf32>
    %cst_9 = arith.constant dense<0.000000e+00> : vector<2x10xf32>
    %12 = tpu.matmul %10, %11, %cst_9 {dimension_numbers = #tpu.dot_dimension_numbers<[1], [0], [0], [1], [0, 0, 1, 1], [], []>} : vector<2x64xf32>, vector<64x10xf32>, vector<2x10xf32> -> vector<2x10xf32>
    %c0_10 = arith.constant 0 : index
    %c0_11 = arith.constant 0 : index
    %13 = vector.load %arg5[%c0_10, %c0_11] : memref<1x10xf32, #tpu.memory_space<vmem>>, vector<1x10xf32>
    %14 = vector.broadcast %13 : vector<1x10xf32> to vector<2x10xf32>
    %15 = arith.addf %12, %14 : vector<2x10xf32>
    %c0_12 = arith.constant 0 : index
    %c0_13 = arith.constant 0 : index
    %16 = vector.load %arg6[%c0_12, %c0_13] : memref<2x10xf32, #tpu.memory_space<vmem>>, vector<2x10xf32>
    tpu.vector_store %arg6[%c0_12, %c0_13], %15 {strides = array<i32>} : memref<2x10xf32, #tpu.memory_space<vmem>>, vector<2x10xf32>,
    return
  }
  func.func @transform_0(%arg0: i32) -> (i32, i32, i32) {
    %c0_i32 = arith.constant 0 : i32
    %c0_i32_0 = arith.constant 0 : i32
    %c0_i32_1 = arith.constant 0 : i32
    %c0_i32_2 = arith.constant 0 : i32
    return %c0_i32, %c0_i32_0, %c0_i32_1 : i32, i32, i32
  }
  func.func @transform_1(%arg0: i32) -> (i32, i32) {
    %c0_i32 = arith.constant 0 : i32
    %c0_i32_0 = arith.constant 0 : i32
    %c0_i32_1 = arith.constant 0 : i32
    return %c0_i32, %c0_i32_0 : i32, i32
  }
  func.func @transform_2(%arg0: i32) -> (i32, i32) {
    %c0_i32 = arith.constant 0 : i32
    %c0_i32_0 = arith.constant 0 : i32
    %c0_i32_1 = arith.constant 0 : i32
    return %c0_i32, %c0_i32_0 : i32, i32
  }
  func.func @transform_3(%arg0: i32) -> (i32, i32) {
    %c0_i32 = arith.constant 0 : i32
    %c0_i32_0 = arith.constant 0 : i32
    %c0_i32_1 = arith.constant 0 : i32
    return %c0_i32, %c0_i32_0 : i32, i32
  }
  func.func @transform_4(%arg0: i32) -> (i32, i32) {
    %c0_i32 = arith.constant 0 : i32
    %c0_i32_0 = arith.constant 0 : i32
    %c0_i32_1 = arith.constant 0 : i32
    return %c0_i32, %c0_i32_0 : i32, i32
  }
  func.func @transform_5(%arg0: i32) -> (i32, i32) {
    %c0_i32 = arith.constant 0 : i32
    %c0_i32_0 = arith.constant 0 : i32
    %c0_i32_1 = arith.constant 0 : i32
    return %c0_i32, %c0_i32_0 : i32, i32
  }
}

</mosaic_0001>

<bundles_post_ra>
// kernel: _forward.10
= control target key start
LH: loop header
LB: loop body
LE: loop exit
PB: predicated region body
PF: predicated region fallthrough
CT: control target
= control target key end

     0   :  { %vm358_vm0 = vcmask 1044480   ;;  %vm359_vm1 = vcmask 1045504   ;;  %vm261_vm2 = vcmask 220160   ;;  %v1315_v1 = vmov 65535   ;;  %s1795_s1 = inlined_call_operand.vmem [shape: bf16[27,16], index: 1, kind: input, shape index: {}]   ;;  %s1796_s0 = inlined_call_operand.vmem [shape: bf16[512,27], index: 0, kind: input, shape index: {}]   ;;  %s1797_s2 = inlined_call_operand.vmem [shape: f32[1,16], index: 2, kind: input, shape index: {}]   ;;  %s1798_s3 = inlined_call_operand.vmem [shape: bf16[512,16], index: 3, kind: output, shape index: {}]  }
   0x1   :  { %v1281_v0 = vld [vmem:[%s1795_s1] sm:$0xff]   ;;  %v360_v2 = vsel %vm358_vm0, 4294967295, %v1315_v1  ;;  %v1282_v3 = vld [vmem:[%s1795_s1 + $0x8] sm:$0x3f]   ;;  %v1287_v10 = vld [vmem:[%s1796_s0 + $0x10] sm:$0xff]   ;;  %vm910_vm3 = vcmask 125952  }
   0x2   :  { %1208 = vmatprep.subr.bf16.mxu0 %v1281_v0  ;;  %1276 = vmatprep.subr.bf16.mxu1 %v1281_v0  ;;  %v361_v4 = vsel %vm359_vm1, %v360_v2, 0  ;;  %v1283_v5 = vld [vmem:[%s1796_s0] sm:$0xff]   ;;  %v1285_v8 = vld [vmem:[%s1796_s0 + $0x8] sm:$0xff]   ;;  %v1288_v11 = vld [vmem:[%s1796_s0 + $0x90] sm:$0xff]  }
   0x3   :  { %1209 = vmatpush3.bf16.msra.mxu0 %v1281_v0  ;;  %1278 = vmatpush3.bf16.msra.mxu1 %v1281_v0  ;;  %v363_v6 = vand.u32 %v1282_v3, %v361_v4  ;;  %v1284_v7 = vld [vmem:[%s1796_s0 + $0x80] sm:$0xff]   ;;  %v1286_v9 = vld [vmem:[%s1796_s0 + $0x88] sm:$0xff]   ;;  %v1289_v12 = vld [vmem:[%s1796_s0 + $0x18] sm:$0xff]  }
   0x4   :  { %1212 = vmatprep.mubr.msk.bf16.mxu0 %vm261_vm2, %v1283_v5  ;;  %1244 = vmatprep.mubr.msk.bf16.mxu1 %vm261_vm2, %v1284_v7  ;;  %v1290_v13 = vld [vmem:[%s1796_s0 + $0x98] sm:$0xff]   ;;  %v1291_v14 = vld [vmem:[%s1796_s0 + $0x20] sm:$0xff]   ;;  %v1293_v16 = vld [vmem:[%s1796_s0 + $0x28] sm:$0xff]  }
   0x5   :  { %1210 = vmatprep.subr.bf16.mxu0 %v363_v6  ;;  %1277 = vmatprep.subr.bf16.mxu1 %v363_v6  ;;  %v1292_v15 = vld [vmem:[%s1796_s0 + $0xa0] sm:$0xff]   ;;  %v1294_v17 = vld [vmem:[%s1796_s0 + $0xa8] sm:$0xff]   ;;  %v1295_v18 = vld [vmem:[%s1796_s0 + $0x30] sm:$0xff]  }
   0x6   :  { %v1296_v19 = vld [vmem:[%s1796_s0 + $0xb0] sm:$0xff]   ;;  %v1297_v20 = vld [vmem:[%s1796_s0 + $0x38] sm:$0xff]   ;;  %v1299_v22 = vld [vmem:[%s1796_s0 + $0x40] sm:$0xff]  }
   0x7   :  { %1211 = vmatpush3.bf16.msra.mxu0 %v363_v6  ;;  %1279 = vmatpush3.bf16.msra.mxu1 %v363_v6  ;;  %v1298_v21 = vld [vmem:[%s1796_s0 + $0xb8] sm:$0xff]   ;;  %v1300_v23 = vld [vmem:[%s1796_s0 + $0xc0] sm:$0xff]   ;;  %v1301_v24 = vld [vmem:[%s1796_s0 + $0x48] sm:$0xff]  }
   0x8   :  { %v1302_v25 = vld [vmem:[%s1796_s0 + $0xc8] sm:$0xff]   ;;  %v1303_v26 = vld [vmem:[%s1796_s0 + $0x50] sm:$0xff]   ;;  %v1305_v28 = vld [vmem:[%s1796_s0 + $0x58] sm:$0xff]  }
   0x9   :  { %v1304_v27 = vld [vmem:[%s1796_s0 + $0xd0] sm:$0xff]   ;;  %v1306_v29 = vld [vmem:[%s1796_s0 + $0xd8] sm:$0xff]   ;;  %v1307_v30 = vld [vmem:[%s1796_s0 + $0x60] sm:$0xff]  }
   0xa   :  { %1213 = vmatmul.mubr.msk.bf16.vlgmr.msra.gmra.mrb[0].mxu0 %vm261_vm2, %v1285_v8  ;;  %1245 = vmatmul.mubr.msk.bf16.vlgmr.msra.gmra.mrb[0].mxu1 %vm261_vm2, %v1286_v9  ;;  %v1308_v31 = vld [vmem:[%s1796_s0 + $0xe0] sm:$0xff]   ;;  %v1309_v32 = vld [vmem:[%s1796_s0 + $0x68] sm:$0xff]   ;;  %v1311_v34 = vld [vmem:[%s1796_s0 + $0x70] sm:$0xff]  }
   0xb   :  { %1216 = vmatprep.mubr.msk.bf16.mxu0 %vm261_vm2, %v1287_v10  ;;  %1248 = vmatprep.mubr.msk.bf16.mxu1 %vm261_vm2, %v1288_v11  ;;  %v1310_v33 = vld [vmem:[%s1796_s0 + $0xe8] sm:$0xff]   ;;  %v1312_v35 = vld [vmem:[%s1796_s0 + $0xf0] sm:$0xff]   ;;  %v1313_v36 = vld [vmem:[%s1796_s0 + $0x78] sm:$0xff]  }
   0xc   :  { %v1314_v37 = vld [vmem:[%s1796_s0 + $0xf8] sm:$0xff]   ;;  %v1473_v38 = vld [vmem:[%s1797_s2] ss:$0 sm:$0xff] }
  0x12   :  { %1217 = vmatmul.mubr.msk.bf16.gmra.mrb[4].mxu0 %vm261_vm2, %v1289_v12  ;;  %1249 = vmatmul.mubr.msk.bf16.gmra.mrb[4].mxu1 %vm261_vm2, %v1290_v13 }
  0x13   :  { %1220 = vmatprep.mubr.msk.bf16.mxu0 %vm261_vm2, %v1291_v14  ;;  %1252 = vmatprep.mubr.msk.bf16.mxu1 %vm261_vm2, %v1292_v15 }
  0x1a   :  { %1221 = vmatmul.mubr.msk.bf16.gmra.mrb[8].mxu0 %vm261_vm2, %v1293_v16  ;;  %1253 = vmatmul.mubr.msk.bf16.gmra.mrb[8].mxu1 %vm261_vm2, %v1294_v17 }
  0x1b   :  { %1224 = vmatprep.mubr.msk.bf16.mxu0 %vm261_vm2, %v1295_v18  ;;  %1256 = vmatprep.mubr.msk.bf16.mxu1 %vm261_vm2, %v1296_v19 }
  0x22   :  { %1225 = vmatmul.mubr.msk.bf16.gmra.mrb[12].mxu0 %vm261_vm2, %v1297_v20  ;;  %1257 = vmatmul.mubr.msk.bf16.gmra.mrb[12].mxu1 %vm261_vm2, %v1298_v21 }
  0x23   :  { %1228 = vmatprep.mubr.msk.bf16.mxu0 %vm261_vm2, %v1299_v22  ;;  %1260 = vmatprep.mubr.msk.bf16.mxu1 %vm261_vm2, %v1300_v23 }
  0x2a   :  { %1229 = vmatmul.mubr.msk.bf16.gmra.mrb[16].mxu0 %vm261_vm2, %v1301_v24  ;;  %1261 = vmatmul.mubr.msk.bf16.gmra.mrb[16].mxu1 %vm261_vm2, %v1302_v25 }
  0x2b   :  { %1232 = vmatprep.mubr.msk.bf16.mxu0 %vm261_vm2, %v1303_v26  ;;  %1264 = vmatprep.mubr.msk.bf16.mxu1 %vm261_vm2, %v1304_v27 }
  0x32   :  { %1233 = vmatmul.mubr.msk.bf16.gmra.mrb[20].mxu0 %vm261_vm2, %v1305_v28  ;;  %1265 = vmatmul.mubr.msk.bf16.gmra.mrb[20].mxu1 %vm261_vm2, %v1306_v29 }
  0x33   :  { %1236 = vmatprep.mubr.msk.bf16.mxu0 %vm261_vm2, %v1307_v30  ;;  %1268 = vmatprep.mubr.msk.bf16.mxu1 %vm261_vm2, %v1308_v31 }
  0x3a   :  { %1237 = vmatmul.mubr.msk.bf16.gmra.mrb[24].mxu0 %vm261_vm2, %v1309_v32  ;;  %1269 = vmatmul.mubr.msk.bf16.gmra.mrb[24].mxu1 %vm261_vm2, %v1310_v33 }
  0x3b   :  { %1240 = vmatprep.mubr.msk.bf16.mxu0 %vm261_vm2, %v1311_v34  ;;  %1272 = vmatprep.mubr.msk.bf16.mxu1 %vm261_vm2, %v1312_v35 }
  0x42   :  { %1241 = vmatmul.mubr.msk.bf16.gmra.mrb[28].mxu0 %vm261_vm2, %v1313_v36  ;;  %1273 = vmatmul.mubr.msk.bf16.gmra.mrb[28].mxu1 %vm261_vm2, %v1314_v37 }
  0xdd   :  { %v1214_v39 = vpop.f32.mrb[0].mxu0  ;;  %v1246_v40 = vpop.f32.mrb[0].mxu1 }
  0xde   :  { %v408_v41 = vadd.f32 %v1214_v39, %v1473_v38  ;;  %v536_v42 = vadd.f32 %v1246_v40, %v1473_v38  ;;  %v399_v43 = vpop.f32.mrb[1].mxu0  ;;  %v527_v44 = vpop.f32.mrb[1].mxu1 }
  0xdf   :  { %v400_v45 = vadd.f32 %v1473_v38, %v399_v43  ;;  %v528_v46 = vadd.f32 %v1473_v38, %v527_v44  ;;  %v1215_v47 = vpop.f32.mrb[2].mxu0  ;;  %v1247_v48 = vpop.f32.mrb[2].mxu1 }
  0xe0   :  { %v1112_v49 = vpack.c.bf16 %v408_v41, %v408_v41  ;;  %v1144_v50 = vpack.c.bf16 %v536_v42, %v536_v42  ;;  %v411_v51 = vadd.f32 %v1215_v47, %v1473_v38  ;;  %v539_v52 = vadd.f32 %v1247_v48, %v1473_v38  ;;  %v402_v53 = vpop.f32.mrb[3].mxu0  ;;  %v530_v54 = vpop.f32.mrb[3].mxu1 }
  0xe1   :  { %v1110_v55 = vpack.c.bf16 %v400_v45, %v400_v45  ;;  %v1142_v56 = vpack.c.bf16 %v528_v46, %v528_v46  ;;  %v403_v57 = vadd.f32 %v1473_v38, %v402_v53  ;;  %v531_v58 = vadd.f32 %v1473_v38, %v530_v54 }
  0xe2   :  { %913 = vst.msk [vmem:[%s1798_s3 + $0x8] sm:$0xf] %vm910_vm3, %v1112_v49  ;;  %945 = vst.msk [vmem:[%s1798_s3 + $0x88] sm:$0xf] %vm910_vm3, %v1144_v50  ;;  %v1113_v59 = vpack.c.bf16 %v411_v51, %v411_v51  ;;  %v1145_v60 = vpack.c.bf16 %v539_v52, %v539_v52 }
  0xe3   :  { %911 = vst.msk [vmem:[%s1798_s3] sm:$0xf] %vm910_vm3, %v1110_v55  ;;  %943 = vst.msk [vmem:[%s1798_s3 + $0x80] sm:$0xf] %vm910_vm3, %v1142_v56  ;;  %v1111_v61 = vpack.c.bf16 %v403_v57, %v403_v57  ;;  %v1143_v62 = vpack.c.bf16 %v531_v58, %v531_v58 }
  0xe4   :  { %914 = vst.msk [vmem:[%s1798_s3 + $0xc] sm:$0xf] %vm910_vm3, %v1113_v59  ;;  %946 = vst.msk [vmem:[%s1798_s3 + $0x8c] sm:$0xf] %vm910_vm3, %v1145_v60 }
  0xe5   :  { %912 = vst.msk [vmem:[%s1798_s3 + $0x4] sm:$0xf] %vm910_vm3, %v1111_v61  ;;  %944 = vst.msk [vmem:[%s1798_s3 + $0x84] sm:$0xf] %vm910_vm3, %v1143_v62  ;;  %v1218_v63 = vpop.f32.mrb[4].mxu0  ;;  %v1250_v0 = vpop.f32.mrb[4].mxu1 }
  0xe6   :  { %v424_v1 = vadd.f32 %v1218_v63, %v1473_v38  ;;  %v552_v2 = vadd.f32 %v1250_v0, %v1473_v38  ;;  %v415_v3 = vpop.f32.mrb[5].mxu0  ;;  %v543_v4 = vpop.f32.mrb[5].mxu1 }
  0xe7   :  { %v416_v5 = vadd.f32 %v1473_v38, %v415_v3  ;;  %v544_v6 = vadd.f32 %v1473_v38, %v543_v4  ;;  %v1219_v7 = vpop.f32.mrb[6].mxu0  ;;  %v1251_v8 = vpop.f32.mrb[6].mxu1 }
  0xe8   :  { %v1116_v9 = vpack.c.bf16 %v424_v1, %v424_v1  ;;  %v1148_v10 = vpack.c.bf16 %v552_v2, %v552_v2  ;;  %v427_v11 = vadd.f32 %v1219_v7, %v1473_v38  ;;  %v555_v12 = vadd.f32 %v1251_v8, %v1473_v38  ;;  %v418_v13 = vpop.f32.mrb[7].mxu0  ;;  %v546_v14 = vpop.f32.mrb[7].mxu1 }
  0xe9   :  { %v1114_v15 = vpack.c.bf16 %v416_v5, %v416_v5  ;;  %v1146_v16 = vpack.c.bf16 %v544_v6, %v544_v6  ;;  %v419_v17 = vadd.f32 %v1473_v38, %v418_v13  ;;  %v547_v18 = vadd.f32 %v1473_v38, %v546_v14 }
  0xea   :  { %917 = vst.msk [vmem:[%s1798_s3 + $0x18] sm:$0xf] %vm910_vm3, %v1116_v9  ;;  %949 = vst.msk [vmem:[%s1798_s3 + $0x98] sm:$0xf] %vm910_vm3, %v1148_v10  ;;  %v1117_v19 = vpack.c.bf16 %v427_v11, %v427_v11  ;;  %v1149_v20 = vpack.c.bf16 %v555_v12, %v555_v12 }
  0xeb   :  { %915 = vst.msk [vmem:[%s1798_s3 + $0x10] sm:$0xf] %vm910_vm3, %v1114_v15  ;;  %947 = vst.msk [vmem:[%s1798_s3 + $0x90] sm:$0xf] %vm910_vm3, %v1146_v16  ;;  %v1115_v21 = vpack.c.bf16 %v419_v17, %v419_v17  ;;  %v1147_v22 = vpack.c.bf16 %v547_v18, %v547_v18 }
  0xec   :  { %918 = vst.msk [vmem:[%s1798_s3 + $0x1c] sm:$0xf] %vm910_vm3, %v1117_v19  ;;  %950 = vst.msk [vmem:[%s1798_s3 + $0x9c] sm:$0xf] %vm910_vm3, %v1149_v20 }
  0xed   :  { %916 = vst.msk [vmem:[%s1798_s3 + $0x14] sm:$0xf] %vm910_vm3, %v1115_v21  ;;  %948 = vst.msk [vmem:[%s1798_s3 + $0x94] sm:$0xf] %vm910_vm3, %v1147_v22  ;;  %v1222_v23 = vpop.f32.mrb[8].mxu0  ;;  %v1254_v24 = vpop.f32.mrb[8].mxu1 }
  0xee   :  { %v440_v25 = vadd.f32 %v1222_v23, %v1473_v38  ;;  %v568_v26 = vadd.f32 %v1254_v24, %v1473_v38  ;;  %v431_v27 = vpop.f32.mrb[9].mxu0  ;;  %v559_v28 = vpop.f32.mrb[9].mxu1 }
  0xef   :  { %v432_v29 = vadd.f32 %v1473_v38, %v431_v27  ;;  %v560_v30 = vadd.f32 %v1473_v38, %v559_v28  ;;  %v1223_v31 = vpop.f32.mrb[10].mxu0  ;;  %v1255_v32 = vpop.f32.mrb[10].mxu1 }
  0xf0   :  { %v1120_v33 = vpack.c.bf16 %v440_v25, %v440_v25  ;;  %v1152_v34 = vpack.c.bf16 %v568_v26, %v568_v26  ;;  %v443_v35 = vadd.f32 %v1223_v31, %v1473_v38  ;;  %v571_v36 = vadd.f32 %v1255_v32, %v1473_v38  ;;  %v434_v37 = vpop.f32.mrb[11].mxu0  ;;  %v562_v39 = vpop.f32.mrb[11].mxu1 }
  0xf1   :  { %v1118_v40 = vpack.c.bf16 %v432_v29, %v432_v29  ;;  %v1150_v41 = vpack.c.bf16 %v560_v30, %v560_v30  ;;  %v435_v42 = vadd.f32 %v1473_v38, %v434_v37  ;;  %v563_v43 = vadd.f32 %v1473_v38, %v562_v39 }
  0xf2   :  { %921 = vst.msk [vmem:[%s1798_s3 + $0x28] sm:$0xf] %vm910_vm3, %v1120_v33  ;;  %953 = vst.msk [vmem:[%s1798_s3 + $0xa8] sm:$0xf] %vm910_vm3, %v1152_v34  ;;  %v1121_v44 = vpack.c.bf16 %v443_v35, %v443_v35  ;;  %v1153_v45 = vpack.c.bf16 %v571_v36, %v571_v36 }
  0xf3   :  { %919 = vst.msk [vmem:[%s1798_s3 + $0x20] sm:$0xf] %vm910_vm3, %v1118_v40  ;;  %951 = vst.msk [vmem:[%s1798_s3 + $0xa0] sm:$0xf] %vm910_vm3, %v1150_v41  ;;  %v1119_v46 = vpack.c.bf16 %v435_v42, %v435_v42  ;;  %v1151_v47 = vpack.c.bf16 %v563_v43, %v563_v43 }
  0xf4   :  { %922 = vst.msk [vmem:[%s1798_s3 + $0x2c] sm:$0xf] %vm910_vm3, %v1121_v44  ;;  %954 = vst.msk [vmem:[%s1798_s3 + $0xac] sm:$0xf] %vm910_vm3, %v1153_v45 }
  0xf5   :  { %920 = vst.msk [vmem:[%s1798_s3 + $0x24] sm:$0xf] %vm910_vm3, %v1119_v46  ;;  %952 = vst.msk [vmem:[%s1798_s3 + $0xa4] sm:$0xf] %vm910_vm3, %v1151_v47  ;;  %v1226_v48 = vpop.f32.mrb[12].mxu0  ;;  %v1258_v49 = vpop.f32.mrb[12].mxu1 }
  0xf6   :  { %v456_v50 = vadd.f32 %v1226_v48, %v1473_v38  ;;  %v584_v51 = vadd.f32 %v1258_v49, %v1473_v38  ;;  %v447_v52 = vpop.f32.mrb[13].mxu0  ;;  %v575_v53 = vpop.f32.mrb[13].mxu1 }
  0xf7   :  { %v448_v54 = vadd.f32 %v1473_v38, %v447_v52  ;;  %v576_v55 = vadd.f32 %v1473_v38, %v575_v53  ;;  %v1227_v56 = vpop.f32.mrb[14].mxu0  ;;  %v1259_v57 = vpop.f32.mrb[14].mxu1 }
  0xf8   :  { %v1124_v58 = vpack.c.bf16 %v456_v50, %v456_v50  ;;  %v1156_v59 = vpack.c.bf16 %v584_v51, %v584_v51  ;;  %v459_v60 = vadd.f32 %v1227_v56, %v1473_v38  ;;  %v587_v61 = vadd.f32 %v1259_v57, %v1473_v38  ;;  %v450_v62 = vpop.f32.mrb[15].mxu0  ;;  %v578_v63 = vpop.f32.mrb[15].mxu1 }
  0xf9   :  { %v1122_v0 = vpack.c.bf16 %v448_v54, %v448_v54  ;;  %v1154_v1 = vpack.c.bf16 %v576_v55, %v576_v55  ;;  %v451_v2 = vadd.f32 %v1473_v38, %v450_v62  ;;  %v579_v3 = vadd.f32 %v1473_v38, %v578_v63 }
  0xfa   :  { %925 = vst.msk [vmem:[%s1798_s3 + $0x38] sm:$0xf] %vm910_vm3, %v1124_v58  ;;  %957 = vst.msk [vmem:[%s1798_s3 + $0xb8] sm:$0xf] %vm910_vm3, %v1156_v59  ;;  %v1125_v4 = vpack.c.bf16 %v459_v60, %v459_v60  ;;  %v1157_v5 = vpack.c.bf16 %v587_v61, %v587_v61 }
  0xfb   :  { %923 = vst.msk [vmem:[%s1798_s3 + $0x30] sm:$0xf] %vm910_vm3, %v1122_v0  ;;  %955 = vst.msk [vmem:[%s1798_s3 + $0xb0] sm:$0xf] %vm910_vm3, %v1154_v1  ;;  %v1123_v6 = vpack.c.bf16 %v451_v2, %v451_v2  ;;  %v1155_v7 = vpack.c.bf16 %v579_v3, %v579_v3 }
  0xfc   :  { %926 = vst.msk [vmem:[%s1798_s3 + $0x3c] sm:$0xf] %vm910_vm3, %v1125_v4  ;;  %958 = vst.msk [vmem:[%s1798_s3 + $0xbc] sm:$0xf] %vm910_vm3, %v1157_v5 }
  0xfd   :  { %924 = vst.msk [vmem:[%s1798_s3 + $0x34] sm:$0xf] %vm910_vm3, %v1123_v6  ;;  %956 = vst.msk [vmem:[%s1798_s3 + $0xb4] sm:$0xf] %vm910_vm3, %v1155_v7  ;;  %v1230_v8 = vpop.f32.mrb[16].mxu0  ;;  %v1262_v9 = vpop.f32.mrb[16].mxu1 }
  0xfe   :  { %v472_v10 = vadd.f32 %v1230_v8, %v1473_v38  ;;  %v600_v11 = vadd.f32 %v1262_v9, %v1473_v38  ;;  %v463_v12 = vpop.f32.mrb[17].mxu0  ;;  %v591_v13 = vpop.f32.mrb[17].mxu1 }
  0xff   :  { %v464_v14 = vadd.f32 %v1473_v38, %v463_v12  ;;  %v592_v15 = vadd.f32 %v1473_v38, %v591_v13  ;;  %v1231_v16 = vpop.f32.mrb[18].mxu0  ;;  %v1263_v17 = vpop.f32.mrb[18].mxu1 }
 0x100   :  { %v1128_v18 = vpack.c.bf16 %v472_v10, %v472_v10  ;;  %v1160_v19 = vpack.c.bf16 %v600_v11, %v600_v11  ;;  %v475_v20 = vadd.f32 %v1231_v16, %v1473_v38  ;;  %v603_v21 = vadd.f32 %v1263_v17, %v1473_v38  ;;  %v466_v22 = vpop.f32.mrb[19].mxu0  ;;  %v594_v23 = vpop.f32.mrb[19].mxu1 }
 0x101   :  { %v1126_v24 = vpack.c.bf16 %v464_v14, %v464_v14  ;;  %v1158_v25 = vpack.c.bf16 %v592_v15, %v592_v15  ;;  %v467_v26 = vadd.f32 %v1473_v38, %v466_v22  ;;  %v595_v27 = vadd.f32 %v1473_v38, %v594_v23 }
 0x102   :  { %929 = vst.msk [vmem:[%s1798_s3 + $0x48] sm:$0xf] %vm910_vm3, %v1128_v18  ;;  %961 = vst.msk [vmem:[%s1798_s3 + $0xc8] sm:$0xf] %vm910_vm3, %v1160_v19  ;;  %v1129_v28 = vpack.c.bf16 %v475_v20, %v475_v20  ;;  %v1161_v29 = vpack.c.bf16 %v603_v21, %v603_v21 }
 0x103   :  { %927 = vst.msk [vmem:[%s1798_s3 + $0x40] sm:$0xf] %vm910_vm3, %v1126_v24  ;;  %959 = vst.msk [vmem:[%s1798_s3 + $0xc0] sm:$0xf] %vm910_vm3, %v1158_v25  ;;  %v1127_v30 = vpack.c.bf16 %v467_v26, %v467_v26  ;;  %v1159_v31 = vpack.c.bf16 %v595_v27, %v595_v27 }
 0x104   :  { %930 = vst.msk [vmem:[%s1798_s3 + $0x4c] sm:$0xf] %vm910_vm3, %v1129_v28  ;;  %962 = vst.msk [vmem:[%s1798_s3 + $0xcc] sm:$0xf] %vm910_vm3, %v1161_v29 }
 0x105   :  { %928 = vst.msk [vmem:[%s1798_s3 + $0x44] sm:$0xf] %vm910_vm3, %v1127_v30  ;;  %960 = vst.msk [vmem:[%s1798_s3 + $0xc4] sm:$0xf] %vm910_vm3, %v1159_v31  ;;  %v1234_v32 = vpop.f32.mrb[20].mxu0  ;;  %v1266_v33 = vpop.f32.mrb[20].mxu1 }
 0x106   :  { %v488_v34 = vadd.f32 %v1234_v32, %v1473_v38  ;;  %v616_v35 = vadd.f32 %v1266_v33, %v1473_v38  ;;  %v479_v36 = vpop.f32.mrb[21].mxu0  ;;  %v607_v37 = vpop.f32.mrb[21].mxu1 }
 0x107   :  { %v480_v39 = vadd.f32 %v1473_v38, %v479_v36  ;;  %v608_v40 = vadd.f32 %v1473_v38, %v607_v37  ;;  %v1235_v41 = vpop.f32.mrb[22].mxu0  ;;  %v1267_v42 = vpop.f32.mrb[22].mxu1 }
 0x108   :  { %v1132_v43 = vpack.c.bf16 %v488_v34, %v488_v34  ;;  %v1164_v44 = vpack.c.bf16 %v616_v35, %v616_v35  ;;  %v491_v45 = vadd.f32 %v1235_v41, %v1473_v38  ;;  %v619_v46 = vadd.f32 %v1267_v42, %v1473_v38  ;;  %v482_v47 = vpop.f32.mrb[23].mxu0  ;;  %v610_v48 = vpop.f32.mrb[23].mxu1 }
 0x109   :  { %v1130_v49 = vpack.c.bf16 %v480_v39, %v480_v39  ;;  %v1162_v50 = vpack.c.bf16 %v608_v40, %v608_v40  ;;  %v483_v51 = vadd.f32 %v1473_v38, %v482_v47  ;;  %v611_v52 = vadd.f32 %v1473_v38, %v610_v48 }
 0x10a   :  { %933 = vst.msk [vmem:[%s1798_s3 + $0x58] sm:$0xf] %vm910_vm3, %v1132_v43  ;;  %965 = vst.msk [vmem:[%s1798_s3 + $0xd8] sm:$0xf] %vm910_vm3, %v1164_v44  ;;  %v1133_v53 = vpack.c.bf16 %v491_v45, %v491_v45  ;;  %v1165_v54 = vpack.c.bf16 %v619_v46, %v619_v46 }
 0x10b   :  { %931 = vst.msk [vmem:[%s1798_s3 + $0x50] sm:$0xf] %vm910_vm3, %v1130_v49  ;;  %963 = vst.msk [vmem:[%s1798_s3 + $0xd0] sm:$0xf] %vm910_vm3, %v1162_v50  ;;  %v1131_v55 = vpack.c.bf16 %v483_v51, %v483_v51  ;;  %v1163_v56 = vpack.c.bf16 %v611_v52, %v611_v52 }
 0x10c   :  { %934 = vst.msk [vmem:[%s1798_s3 + $0x5c] sm:$0xf] %vm910_vm3, %v1133_v53  ;;  %966 = vst.msk [vmem:[%s1798_s3 + $0xdc] sm:$0xf] %vm910_vm3, %v1165_v54 }
 0x10d   :  { %932 = vst.msk [vmem:[%s1798_s3 + $0x54] sm:$0xf] %vm910_vm3, %v1131_v55  ;;  %964 = vst.msk [vmem:[%s1798_s3 + $0xd4] sm:$0xf] %vm910_vm3, %v1163_v56  ;;  %v1238_v57 = vpop.f32.mrb[24].mxu0  ;;  %v1270_v58 = vpop.f32.mrb[24].mxu1 }
 0x10e   :  { %v504_v59 = vadd.f32 %v1238_v57, %v1473_v38  ;;  %v632_v60 = vadd.f32 %v1270_v58, %v1473_v38  ;;  %v495_v61 = vpop.f32.mrb[25].mxu0  ;;  %v623_v62 = vpop.f32.mrb[25].mxu1 }
 0x10f   :  { %v496_v63 = vadd.f32 %v1473_v38, %v495_v61  ;;  %v624_v0 = vadd.f32 %v1473_v38, %v623_v62  ;;  %v1239_v1 = vpop.f32.mrb[26].mxu0  ;;  %v1271_v2 = vpop.f32.mrb[26].mxu1 }
 0x110   :  { %v1136_v3 = vpack.c.bf16 %v504_v59, %v504_v59  ;;  %v1168_v4 = vpack.c.bf16 %v632_v60, %v632_v60  ;;  %v507_v5 = vadd.f32 %v1239_v1, %v1473_v38  ;;  %v635_v6 = vadd.f32 %v1271_v2, %v1473_v38  ;;  %v498_v7 = vpop.f32.mrb[27].mxu0  ;;  %v626_v8 = vpop.f32.mrb[27].mxu1 }
 0x111   :  { %v1134_v9 = vpack.c.bf16 %v496_v63, %v496_v63  ;;  %v1166_v10 = vpack.c.bf16 %v624_v0, %v624_v0  ;;  %v499_v11 = vadd.f32 %v1473_v38, %v498_v7  ;;  %v627_v12 = vadd.f32 %v1473_v38, %v626_v8 }
 0x112   :  { %937 = vst.msk [vmem:[%s1798_s3 + $0x68] sm:$0xf] %vm910_vm3, %v1136_v3  ;;  %969 = vst.msk [vmem:[%s1798_s3 + $0xe8] sm:$0xf] %vm910_vm3, %v1168_v4  ;;  %v1137_v13 = vpack.c.bf16 %v507_v5, %v507_v5  ;;  %v1169_v14 = vpack.c.bf16 %v635_v6, %v635_v6 }
 0x113   :  { %935 = vst.msk [vmem:[%s1798_s3 + $0x60] sm:$0xf] %vm910_vm3, %v1134_v9  ;;  %967 = vst.msk [vmem:[%s1798_s3 + $0xe0] sm:$0xf] %vm910_vm3, %v1166_v10  ;;  %v1135_v15 = vpack.c.bf16 %v499_v11, %v499_v11  ;;  %v1167_v16 = vpack.c.bf16 %v627_v12, %v627_v12 }
 0x114   :  { %938 = vst.msk [vmem:[%s1798_s3 + $0x6c] sm:$0xf] %vm910_vm3, %v1137_v13  ;;  %970 = vst.msk [vmem:[%s1798_s3 + $0xec] sm:$0xf] %vm910_vm3, %v1169_v14 }
 0x115   :  { %936 = vst.msk [vmem:[%s1798_s3 + $0x64] sm:$0xf] %vm910_vm3, %v1135_v15  ;;  %968 = vst.msk [vmem:[%s1798_s3 + $0xe4] sm:$0xf] %vm910_vm3, %v1167_v16  ;;  %v1242_v17 = vpop.f32.mrb[28].mxu0  ;;  %v1274_v18 = vpop.f32.mrb[28].mxu1 }
 0x116   :  { %v520_v19 = vadd.f32 %v1242_v17, %v1473_v38  ;;  %v648_v20 = vadd.f32 %v1274_v18, %v1473_v38  ;;  %v511_v21 = vpop.f32.mrb[29].mxu0  ;;  %v639_v22 = vpop.f32.mrb[29].mxu1 }
 0x117   :  { %v512_v23 = vadd.f32 %v1473_v38, %v511_v21  ;;  %v640_v24 = vadd.f32 %v1473_v38, %v639_v22  ;;  %v1243_v25 = vpop.f32.mrb[30].mxu0  ;;  %v1275_v26 = vpop.f32.mrb[30].mxu1 }
 0x118   :  { %v1140_v27 = vpack.c.bf16 %v520_v19, %v520_v19  ;;  %v1172_v28 = vpack.c.bf16 %v648_v20, %v648_v20  ;;  %v523_v29 = vadd.f32 %v1243_v25, %v1473_v38  ;;  %v651_v30 = vadd.f32 %v1275_v26, %v1473_v38  ;;  %v514_v31 = vpop.f32.mrb[31].mxu0  ;;  %v642_v32 = vpop.f32.mrb[31].mxu1 }
 0x119   :  { %v1138_v33 = vpack.c.bf16 %v512_v23, %v512_v23  ;;  %v1170_v34 = vpack.c.bf16 %v640_v24, %v640_v24  ;;  %v515_v35 = vadd.f32 %v1473_v38, %v514_v31  ;;  %v643_v36 = vadd.f32 %v1473_v38, %v642_v32 }
 0x11a   :  { %941 = vst.msk [vmem:[%s1798_s3 + $0x78] sm:$0xf] %vm910_vm3, %v1140_v27  ;;  %973 = vst.msk [vmem:[%s1798_s3 + $0xf8] sm:$0xf] %vm910_vm3, %v1172_v28  ;;  %v1141_v37 = vpack.c.bf16 %v523_v29, %v523_v29  ;;  %v1173_v39 = vpack.c.bf16 %v651_v30, %v651_v30 }
 0x11b   :  { %939 = vst.msk [vmem:[%s1798_s3 + $0x70] sm:$0xf] %vm910_vm3, %v1138_v33  ;;  %971 = vst.msk [vmem:[%s1798_s3 + $0xf0] sm:$0xf] %vm910_vm3, %v1170_v34  ;;  %v1139_v38 = vpack.c.bf16 %v515_v35, %v515_v35  ;;  %v1171_v40 = vpack.c.bf16 %v643_v36, %v643_v36 }
 0x11c   :  { %942 = vst.msk [vmem:[%s1798_s3 + $0x7c] sm:$0xf] %vm910_vm3, %v1141_v37  ;;  %974 = vst.msk [vmem:[%s1798_s3 + $0xfc] sm:$0xf] %vm910_vm3, %v1173_v39 }
 0x11d   :  { %940 = vst.msk [vmem:[%s1798_s3 + $0x74] sm:$0xf] %vm910_vm3, %v1139_v38  ;;  %972 = vst.msk [vmem:[%s1798_s3 + $0xf4] sm:$0xf] %vm910_vm3, %v1171_v40 }

// kernel: _forward.11
= control target key start
LH: loop header
LB: loop body
LE: loop exit
PB: predicated region body
PF: predicated region fallthrough
CT: control target
= control target key end

     0   :  { %v1718_v0 = vmov 0   ;;  %vm442_vm0 = vcmask 130048   ;;  %vm1290_vm1 = vcmask 125952   ;;  %s2389_s1 = inlined_call_operand.vmem [shape: bf16[144,16], index: 1, kind: input, shape index: {}]   ;;  %s2390_s0 = inlined_call_operand.vmem [shape: bf16[512,144], index: 0, kind: input, shape index: {}]   ;;  %s2391_s2 = inlined_call_operand.vmem [shape: f32[1,16], index: 2, kind: input, shape index: {}]   ;;  %s2392_s3 = inlined_call_operand.vmem [shape: f32[1,16], index: 3, kind: input, shape index: {}]   ;;  %s2393_s4 = inlined_call_operand.vmem [shape: bf16[512,16], index: 4, kind: output, shape index: {}]  }
   0x1   :  { %539 = vmatprep.subr.bf16.mxu0 %v1718_v0  ;;  %1594 = vmatprep.subr.bf16.mxu1 %v1718_v0  ;;  %v1613_v1 = vld [vmem:[%s2389_s1] sm:$0xff]   ;;  %v1614_v2 = vld [vmem:[%s2389_s1 + $0x8] sm:$0xff]   ;;  %v1615_v3 = vld [vmem:[%s2389_s1 + $0x10] sm:$0xff]  }
   0x2   :  { %540 = vmatpush1.bf16.msra.mxu0 %v1613_v1  ;;  %1603 = vmatpush1.bf16.msra.mxu1 %v1613_v1  ;;  %v1616_v4 = vld [vmem:[%s2389_s1 + $0x18] sm:$0xff]   ;;  %v1624_v5 = vld [vmem:[%s2390_s0 + $0x4] ss:$8 sps:$4 sm:$0xff]   ;;  %v1619_v9 = vld [vmem:[%s2389_s1 + $0x30] sm:$0xff]  }
   0x3   :  { %541 = vmatprep.subr.bf16.mxu0 %v1718_v0  ;;  %1595 = vmatprep.subr.bf16.mxu1 %v1718_v0  ;;  %v1627_v6 = vld [vmem:[%s2390_s0 + $0x104] ss:$8 sps:$4 sm:$0xff]   ;;  %v1620_v10 = vld [vmem:[%s2389_s1 + $0x38] sm:$0xff]   ;;  %v1622_v12 = vld [vmem:[%s2390_s0] ss:$8 sps:$4 sm:$0xff]  }
   0x4   :  { %1432 = vmatprep.mubr.msk.bf16.mxu0 %vm442_vm0, %v1624_v5  ;;  %1448 = vmatprep.mubr.msk.bf16.mxu1 %vm442_vm0, %v1627_v6  ;;  %v1617_v7 = vld [vmem:[%s2389_s1 + $0x20] sm:$0xff]   ;;  %v1618_v8 = vld [vmem:[%s2389_s1 + $0x28] sm:$0xff]   ;;  %v1628_v14 = vld [vmem:[%s2390_s0 + $0x14] ss:$8 sps:$4 sm:$0xff]  }
   0x5   :  { %v1621_v11 = vld [vmem:[%s2389_s1 + $0x40] sm:$0xff]   ;;  %v1630_v15 = vld [vmem:[%s2390_s0 + $0x114] ss:$8 sps:$4 sm:$0xff]   ;;  %v1632_v16 = vld [vmem:[%s2390_s0 + $0x10] ss:$8 sps:$4 sm:$0xff]  }
   0x6   :  { %542 = vmatpush1.bf16.msra.mxu0 %v1614_v2  ;;  %1604 = vmatpush1.bf16.msra.mxu1 %v1614_v2  ;;  %v1625_v13 = vld [vmem:[%s2390_s0 + $0x100] ss:$8 sps:$4 sm:$0xff]   ;;  %v1633_v17 = vld [vmem:[%s2390_s0 + $0x110] ss:$8 sps:$4 sm:$0xff]   ;;  %v1634_v18 = vld [vmem:[%s2390_s0 + $0x24] ss:$8 sps:$4 sm:$0xff]  }
   0x7   :  { %543 = vmatprep.subr.bf16.mxu0 %v1718_v0  ;;  %1596 = vmatprep.subr.bf16.mxu1 %v1718_v0  ;;  %v1636_v19 = vld [vmem:[%s2390_s0 + $0x124] ss:$8 sps:$4 sm:$0xff]   ;;  %v1638_v20 = vld [vmem:[%s2390_s0 + $0x20] ss:$8 sps:$4 sm:$0xff]   ;;  %v1640_v22 = vld [vmem:[%s2390_s0 + $0x34] ss:$8 sps:$4 sm:$0xff]  }
   0x8   :  { %v1639_v21 = vld [vmem:[%s2390_s0 + $0x120] ss:$8 sps:$4 sm:$0xff]   ;;  %v1642_v23 = vld [vmem:[%s2390_s0 + $0x134] ss:$8 sps:$4 sm:$0xff]   ;;  %v1644_v24 = vld [vmem:[%s2390_s0 + $0x30] ss:$8 sps:$4 sm:$0xff]  }
   0x9   :  { %v1645_v25 = vld [vmem:[%s2390_s0 + $0x130] ss:$8 sps:$4 sm:$0xff]   ;;  %v1646_v26 = vld [vmem:[%s2390_s0 + $0x44] ss:$8 sps:$4 sm:$0xff]   ;;  %v1650_v28 = vld [vmem:[%s2390_s0 + $0x40] ss:$8 sps:$4 sm:$0xff]  }
   0xa   :  { %544 = vmatpush1.bf16.msra.mxu0 %v1615_v3  ;;  %1605 = vmatpush1.bf16.msra.mxu1 %v1615_v3  ;;  %v1648_v27 = vld [vmem:[%s2390_s0 + $0x144] ss:$8 sps:$4 sm:$0xff]   ;;  %v1651_v29 = vld [vmem:[%s2390_s0 + $0x140] ss:$8 sps:$4 sm:$0xff]   ;;  %v1652_v30 = vld [vmem:[%s2390_s0 + $0x54] ss:$8 sps:$4 sm:$0xff]  }
   0xb   :  { %545 = vmatprep.subr.bf16.mxu0 %v1718_v0  ;;  %1597 = vmatprep.subr.bf16.mxu1 %v1718_v0  ;;  %v1654_v31 = vld [vmem:[%s2390_s0 + $0x154] ss:$8 sps:$4 sm:$0xff]   ;;  %v1656_v32 = vld [vmem:[%s2390_s0 + $0x50] ss:$8 sps:$4 sm:$0xff]   ;;  %v1658_v34 = vld [vmem:[%s2390_s0 + $0x64] ss:$8 sps:$4 sm:$0xff]  }
   0xc   :  { %v1657_v33 = vld [vmem:[%s2390_s0 + $0x150] ss:$8 sps:$4 sm:$0xff]   ;;  %v1660_v35 = vld [vmem:[%s2390_s0 + $0x164] ss:$8 sps:$4 sm:$0xff]   ;;  %v1662_v36 = vld [vmem:[%s2390_s0 + $0x60] ss:$8 sps:$4 sm:$0xff]  }
   0xd   :  { %v1663_v37 = vld [vmem:[%s2390_s0 + $0x160] ss:$8 sps:$4 sm:$0xff]   ;;  %v1664_v38 = vld [vmem:[%s2390_s0 + $0x74] ss:$8 sps:$4 sm:$0xff]   ;;  %v1668_v40 = vld [vmem:[%s2390_s0 + $0x70] ss:$8 sps:$4 sm:$0xff]  }
   0xe   :  { %546 = vmatpush1.bf16.msra.mxu0 %v1616_v4  ;;  %1606 = vmatpush1.bf16.msra.mxu1 %v1616_v4  ;;  %v1666_v39 = vld [vmem:[%s2390_s0 + $0x174] ss:$8 sps:$4 sm:$0xff]   ;;  %v1669_v41 = vld [vmem:[%s2390_s0 + $0x170] ss:$8 sps:$4 sm:$0xff]   ;;  %v1670_v42 = vld [vmem:[%s2390_s0 + $0x84] ss:$8 sps:$4 sm:$0xff]  }
   0xf   :  { %547 = vmatprep.subr.bf16.mxu0 %v1718_v0  ;;  %1598 = vmatprep.subr.bf16.mxu1 %v1718_v0  ;;  %v1672_v43 = vld [vmem:[%s2390_s0 + $0x184] ss:$8 sps:$4 sm:$0xff]   ;;  %v1674_v44 = vld [vmem:[%s2390_s0 + $0x80] ss:$8 sps:$4 sm:$0xff]   ;;  %v1676_v46 = vld [vmem:[%s2390_s0 + $0x94] ss:$8 sps:$4 sm:$0xff]  }
  0x10   :  { %v1675_v45 = vld [vmem:[%s2390_s0 + $0x180] ss:$8 sps:$4 sm:$0xff]   ;;  %v1678_v47 = vld [vmem:[%s2390_s0 + $0x194] ss:$8 sps:$4 sm:$0xff]   ;;  %v1680_v48 = vld [vmem:[%s2390_s0 + $0x90] ss:$8 sps:$4 sm:$0xff]  }
  0x11   :  { %v1681_v49 = vld [vmem:[%s2390_s0 + $0x190] ss:$8 sps:$4 sm:$0xff]   ;;  %v1682_v50 = vld [vmem:[%s2390_s0 + $0xa4] ss:$8 sps:$4 sm:$0xff]   ;;  %v1686_v52 = vld [vmem:[%s2390_s0 + $0xa0] ss:$8 sps:$4 sm:$0xff]  }
  0x12   :  { %548 = vmatpush1.bf16.msra.mxu0 %v1617_v7  ;;  %1607 = vmatpush1.bf16.msra.mxu1 %v1617_v7  ;;  %v1684_v51 = vld [vmem:[%s2390_s0 + $0x1a4] ss:$8 sps:$4 sm:$0xff]   ;;  %v1687_v53 = vld [vmem:[%s2390_s0 + $0x1a0] ss:$8 sps:$4 sm:$0xff]   ;;  %v1688_v54 = vld [vmem:[%s2390_s0 + $0xb4] ss:$8 sps:$4 sm:$0xff]  }
  0x13   :  { %549 = vmatprep.subr.bf16.mxu0 %v1718_v0  ;;  %1599 = vmatprep.subr.bf16.mxu1 %v1718_v0  ;;  %v1690_v55 = vld [vmem:[%s2390_s0 + $0x1b4] ss:$8 sps:$4 sm:$0xff]   ;;  %v1692_v56 = vld [vmem:[%s2390_s0 + $0xb0] ss:$8 sps:$4 sm:$0xff]   ;;  %v1694_v58 = vld [vmem:[%s2390_s0 + $0xc4] ss:$8 sps:$4 sm:$0xff]  }
  0x14   :  { %v1693_v57 = vld [vmem:[%s2390_s0 + $0x1b0] ss:$8 sps:$4 sm:$0xff]   ;;  %v1696_v59 = vld [vmem:[%s2390_s0 + $0x1c4] ss:$8 sps:$4 sm:$0xff]   ;;  %v1698_v60 = vld [vmem:[%s2390_s0 + $0xc0] ss:$8 sps:$4 sm:$0xff]  }
  0x15   :  { %v1699_v61 = vld [vmem:[%s2390_s0 + $0x1c0] ss:$8 sps:$4 sm:$0xff]   ;;  %v1700_v62 = vld [vmem:[%s2390_s0 + $0xd4] ss:$8 sps:$4 sm:$0xff]   ;;  %v1705_v1 = vld [vmem:[%s2390_s0 + $0x1d0] ss:$8 sps:$4 sm:$0xff]  }
  0x16   :  { %550 = vmatpush1.bf16.msra.mxu0 %v1618_v8  ;;  %1608 = vmatpush1.bf16.msra.mxu1 %v1618_v8  ;;  %v1702_v63 = vld [vmem:[%s2390_s0 + $0x1d4] ss:$8 sps:$4 sm:$0xff]   ;;  %v1706_v2 = vld [vmem:[%s2390_s0 + $0xe4] ss:$8 sps:$4 sm:$0xff]   ;;  %v1710_v4 = vld [vmem:[%s2390_s0 + $0xe0] ss:$8 sps:$4 sm:$0xff]  }
  0x17   :  { %551 = vmatprep.subr.bf16.mxu0 %v1718_v0  ;;  %1600 = vmatprep.subr.bf16.mxu1 %v1718_v0  ;;  %v1708_v3 = vld [vmem:[%s2390_s0 + $0x1e4] ss:$8 sps:$4 sm:$0xff]   ;;  %v1711_v5 = vld [vmem:[%s2390_s0 + $0x1e0] ss:$8 sps:$4 sm:$0xff]   ;;  %v1712_v6 = vld [vmem:[%s2390_s0 + $0xf4] ss:$8 sps:$4 sm:$0xff]  }
  0x18   :  { %v1714_v7 = vld [vmem:[%s2390_s0 + $0x1f4] ss:$8 sps:$4 sm:$0xff]   ;;  %v1716_v8 = vld [vmem:[%s2390_s0 + $0xf0] ss:$8 sps:$4 sm:$0xff]  }
  0x1a   :  { %552 = vmatpush1.bf16.msra.mxu0 %v1619_v9  ;;  %1609 = vmatpush1.bf16.msra.mxu1 %v1619_v9  ;;  %v1717_v9 = vld [vmem:[%s2390_s0 + $0x1f0] ss:$8 sps:$4 sm:$0xff]  }
  0x1b   :  { %553 = vmatprep.subr.bf16.mxu0 %v1718_v0  ;;  %1601 = vmatprep.subr.bf16.mxu1 %v1718_v0 }
  0x1e   :  { %554 = vmatpush1.bf16.msra.mxu0 %v1620_v10  ;;  %1610 = vmatpush1.bf16.msra.mxu1 %v1620_v10  ;;  %v1998_v10 = vld [vmem:[%s2391_s2] ss:$0 sm:$0xff] }
  0x1f   :  { %555 = vmatprep.subr.bf16.mxu0 %v1718_v0  ;;  %1602 = vmatprep.subr.bf16.mxu1 %v1718_v0  ;;  %v1704_v0 = vld [vmem:[%s2390_s0 + $0xd0] ss:$8 sps:$4 sm:$0xff]  }
  0x22   :  { %556 = vmatpush1.bf16.msra.mxu0 %v1621_v11  ;;  %1611 = vmatpush1.bf16.msra.mxu1 %v1621_v11 }
  0x25   :  { %572 = vmatmul.mubr.bf16.vlgmr.msra.gmra.mrb[0].mxu0 %v1622_v12  ;;  %700 = vmatmul.mubr.bf16.vlgmr.msra.gmra.mrb[0].mxu1 %v1625_v13  ;;  %v2003_v12 = vld [vmem:[%s2392_s3] ss:$0 sm:$0xff] }
  0x26   :  { %1433 = vmatprep.mubr.msk.bf16.mxu0 %vm442_vm0, %v1628_v14  ;;  %1449 = vmatprep.mubr.msk.bf16.mxu1 %vm442_vm0, %v1630_v15 }
  0x2d   :  { %580 = vmatmul.mubr.bf16.gmra.mrb[4].mxu0 %v1632_v16  ;;  %708 = vmatmul.mubr.bf16.gmra.mrb[4].mxu1 %v1633_v17 }
  0x2e   :  { %1434 = vmatprep.mubr.msk.bf16.mxu0 %vm442_vm0, %v1634_v18  ;;  %1450 = vmatprep.mubr.msk.bf16.mxu1 %vm442_vm0, %v1636_v19 }
  0x35   :  { %588 = vmatmul.mubr.bf16.gmra.mrb[8].mxu0 %v1638_v20  ;;  %716 = vmatmul.mubr.bf16.gmra.mrb[8].mxu1 %v1639_v21 }
  0x36   :  { %1435 = vmatprep.mubr.msk.bf16.mxu0 %vm442_vm0, %v1640_v22  ;;  %1451 = vmatprep.mubr.msk.bf16.mxu1 %vm442_vm0, %v1642_v23 }
  0x3d   :  { %596 = vmatmul.mubr.bf16.gmra.mrb[12].mxu0 %v1644_v24  ;;  %724 = vmatmul.mubr.bf16.gmra.mrb[12].mxu1 %v1645_v25 }
  0x3e   :  { %1436 = vmatprep.mubr.msk.bf16.mxu0 %vm442_vm0, %v1646_v26  ;;  %1452 = vmatprep.mubr.msk.bf16.mxu1 %vm442_vm0, %v1648_v27 }
  0x45   :  { %604 = vmatmul.mubr.bf16.gmra.mrb[16].mxu0 %v1650_v28  ;;  %732 = vmatmul.mubr.bf16.gmra.mrb[16].mxu1 %v1651_v29 }
  0x46   :  { %1437 = vmatprep.mubr.msk.bf16.mxu0 %vm442_vm0, %v1652_v30  ;;  %1453 = vmatprep.mubr.msk.bf16.mxu1 %vm442_vm0, %v1654_v31 }
  0x4d   :  { %612 = vmatmul.mubr.bf16.gmra.mrb[20].mxu0 %v1656_v32  ;;  %740 = vmatmul.mubr.bf16.gmra.mrb[20].mxu1 %v1657_v33 }
  0x4e   :  { %1438 = vmatprep.mubr.msk.bf16.mxu0 %vm442_vm0, %v1658_v34  ;;  %1454 = vmatprep.mubr.msk.bf16.mxu1 %vm442_vm0, %v1660_v35 }
  0x55   :  { %620 = vmatmul.mubr.bf16.gmra.mrb[24].mxu0 %v1662_v36  ;;  %748 = vmatmul.mubr.bf16.gmra.mrb[24].mxu1 %v1663_v37 }
  0x56   :  { %1439 = vmatprep.mubr.msk.bf16.mxu0 %vm442_vm0, %v1664_v38  ;;  %1455 = vmatprep.mubr.msk.bf16.mxu1 %vm442_vm0, %v1666_v39 }
  0x5d   :  { %628 = vmatmul.mubr.bf16.gmra.mrb[28].mxu0 %v1668_v40  ;;  %756 = vmatmul.mubr.bf16.gmra.mrb[28].mxu1 %v1669_v41 }
  0x5e   :  { %1440 = vmatprep.mubr.msk.bf16.mxu0 %vm442_vm0, %v1670_v42  ;;  %1456 = vmatprep.mubr.msk.bf16.mxu1 %vm442_vm0, %v1672_v43 }
  0x65   :  { %636 = vmatmul.mubr.bf16.gmra.mrb[32].mxu0 %v1674_v44  ;;  %764 = vmatmul.mubr.bf16.gmra.mrb[32].mxu1 %v1675_v45 }
  0x66   :  { %1441 = vmatprep.mubr.msk.bf16.mxu0 %vm442_vm0, %v1676_v46  ;;  %1457 = vmatprep.mubr.msk.bf16.mxu1 %vm442_vm0, %v1678_v47 }
  0x6d   :  { %644 = vmatmul.mubr.bf16.gmra.mrb[36].mxu0 %v1680_v48  ;;  %772 = vmatmul.mubr.bf16.gmra.mrb[36].mxu1 %v1681_v49 }
  0x6e   :  { %1442 = vmatprep.mubr.msk.bf16.mxu0 %vm442_vm0, %v1682_v50  ;;  %1458 = vmatprep.mubr.msk.bf16.mxu1 %vm442_vm0, %v1684_v51 }
  0x75   :  { %652 = vmatmul.mubr.bf16.gmra.mrb[40].mxu0 %v1686_v52  ;;  %780 = vmatmul.mubr.bf16.gmra.mrb[40].mxu1 %v1687_v53 }
  0x76   :  { %1443 = vmatprep.mubr.msk.bf16.mxu0 %vm442_vm0, %v1688_v54  ;;  %1459 = vmatprep.mubr.msk.bf16.mxu1 %vm442_vm0, %v1690_v55 }
  0x7d   :  { %660 = vmatmul.mubr.bf16.gmra.mrb[44].mxu0 %v1692_v56  ;;  %788 = vmatmul.mubr.bf16.gmra.mrb[44].mxu1 %v1693_v57 }
  0x7e   :  { %1444 = vmatprep.mubr.msk.bf16.mxu0 %vm442_vm0, %v1694_v58  ;;  %1460 = vmatprep.mubr.msk.bf16.mxu1 %vm442_vm0, %v1696_v59 }
  0x85   :  { %668 = vmatmul.mubr.bf16.gmra.mrb[48].mxu0 %v1698_v60  ;;  %796 = vmatmul.mubr.bf16.gmra.mrb[48].mxu1 %v1699_v61 }
  0x86   :  { %1445 = vmatprep.mubr.msk.bf16.mxu0 %vm442_vm0, %v1700_v62  ;;  %1461 = vmatprep.mubr.msk.bf16.mxu1 %vm442_vm0, %v1702_v63 }
  0x8d   :  { %676 = vmatmul.mubr.bf16.gmra.mrb[52].mxu0 %v1704_v0  ;;  %804 = vmatmul.mubr.bf16.gmra.mrb[52].mxu1 %v1705_v1 }
  0x8e   :  { %1446 = vmatprep.mubr.msk.bf16.mxu0 %vm442_vm0, %v1706_v2  ;;  %1462 = vmatprep.mubr.msk.bf16.mxu1 %vm442_vm0, %v1708_v3 }
  0x95   :  { %684 = vmatmul.mubr.bf16.gmra.mrb[56].mxu0 %v1710_v4  ;;  %812 = vmatmul.mubr.bf16.gmra.mrb[56].mxu1 %v1711_v5 }
  0x96   :  { %1447 = vmatprep.mubr.msk.bf16.mxu0 %vm442_vm0, %v1712_v6  ;;  %1463 = vmatprep.mubr.msk.bf16.mxu1 %vm442_vm0, %v1714_v7 }
  0x9d   :  { %692 = vmatmul.mubr.bf16.gmra.mrb[60].mxu0 %v1716_v8  ;;  %820 = vmatmul.mubr.bf16.gmra.mrb[60].mxu1 %v1717_v9 }
  0xf8   :  { %v573_v11 = vpop.f32.mrb[0].mxu0  ;;  %v701_v13 = vpop.f32.mrb[0].mxu1 }
  0xf9   :  { %v835_v14 = vmul.f32 %v1998_v10, %v573_v11  ;;  %v867_v15 = vmul.f32 %v1998_v10, %v701_v13  ;;  %v575_v16 = vpop.f32.mrb[1].mxu0  ;;  %v703_v17 = vpop.f32.mrb[1].mxu1 }
  0xfa   :  { %v576_v18 = vpop.f32.mrb[2].mxu0  ;;  %v704_v19 = vpop.f32.mrb[2].mxu1 }
  0xfb   :  { %v906_v20 = vadd.f32 %v2003_v12, %v835_v14  ;;  %v938_v21 = vadd.f32 %v2003_v12, %v867_v15  ;;  %v836_v22 = vmul.f32 %v1998_v10, %v576_v18  ;;  %v868_v23 = vmul.f32 %v1998_v10, %v704_v19  ;;  %v578_v24 = vpop.f32.mrb[3].mxu0  ;;  %v706_v25 = vpop.f32.mrb[3].mxu1 }
  0xfd   :  { %v970_v26 = vmax.f32 %v906_v20, 0.0  ;;  %v1002_v27 = vmax.f32 %v938_v21, 0.0  ;;  %v907_v28 = vadd.f32 %v2003_v12, %v836_v22  ;;  %v939_v29 = vadd.f32 %v2003_v12, %v868_v23 }
  0xff   :  { %v1530_v30 = vpack.c.bf16 %v970_v26, %v970_v26  ;;  %v1562_v31 = vpack.c.bf16 %v1002_v27, %v1002_v27  ;;  %v971_v32 = vmax.f32 %v907_v28, 0.0  ;;  %v1003_v33 = vmax.f32 %v939_v29, 0.0 }
 0x100   :  { %v581_v34 = vpop.f32.mrb[4].mxu0  ;;  %v709_v35 = vpop.f32.mrb[4].mxu1 }
 0x101   :  { %1291 = vst.msk [vmem:[%s2393_s4] sm:$0xf] %vm1290_vm1, %v1530_v30  ;;  %1323 = vst.msk [vmem:[%s2393_s4 + $0x80] sm:$0xf] %vm1290_vm1, %v1562_v31  ;;  %v1531_v36 = vpack.c.bf16 %v971_v32, %v971_v32  ;;  %v1563_v37 = vpack.c.bf16 %v1003_v33, %v1003_v33  ;;  %v837_v38 = vmul.f32 %v1998_v10, %v581_v34  ;;  %v583_v40 = vpop.f32.mrb[5].mxu0  ;;  %v711_v41 = vpop.f32.mrb[5].mxu1 }
 0x102   :  { %v869_v39 = vmul.f32 %v1998_v10, %v709_v35  ;;  %v584_v42 = vpop.f32.mrb[6].mxu0  ;;  %v712_v43 = vpop.f32.mrb[6].mxu1 }
 0x103   :  { %1292 = vst.msk [vmem:[%s2393_s4 + $0x4] sm:$0xf] %vm1290_vm1, %v1531_v36  ;;  %1324 = vst.msk [vmem:[%s2393_s4 + $0x84] sm:$0xf] %vm1290_vm1, %v1563_v37  ;;  %v908_v44 = vadd.f32 %v2003_v12, %v837_v38  ;;  %v838_v46 = vmul.f32 %v1998_v10, %v584_v42  ;;  %v870_v47 = vmul.f32 %v1998_v10, %v712_v43  ;;  %v586_v48 = vpop.f32.mrb[7].mxu0  ;;  %v714_v49 = vpop.f32.mrb[7].mxu1 }
 0x104   :  { %v940_v45 = vadd.f32 %v2003_v12, %v869_v39 }
 0x105   :  { %v972_v50 = vmax.f32 %v908_v44, 0.0  ;;  %v909_v52 = vadd.f32 %v2003_v12, %v838_v46  ;;  %v941_v53 = vadd.f32 %v2003_v12, %v870_v47 }
 0x106   :  { %v1004_v51 = vmax.f32 %v940_v45, 0.0 }
 0x107   :  { %v1532_v54 = vpack.c.bf16 %v972_v50, %v972_v50  ;;  %v973_v56 = vmax.f32 %v909_v52, 0.0  ;;  %v1005_v57 = vmax.f32 %v941_v53, 0.0 }
 0x108   :  { %v1564_v55 = vpack.c.bf16 %v1004_v51, %v1004_v51  ;;  %v589_v58 = vpop.f32.mrb[8].mxu0  ;;  %v717_v59 = vpop.f32.mrb[8].mxu1 }
 0x109   :  { %1293 = vst.msk [vmem:[%s2393_s4 + $0x8] sm:$0xf] %vm1290_vm1, %v1532_v54  ;;  %v1533_v60 = vpack.c.bf16 %v973_v56, %v973_v56  ;;  %v1565_v61 = vpack.c.bf16 %v1005_v57, %v1005_v57  ;;  %v839_v62 = vmul.f32 %v1998_v10, %v589_v58  ;;  %v871_v63 = vmul.f32 %v1998_v10, %v717_v59  ;;  %v591_v0 = vpop.f32.mrb[9].mxu0  ;;  %v719_v1 = vpop.f32.mrb[9].mxu1 }
 0x10a   :  { %1325 = vst.msk [vmem:[%s2393_s4 + $0x88] sm:$0xf] %vm1290_vm1, %v1564_v55  ;;  %v592_v2 = vpop.f32.mrb[10].mxu0  ;;  %v720_v3 = vpop.f32.mrb[10].mxu1 }
 0x10b   :  { %1294 = vst.msk [vmem:[%s2393_s4 + $0xc] sm:$0xf] %vm1290_vm1, %v1533_v60  ;;  %1326 = vst.msk [vmem:[%s2393_s4 + $0x8c] sm:$0xf] %vm1290_vm1, %v1565_v61  ;;  %v910_v4 = vadd.f32 %v2003_v12, %v839_v62  ;;  %v942_v5 = vadd.f32 %v2003_v12, %v871_v63  ;;  %v840_v6 = vmul.f32 %v1998_v10, %v592_v2  ;;  %v594_v8 = vpop.f32.mrb[11].mxu0  ;;  %v722_v9 = vpop.f32.mrb[11].mxu1 }
 0x10c   :  { %v872_v7 = vmul.f32 %v1998_v10, %v720_v3 }
 0x10d   :  { %v974_v11 = vmax.f32 %v910_v4, 0.0  ;;  %v1006_v13 = vmax.f32 %v942_v5, 0.0  ;;  %v911_v14 = vadd.f32 %v2003_v12, %v840_v6 }
 0x10e   :  { %v943_v15 = vadd.f32 %v2003_v12, %v872_v7 }
 0x10f   :  { %v1534_v16 = vpack.c.bf16 %v974_v11, %v974_v11  ;;  %v1566_v17 = vpack.c.bf16 %v1006_v13, %v1006_v13  ;;  %v975_v18 = vmax.f32 %v911_v14, 0.0 }
 0x110   :  { %v1007_v19 = vmax.f32 %v943_v15, 0.0  ;;  %v597_v20 = vpop.f32.mrb[12].mxu0  ;;  %v725_v21 = vpop.f32.mrb[12].mxu1 }
 0x111   :  { %1295 = vst.msk [vmem:[%s2393_s4 + $0x10] sm:$0xf] %vm1290_vm1, %v1534_v16  ;;  %1327 = vst.msk [vmem:[%s2393_s4 + $0x90] sm:$0xf] %vm1290_vm1, %v1566_v17  ;;  %v1535_v22 = vpack.c.bf16 %v975_v18, %v975_v18  ;;  %v841_v24 = vmul.f32 %v1998_v10, %v597_v20  ;;  %v873_v25 = vmul.f32 %v1998_v10, %v725_v21  ;;  %v599_v26 = vpop.f32.mrb[13].mxu0  ;;  %v727_v27 = vpop.f32.mrb[13].mxu1 }
 0x112   :  { %v1567_v23 = vpack.c.bf16 %v1007_v19, %v1007_v19  ;;  %v600_v28 = vpop.f32.mrb[14].mxu0  ;;  %v728_v29 = vpop.f32.mrb[14].mxu1 }
 0x113   :  { %1296 = vst.msk [vmem:[%s2393_s4 + $0x14] sm:$0xf] %vm1290_vm1, %v1535_v22  ;;  %v912_v30 = vadd.f32 %v2003_v12, %v841_v24  ;;  %v944_v31 = vadd.f32 %v2003_v12, %v873_v25  ;;  %v842_v32 = vmul.f32 %v1998_v10, %v600_v28  ;;  %v874_v33 = vmul.f32 %v1998_v10, %v728_v29  ;;  %v602_v34 = vpop.f32.mrb[15].mxu0  ;;  %v730_v35 = vpop.f32.mrb[15].mxu1 }
 0x114   :  { %1328 = vst.msk [vmem:[%s2393_s4 + $0x94] sm:$0xf] %vm1290_vm1, %v1567_v23 }
 0x115   :  { %v976_v36 = vmax.f32 %v912_v30, 0.0  ;;  %v1008_v37 = vmax.f32 %v944_v31, 0.0  ;;  %v913_v38 = vadd.f32 %v2003_v12, %v842_v32  ;;  %v945_v39 = vadd.f32 %v2003_v12, %v874_v33 }
 0x117   :  { %v1536_v40 = vpack.c.bf16 %v976_v36, %v976_v36  ;;  %v1568_v41 = vpack.c.bf16 %v1008_v37, %v1008_v37  ;;  %v977_v42 = vmax.f32 %v913_v38, 0.0  ;;  %v1009_v43 = vmax.f32 %v945_v39, 0.0 }
 0x118   :  { %v605_v44 = vpop.f32.mrb[16].mxu0  ;;  %v733_v45 = vpop.f32.mrb[16].mxu1 }
 0x119   :  { %1297 = vst.msk [vmem:[%s2393_s4 + $0x18] sm:$0xf] %vm1290_vm1, %v1536_v40  ;;  %1329 = vst.msk [vmem:[%s2393_s4 + $0x98] sm:$0xf] %vm1290_vm1, %v1568_v41  ;;  %v1537_v46 = vpack.c.bf16 %v977_v42, %v977_v42  ;;  %v1569_v47 = vpack.c.bf16 %v1009_v43, %v1009_v43  ;;  %v843_v48 = vmul.f32 %v1998_v10, %v605_v44  ;;  %v607_v50 = vpop.f32.mrb[17].mxu0  ;;  %v735_v51 = vpop.f32.mrb[17].mxu1 }
 0x11a   :  { %v875_v49 = vmul.f32 %v1998_v10, %v733_v45  ;;  %v608_v52 = vpop.f32.mrb[18].mxu0  ;;  %v736_v53 = vpop.f32.mrb[18].mxu1 }
 0x11b   :  { %1298 = vst.msk [vmem:[%s2393_s4 + $0x1c] sm:$0xf] %vm1290_vm1, %v1537_v46  ;;  %1330 = vst.msk [vmem:[%s2393_s4 + $0x9c] sm:$0xf] %vm1290_vm1, %v1569_v47  ;;  %v914_v54 = vadd.f32 %v2003_v12, %v843_v48  ;;  %v844_v56 = vmul.f32 %v1998_v10, %v608_v52  ;;  %v876_v57 = vmul.f32 %v1998_v10, %v736_v53  ;;  %v610_v58 = vpop.f32.mrb[19].mxu0  ;;  %v738_v59 = vpop.f32.mrb[19].mxu1 }
 0x11c   :  { %v946_v55 = vadd.f32 %v2003_v12, %v875_v49 }
 0x11d   :  { %v978_v60 = vmax.f32 %v914_v54, 0.0  ;;  %v915_v62 = vadd.f32 %v2003_v12, %v844_v56  ;;  %v947_v63 = vadd.f32 %v2003_v12, %v876_v57 }
 0x11e   :  { %v1010_v61 = vmax.f32 %v946_v55, 0.0 }
 0x11f   :  { %v1538_v0 = vpack.c.bf16 %v978_v60, %v978_v60  ;;  %v979_v2 = vmax.f32 %v915_v62, 0.0  ;;  %v1011_v3 = vmax.f32 %v947_v63, 0.0 }
 0x120   :  { %v1570_v1 = vpack.c.bf16 %v1010_v61, %v1010_v61  ;;  %v613_v4 = vpop.f32.mrb[20].mxu0  ;;  %v741_v5 = vpop.f32.mrb[20].mxu1 }
 0x121   :  { %1299 = vst.msk [vmem:[%s2393_s4 + $0x20] sm:$0xf] %vm1290_vm1, %v1538_v0  ;;  %v1539_v6 = vpack.c.bf16 %v979_v2, %v979_v2  ;;  %v1571_v7 = vpack.c.bf16 %v1011_v3, %v1011_v3  ;;  %v845_v8 = vmul.f32 %v1998_v10, %v613_v4  ;;  %v877_v9 = vmul.f32 %v1998_v10, %v741_v5  ;;  %v615_v11 = vpop.f32.mrb[21].mxu0  ;;  %v743_v13 = vpop.f32.mrb[21].mxu1 }
 0x122   :  { %1331 = vst.msk [vmem:[%s2393_s4 + $0xa0] sm:$0xf] %vm1290_vm1, %v1570_v1  ;;  %v616_v14 = vpop.f32.mrb[22].mxu0  ;;  %v744_v15 = vpop.f32.mrb[22].mxu1 }
 0x123   :  { %1300 = vst.msk [vmem:[%s2393_s4 + $0x24] sm:$0xf] %vm1290_vm1, %v1539_v6  ;;  %1332 = vst.msk [vmem:[%s2393_s4 + $0xa4] sm:$0xf] %vm1290_vm1, %v1571_v7  ;;  %v916_v16 = vadd.f32 %v2003_v12, %v845_v8  ;;  %v948_v17 = vadd.f32 %v2003_v12, %v877_v9  ;;  %v846_v18 = vmul.f32 %v1998_v10, %v616_v14  ;;  %v618_v20 = vpop.f32.mrb[23].mxu0  ;;  %v746_v21 = vpop.f32.mrb[23].mxu1 }
 0x124   :  { %v878_v19 = vmul.f32 %v1998_v10, %v744_v15 }
 0x125   :  { %v980_v22 = vmax.f32 %v916_v16, 0.0  ;;  %v1012_v23 = vmax.f32 %v948_v17, 0.0  ;;  %v917_v24 = vadd.f32 %v2003_v12, %v846_v18 }
 0x126   :  { %v949_v25 = vadd.f32 %v2003_v12, %v878_v19 }
 0x127   :  { %v1540_v26 = vpack.c.bf16 %v980_v22, %v980_v22  ;;  %v1572_v27 = vpack.c.bf16 %v1012_v23, %v1012_v23  ;;  %v981_v28 = vmax.f32 %v917_v24, 0.0 }
 0x128   :  { %v1013_v29 = vmax.f32 %v949_v25, 0.0  ;;  %v621_v30 = vpop.f32.mrb[24].mxu0  ;;  %v749_v31 = vpop.f32.mrb[24].mxu1 }
 0x129   :  { %1301 = vst.msk [vmem:[%s2393_s4 + $0x28] sm:$0xf] %vm1290_vm1, %v1540_v26  ;;  %1333 = vst.msk [vmem:[%s2393_s4 + $0xa8] sm:$0xf] %vm1290_vm1, %v1572_v27  ;;  %v1541_v32 = vpack.c.bf16 %v981_v28, %v981_v28  ;;  %v847_v34 = vmul.f32 %v1998_v10, %v621_v30  ;;  %v879_v35 = vmul.f32 %v1998_v10, %v749_v31  ;;  %v623_v36 = vpop.f32.mrb[25].mxu0  ;;  %v751_v37 = vpop.f32.mrb[25].mxu1 }
 0x12a   :  { %v1573_v33 = vpack.c.bf16 %v1013_v29, %v1013_v29  ;;  %v624_v38 = vpop.f32.mrb[26].mxu0  ;;  %v752_v39 = vpop.f32.mrb[26].mxu1 }
 0x12b   :  { %1302 = vst.msk [vmem:[%s2393_s4 + $0x2c] sm:$0xf] %vm1290_vm1, %v1541_v32  ;;  %v918_v40 = vadd.f32 %v2003_v12, %v847_v34  ;;  %v950_v41 = vadd.f32 %v2003_v12, %v879_v35  ;;  %v848_v42 = vmul.f32 %v1998_v10, %v624_v38  ;;  %v880_v43 = vmul.f32 %v1998_v10, %v752_v39  ;;  %v626_v44 = vpop.f32.mrb[27].mxu0  ;;  %v754_v45 = vpop.f32.mrb[27].mxu1 }
 0x12c   :  { %1334 = vst.msk [vmem:[%s2393_s4 + $0xac] sm:$0xf] %vm1290_vm1, %v1573_v33 }
 0x12d   :  { %v982_v46 = vmax.f32 %v918_v40, 0.0  ;;  %v1014_v47 = vmax.f32 %v950_v41, 0.0  ;;  %v919_v48 = vadd.f32 %v2003_v12, %v848_v42  ;;  %v951_v49 = vadd.f32 %v2003_v12, %v880_v43 }
 0x12f   :  { %v1542_v50 = vpack.c.bf16 %v982_v46, %v982_v46  ;;  %v1574_v51 = vpack.c.bf16 %v1014_v47, %v1014_v47  ;;  %v983_v52 = vmax.f32 %v919_v48, 0.0  ;;  %v1015_v53 = vmax.f32 %v951_v49, 0.0 }
 0x130   :  { %v629_v54 = vpop.f32.mrb[28].mxu0  ;;  %v757_v55 = vpop.f32.mrb[28].mxu1 }
 0x131   :  { %1303 = vst.msk [vmem:[%s2393_s4 + $0x30] sm:$0xf] %vm1290_vm1, %v1542_v50  ;;  %1335 = vst.msk [vmem:[%s2393_s4 + $0xb0] sm:$0xf] %vm1290_vm1, %v1574_v51  ;;  %v1543_v56 = vpack.c.bf16 %v983_v52, %v983_v52  ;;  %v1575_v57 = vpack.c.bf16 %v1015_v53, %v1015_v53  ;;  %v849_v58 = vmul.f32 %v1998_v10, %v629_v54  ;;  %v631_v60 = vpop.f32.mrb[29].mxu0  ;;  %v759_v61 = vpop.f32.mrb[29].mxu1 }
 0x132   :  { %v881_v59 = vmul.f32 %v1998_v10, %v757_v55  ;;  %v632_v62 = vpop.f32.mrb[30].mxu0  ;;  %v760_v63 = vpop.f32.mrb[30].mxu1 }
 0x133   :  { %1304 = vst.msk [vmem:[%s2393_s4 + $0x34] sm:$0xf] %vm1290_vm1, %v1543_v56  ;;  %1336 = vst.msk [vmem:[%s2393_s4 + $0xb4] sm:$0xf] %vm1290_vm1, %v1575_v57  ;;  %v920_v0 = vadd.f32 %v2003_v12, %v849_v58  ;;  %v850_v2 = vmul.f32 %v1998_v10, %v632_v62  ;;  %v882_v3 = vmul.f32 %v1998_v10, %v760_v63  ;;  %v634_v4 = vpop.f32.mrb[31].mxu0  ;;  %v762_v5 = vpop.f32.mrb[31].mxu1 }
 0x134   :  { %v952_v1 = vadd.f32 %v2003_v12, %v881_v59 }
 0x135   :  { %v984_v6 = vmax.f32 %v920_v0, 0.0  ;;  %v921_v8 = vadd.f32 %v2003_v12, %v850_v2  ;;  %v953_v9 = vadd.f32 %v2003_v12, %v882_v3 }
 0x136   :  { %v1016_v7 = vmax.f32 %v952_v1, 0.0 }
 0x137   :  { %v1544_v11 = vpack.c.bf16 %v984_v6, %v984_v6  ;;  %v985_v14 = vmax.f32 %v921_v8, 0.0  ;;  %v1017_v15 = vmax.f32 %v953_v9, 0.0 }
 0x138   :  { %v1576_v13 = vpack.c.bf16 %v1016_v7, %v1016_v7  ;;  %v637_v16 = vpop.f32.mrb[32].mxu0  ;;  %v765_v17 = vpop.f32.mrb[32].mxu1 }
 0x139   :  { %1305 = vst.msk [vmem:[%s2393_s4 + $0x38] sm:$0xf] %vm1290_vm1, %v1544_v11  ;;  %v1545_v18 = vpack.c.bf16 %v985_v14, %v985_v14  ;;  %v1577_v19 = vpack.c.bf16 %v1017_v15, %v1017_v15  ;;  %v851_v20 = vmul.f32 %v1998_v10, %v637_v16  ;;  %v883_v21 = vmul.f32 %v1998_v10, %v765_v17  ;;  %v639_v22 = vpop.f32.mrb[33].mxu0  ;;  %v767_v23 = vpop.f32.mrb[33].mxu1 }
 0x13a   :  { %1337 = vst.msk [vmem:[%s2393_s4 + $0xb8] sm:$0xf] %vm1290_vm1, %v1576_v13  ;;  %v640_v24 = vpop.f32.mrb[34].mxu0  ;;  %v768_v25 = vpop.f32.mrb[34].mxu1 }
 0x13b   :  { %1306 = vst.msk [vmem:[%s2393_s4 + $0x3c] sm:$0xf] %vm1290_vm1, %v1545_v18  ;;  %1338 = vst.msk [vmem:[%s2393_s4 + $0xbc] sm:$0xf] %vm1290_vm1, %v1577_v19  ;;  %v922_v26 = vadd.f32 %v2003_v12, %v851_v20  ;;  %v954_v27 = vadd.f32 %v2003_v12, %v883_v21  ;;  %v852_v28 = vmul.f32 %v1998_v10, %v640_v24  ;;  %v642_v30 = vpop.f32.mrb[35].mxu0  ;;  %v770_v31 = vpop.f32.mrb[35].mxu1 }
 0x13c   :  { %v884_v29 = vmul.f32 %v1998_v10, %v768_v25 }
 0x13d   :  { %v986_v32 = vmax.f32 %v922_v26, 0.0  ;;  %v1018_v33 = vmax.f32 %v954_v27, 0.0  ;;  %v923_v34 = vadd.f32 %v2003_v12, %v852_v28 }
 0x13e   :  { %v955_v35 = vadd.f32 %v2003_v12, %v884_v29 }
 0x13f   :  { %v1546_v36 = vpack.c.bf16 %v986_v32, %v986_v32  ;;  %v1578_v37 = vpack.c.bf16 %v1018_v33, %v1018_v33  ;;  %v987_v38 = vmax.f32 %v923_v34, 0.0 }
 0x140   :  { %v1019_v39 = vmax.f32 %v955_v35, 0.0  ;;  %v645_v40 = vpop.f32.mrb[36].mxu0  ;;  %v773_v41 = vpop.f32.mrb[36].mxu1 }
 0x141   :  { %1307 = vst.msk [vmem:[%s2393_s4 + $0x40] sm:$0xf] %vm1290_vm1, %v1546_v36  ;;  %1339 = vst.msk [vmem:[%s2393_s4 + $0xc0] sm:$0xf] %vm1290_vm1, %v1578_v37  ;;  %v1547_v42 = vpack.c.bf16 %v987_v38, %v987_v38  ;;  %v853_v44 = vmul.f32 %v1998_v10, %v645_v40  ;;  %v885_v45 = vmul.f32 %v1998_v10, %v773_v41  ;;  %v647_v46 = vpop.f32.mrb[37].mxu0  ;;  %v775_v47 = vpop.f32.mrb[37].mxu1 }
 0x142   :  { %v1579_v43 = vpack.c.bf16 %v1019_v39, %v1019_v39  ;;  %v648_v48 = vpop.f32.mrb[38].mxu0  ;;  %v776_v49 = vpop.f32.mrb[38].mxu1 }
 0x143   :  { %1308 = vst.msk [vmem:[%s2393_s4 + $0x44] sm:$0xf] %vm1290_vm1, %v1547_v42  ;;  %v924_v50 = vadd.f32 %v2003_v12, %v853_v44  ;;  %v956_v51 = vadd.f32 %v2003_v12, %v885_v45  ;;  %v854_v52 = vmul.f32 %v1998_v10, %v648_v48  ;;  %v886_v53 = vmul.f32 %v1998_v10, %v776_v49  ;;  %v650_v54 = vpop.f32.mrb[39].mxu0  ;;  %v778_v55 = vpop.f32.mrb[39].mxu1 }
 0x144   :  { %1340 = vst.msk [vmem:[%s2393_s4 + $0xc4] sm:$0xf] %vm1290_vm1, %v1579_v43 }
 0x145   :  { %v988_v56 = vmax.f32 %v924_v50, 0.0  ;;  %v1020_v57 = vmax.f32 %v956_v51, 0.0  ;;  %v925_v58 = vadd.f32 %v2003_v12, %v854_v52  ;;  %v957_v59 = vadd.f32 %v2003_v12, %v886_v53 }
 0x147   :  { %v1548_v60 = vpack.c.bf16 %v988_v56, %v988_v56  ;;  %v1580_v61 = vpack.c.bf16 %v1020_v57, %v1020_v57  ;;  %v989_v62 = vmax.f32 %v925_v58, 0.0  ;;  %v1021_v63 = vmax.f32 %v957_v59, 0.0 }
 0x148   :  { %v653_v0 = vpop.f32.mrb[40].mxu0  ;;  %v781_v1 = vpop.f32.mrb[40].mxu1 }
 0x149   :  { %1309 = vst.msk [vmem:[%s2393_s4 + $0x48] sm:$0xf] %vm1290_vm1, %v1548_v60  ;;  %1341 = vst.msk [vmem:[%s2393_s4 + $0xc8] sm:$0xf] %vm1290_vm1, %v1580_v61  ;;  %v1549_v2 = vpack.c.bf16 %v989_v62, %v989_v62  ;;  %v1581_v3 = vpack.c.bf16 %v1021_v63, %v1021_v63  ;;  %v855_v4 = vmul.f32 %v1998_v10, %v653_v0  ;;  %v655_v6 = vpop.f32.mrb[41].mxu0  ;;  %v783_v7 = vpop.f32.mrb[41].mxu1 }
 0x14a   :  { %v887_v5 = vmul.f32 %v1998_v10, %v781_v1  ;;  %v656_v8 = vpop.f32.mrb[42].mxu0  ;;  %v784_v9 = vpop.f32.mrb[42].mxu1 }
 0x14b   :  { %1310 = vst.msk [vmem:[%s2393_s4 + $0x4c] sm:$0xf] %vm1290_vm1, %v1549_v2  ;;  %1342 = vst.msk [vmem:[%s2393_s4 + $0xcc] sm:$0xf] %vm1290_vm1, %v1581_v3  ;;  %v926_v11 = vadd.f32 %v2003_v12, %v855_v4  ;;  %v856_v14 = vmul.f32 %v1998_v10, %v656_v8  ;;  %v888_v15 = vmul.f32 %v1998_v10, %v784_v9  ;;  %v658_v16 = vpop.f32.mrb[43].mxu0  ;;  %v786_v17 = vpop.f32.mrb[43].mxu1 }
 0x14c   :  { %v958_v13 = vadd.f32 %v2003_v12, %v887_v5 }
 0x14d   :  { %v990_v18 = vmax.f32 %v926_v11, 0.0  ;;  %v927_v20 = vadd.f32 %v2003_v12, %v856_v14  ;;  %v959_v21 = vadd.f32 %v2003_v12, %v888_v15 }
 0x14e   :  { %v1022_v19 = vmax.f32 %v958_v13, 0.0 }
 0x14f   :  { %v1550_v22 = vpack.c.bf16 %v990_v18, %v990_v18  ;;  %v991_v24 = vmax.f32 %v927_v20, 0.0  ;;  %v1023_v25 = vmax.f32 %v959_v21, 0.0 }
 0x150   :  { %v1582_v23 = vpack.c.bf16 %v1022_v19, %v1022_v19  ;;  %v661_v26 = vpop.f32.mrb[44].mxu0  ;;  %v789_v27 = vpop.f32.mrb[44].mxu1 }
 0x151   :  { %1311 = vst.msk [vmem:[%s2393_s4 + $0x50] sm:$0xf] %vm1290_vm1, %v1550_v22  ;;  %v1551_v28 = vpack.c.bf16 %v991_v24, %v991_v24  ;;  %v1583_v29 = vpack.c.bf16 %v1023_v25, %v1023_v25  ;;  %v857_v30 = vmul.f32 %v1998_v10, %v661_v26  ;;  %v889_v31 = vmul.f32 %v1998_v10, %v789_v27  ;;  %v663_v32 = vpop.f32.mrb[45].mxu0  ;;  %v791_v33 = vpop.f32.mrb[45].mxu1 }
 0x152   :  { %1343 = vst.msk [vmem:[%s2393_s4 + $0xd0] sm:$0xf] %vm1290_vm1, %v1582_v23  ;;  %v664_v34 = vpop.f32.mrb[46].mxu0  ;;  %v792_v35 = vpop.f32.mrb[46].mxu1 }
 0x153   :  { %1312 = vst.msk [vmem:[%s2393_s4 + $0x54] sm:$0xf] %vm1290_vm1, %v1551_v28  ;;  %1344 = vst.msk [vmem:[%s2393_s4 + $0xd4] sm:$0xf] %vm1290_vm1, %v1583_v29  ;;  %v928_v36 = vadd.f32 %v2003_v12, %v857_v30  ;;  %v960_v37 = vadd.f32 %v2003_v12, %v889_v31  ;;  %v858_v38 = vmul.f32 %v1998_v10, %v664_v34  ;;  %v666_v40 = vpop.f32.mrb[47].mxu0  ;;  %v794_v41 = vpop.f32.mrb[47].mxu1 }
 0x154   :  { %v890_v39 = vmul.f32 %v1998_v10, %v792_v35 }
 0x155   :  { %v992_v42 = vmax.f32 %v928_v36, 0.0  ;;  %v1024_v43 = vmax.f32 %v960_v37, 0.0  ;;  %v929_v44 = vadd.f32 %v2003_v12, %v858_v38 }
 0x156   :  { %v961_v45 = vadd.f32 %v2003_v12, %v890_v39 }
 0x157   :  { %v1552_v46 = vpack.c.bf16 %v992_v42, %v992_v42  ;;  %v1584_v47 = vpack.c.bf16 %v1024_v43, %v1024_v43  ;;  %v993_v48 = vmax.f32 %v929_v44, 0.0 }
 0x158   :  { %v1025_v49 = vmax.f32 %v961_v45, 0.0  ;;  %v669_v50 = vpop.f32.mrb[48].mxu0  ;;  %v797_v51 = vpop.f32.mrb[48].mxu1 }
 0x159   :  { %1313 = vst.msk [vmem:[%s2393_s4 + $0x58] sm:$0xf] %vm1290_vm1, %v1552_v46  ;;  %1345 = vst.msk [vmem:[%s2393_s4 + $0xd8] sm:$0xf] %vm1290_vm1, %v1584_v47  ;;  %v1553_v52 = vpack.c.bf16 %v993_v48, %v993_v48  ;;  %v859_v54 = vmul.f32 %v1998_v10, %v669_v50  ;;  %v891_v55 = vmul.f32 %v1998_v10, %v797_v51  ;;  %v671_v56 = vpop.f32.mrb[49].mxu0  ;;  %v799_v57 = vpop.f32.mrb[49].mxu1 }
 0x15a   :  { %v1585_v53 = vpack.c.bf16 %v1025_v49, %v1025_v49  ;;  %v672_v58 = vpop.f32.mrb[50].mxu0  ;;  %v800_v59 = vpop.f32.mrb[50].mxu1 }
 0x15b   :  { %1314 = vst.msk [vmem:[%s2393_s4 + $0x5c] sm:$0xf] %vm1290_vm1, %v1553_v52  ;;  %v930_v60 = vadd.f32 %v2003_v12, %v859_v54  ;;  %v962_v61 = vadd.f32 %v2003_v12, %v891_v55  ;;  %v860_v62 = vmul.f32 %v1998_v10, %v672_v58  ;;  %v892_v63 = vmul.f32 %v1998_v10, %v800_v59  ;;  %v674_v0 = vpop.f32.mrb[51].mxu0  ;;  %v802_v1 = vpop.f32.mrb[51].mxu1 }
 0x15c   :  { %1346 = vst.msk [vmem:[%s2393_s4 + $0xdc] sm:$0xf] %vm1290_vm1, %v1585_v53 }
 0x15d   :  { %v994_v2 = vmax.f32 %v930_v60, 0.0  ;;  %v1026_v3 = vmax.f32 %v962_v61, 0.0  ;;  %v931_v4 = vadd.f32 %v2003_v12, %v860_v62  ;;  %v963_v5 = vadd.f32 %v2003_v12, %v892_v63 }
 0x15f   :  { %v1554_v6 = vpack.c.bf16 %v994_v2, %v994_v2  ;;  %v1586_v7 = vpack.c.bf16 %v1026_v3, %v1026_v3  ;;  %v995_v8 = vmax.f32 %v931_v4, 0.0  ;;  %v1027_v9 = vmax.f32 %v963_v5, 0.0 }
 0x160   :  { %v677_v11 = vpop.f32.mrb[52].mxu0  ;;  %v805_v13 = vpop.f32.mrb[52].mxu1 }
 0x161   :  { %1315 = vst.msk [vmem:[%s2393_s4 + $0x60] sm:$0xf] %vm1290_vm1, %v1554_v6  ;;  %1347 = vst.msk [vmem:[%s2393_s4 + $0xe0] sm:$0xf] %vm1290_vm1, %v1586_v7  ;;  %v1555_v14 = vpack.c.bf16 %v995_v8, %v995_v8  ;;  %v1587_v15 = vpack.c.bf16 %v1027_v9, %v1027_v9  ;;  %v861_v16 = vmul.f32 %v1998_v10, %v677_v11  ;;  %v679_v18 = vpop.f32.mrb[53].mxu0  ;;  %v807_v19 = vpop.f32.mrb[53].mxu1 }
 0x162   :  { %v893_v17 = vmul.f32 %v1998_v10, %v805_v13  ;;  %v680_v20 = vpop.f32.mrb[54].mxu0  ;;  %v808_v21 = vpop.f32.mrb[54].mxu1 }
 0x163   :  { %1316 = vst.msk [vmem:[%s2393_s4 + $0x64] sm:$0xf] %vm1290_vm1, %v1555_v14  ;;  %1348 = vst.msk [vmem:[%s2393_s4 + $0xe4] sm:$0xf] %vm1290_vm1, %v1587_v15  ;;  %v932_v22 = vadd.f32 %v2003_v12, %v861_v16  ;;  %v862_v24 = vmul.f32 %v1998_v10, %v680_v20  ;;  %v894_v25 = vmul.f32 %v1998_v10, %v808_v21  ;;  %v682_v26 = vpop.f32.mrb[55].mxu0  ;;  %v810_v27 = vpop.f32.mrb[55].mxu1 }
 0x164   :  { %v964_v23 = vadd.f32 %v2003_v12, %v893_v17 }
 0x165   :  { %v996_v28 = vmax.f32 %v932_v22, 0.0  ;;  %v933_v30 = vadd.f32 %v2003_v12, %v862_v24  ;;  %v965_v31 = vadd.f32 %v2003_v12, %v894_v25 }
 0x166   :  { %v1028_v29 = vmax.f32 %v964_v23, 0.0 }
 0x167   :  { %v1556_v32 = vpack.c.bf16 %v996_v28, %v996_v28  ;;  %v997_v34 = vmax.f32 %v933_v30, 0.0  ;;  %v1029_v35 = vmax.f32 %v965_v31, 0.0 }
 0x168   :  { %v1588_v33 = vpack.c.bf16 %v1028_v29, %v1028_v29  ;;  %v685_v36 = vpop.f32.mrb[56].mxu0  ;;  %v813_v37 = vpop.f32.mrb[56].mxu1 }
 0x169   :  { %1317 = vst.msk [vmem:[%s2393_s4 + $0x68] sm:$0xf] %vm1290_vm1, %v1556_v32  ;;  %v1557_v38 = vpack.c.bf16 %v997_v34, %v997_v34  ;;  %v1589_v39 = vpack.c.bf16 %v1029_v35, %v1029_v35  ;;  %v863_v40 = vmul.f32 %v1998_v10, %v685_v36  ;;  %v895_v41 = vmul.f32 %v1998_v10, %v813_v37  ;;  %v687_v42 = vpop.f32.mrb[57].mxu0  ;;  %v815_v43 = vpop.f32.mrb[57].mxu1 }
 0x16a   :  { %1349 = vst.msk [vmem:[%s2393_s4 + $0xe8] sm:$0xf] %vm1290_vm1, %v1588_v33  ;;  %v688_v44 = vpop.f32.mrb[58].mxu0  ;;  %v816_v45 = vpop.f32.mrb[58].mxu1 }
 0x16b   :  { %1318 = vst.msk [vmem:[%s2393_s4 + $0x6c] sm:$0xf] %vm1290_vm1, %v1557_v38  ;;  %1350 = vst.msk [vmem:[%s2393_s4 + $0xec] sm:$0xf] %vm1290_vm1, %v1589_v39  ;;  %v934_v46 = vadd.f32 %v2003_v12, %v863_v40  ;;  %v966_v47 = vadd.f32 %v2003_v12, %v895_v41  ;;  %v864_v48 = vmul.f32 %v1998_v10, %v688_v44  ;;  %v690_v50 = vpop.f32.mrb[59].mxu0  ;;  %v818_v51 = vpop.f32.mrb[59].mxu1 }
 0x16c   :  { %v896_v49 = vmul.f32 %v1998_v10, %v816_v45 }
 0x16d   :  { %v998_v52 = vmax.f32 %v934_v46, 0.0  ;;  %v1030_v53 = vmax.f32 %v966_v47, 0.0  ;;  %v935_v54 = vadd.f32 %v2003_v12, %v864_v48 }
 0x16e   :  { %v967_v55 = vadd.f32 %v2003_v12, %v896_v49 }
 0x16f   :  { %v1558_v56 = vpack.c.bf16 %v998_v52, %v998_v52  ;;  %v1590_v57 = vpack.c.bf16 %v1030_v53, %v1030_v53  ;;  %v999_v58 = vmax.f32 %v935_v54, 0.0 }
 0x170   :  { %v1031_v59 = vmax.f32 %v967_v55, 0.0  ;;  %v693_v60 = vpop.f32.mrb[60].mxu0  ;;  %v821_v61 = vpop.f32.mrb[60].mxu1 }
 0x171   :  { %1319 = vst.msk [vmem:[%s2393_s4 + $0x70] sm:$0xf] %vm1290_vm1, %v1558_v56  ;;  %1351 = vst.msk [vmem:[%s2393_s4 + $0xf0] sm:$0xf] %vm1290_vm1, %v1590_v57  ;;  %v1559_v62 = vpack.c.bf16 %v999_v58, %v999_v58  ;;  %v865_v0 = vmul.f32 %v1998_v10, %v693_v60  ;;  %v897_v1 = vmul.f32 %v1998_v10, %v821_v61  ;;  %v695_v2 = vpop.f32.mrb[61].mxu0  ;;  %v823_v3 = vpop.f32.mrb[61].mxu1 }
 0x172   :  { %v1591_v63 = vpack.c.bf16 %v1031_v59, %v1031_v59  ;;  %v696_v4 = vpop.f32.mrb[62].mxu0  ;;  %v824_v5 = vpop.f32.mrb[62].mxu1 }
 0x173   :  { %1320 = vst.msk [vmem:[%s2393_s4 + $0x74] sm:$0xf] %vm1290_vm1, %v1559_v62  ;;  %v936_v6 = vadd.f32 %v2003_v12, %v865_v0  ;;  %v968_v7 = vadd.f32 %v2003_v12, %v897_v1  ;;  %v866_v8 = vmul.f32 %v1998_v10, %v696_v4  ;;  %v898_v9 = vmul.f32 %v1998_v10, %v824_v5  ;;  %v698_v11 = vpop.f32.mrb[63].mxu0  ;;  %v826_v13 = vpop.f32.mrb[63].mxu1 }
 0x174   :  { %1352 = vst.msk [vmem:[%s2393_s4 + $0xf4] sm:$0xf] %vm1290_vm1, %v1591_v63 }
 0x175   :  { %v1000_v14 = vmax.f32 %v936_v6, 0.0  ;;  %v1032_v15 = vmax.f32 %v968_v7, 0.0  ;;  %v937_v16 = vadd.f32 %v2003_v12, %v866_v8  ;;  %v969_v17 = vadd.f32 %v2003_v12, %v898_v9 }
 0x177   :  { %v1560_v18 = vpack.c.bf16 %v1000_v14, %v1000_v14  ;;  %v1592_v19 = vpack.c.bf16 %v1032_v15, %v1032_v15  ;;  %v1001_v20 = vmax.f32 %v937_v16, 0.0  ;;  %v1033_v21 = vmax.f32 %v969_v17, 0.0 }
 0x179   :  { %1321 = vst.msk [vmem:[%s2393_s4 + $0x78] sm:$0xf] %vm1290_vm1, %v1560_v18  ;;  %1353 = vst.msk [vmem:[%s2393_s4 + $0xf8] sm:$0xf] %vm1290_vm1, %v1592_v19  ;;  %v1561_v10 = vpack.c.bf16 %v1001_v20, %v1001_v20  ;;  %v1593_v22 = vpack.c.bf16 %v1033_v21, %v1033_v21 }
 0x17b   :  { %1322 = vst.msk [vmem:[%s2393_s4 + $0x7c] sm:$0xf] %vm1290_vm1, %v1561_v10  ;;  %1354 = vst.msk [vmem:[%s2393_s4 + $0xfc] sm:$0xf] %vm1290_vm1, %v1593_v22 }

// kernel: _forward.12
= control target key start
LH: loop header
LB: loop body
LE: loop exit
PB: predicated region body
PF: predicated region fallthrough
CT: control target
= control target key end

     0   :  { %v1794_v0 = vmov 0   ;;  %vm567_vm0 = vcmask 130048   ;;  %vm1209_vm1 = vcmask 125952   ;;  %s2418_s1 = inlined_call_operand.vmem [shape: bf16[144,16], index: 1, kind: input, shape index: {}]   ;;  %s2419_s0 = inlined_call_operand.vmem [shape: bf16[512,144], index: 0, kind: input, shape index: {}]   ;;  %s2420_s2 = inlined_call_operand.vmem [shape: bf16[512,16], index: 2, kind: input, shape index: {}]   ;;  %s2421_s3 = inlined_call_operand.vmem [shape: bf16[512,16], index: 3, kind: output, shape index: {}]  }
   0x1   :  { %664 = vmatprep.subr.bf16.mxu0 %v1794_v0  ;;  %1670 = vmatprep.subr.bf16.mxu1 %v1794_v0  ;;  %v1689_v1 = vld [vmem:[%s2418_s1] sm:$0xff]   ;;  %v1690_v2 = vld [vmem:[%s2418_s1 + $0x8] sm:$0xff]   ;;  %v1691_v3 = vld [vmem:[%s2418_s1 + $0x10] sm:$0xff]  }
   0x2   :  { %665 = vmatpush1.bf16.msra.mxu0 %v1689_v1  ;;  %1679 = vmatpush1.bf16.msra.mxu1 %v1689_v1  ;;  %v1692_v4 = vld [vmem:[%s2418_s1 + $0x18] sm:$0xff]   ;;  %v1700_v5 = vld [vmem:[%s2419_s0 + $0x4] ss:$8 sps:$4 sm:$0xff]   ;;  %v1695_v9 = vld [vmem:[%s2418_s1 + $0x30] sm:$0xff]  }
   0x3   :  { %666 = vmatprep.subr.bf16.mxu0 %v1794_v0  ;;  %1671 = vmatprep.subr.bf16.mxu1 %v1794_v0  ;;  %v1703_v6 = vld [vmem:[%s2419_s0 + $0x104] ss:$8 sps:$4 sm:$0xff]   ;;  %v1696_v10 = vld [vmem:[%s2418_s1 + $0x38] sm:$0xff]   ;;  %v1698_v12 = vld [vmem:[%s2419_s0] ss:$8 sps:$4 sm:$0xff]  }
   0x4   :  { %1351 = vmatprep.mubr.msk.bf16.mxu0 %vm567_vm0, %v1700_v5  ;;  %1367 = vmatprep.mubr.msk.bf16.mxu1 %vm567_vm0, %v1703_v6  ;;  %v1693_v7 = vld [vmem:[%s2418_s1 + $0x20] sm:$0xff]   ;;  %v1694_v8 = vld [vmem:[%s2418_s1 + $0x28] sm:$0xff]   ;;  %v1704_v14 = vld [vmem:[%s2419_s0 + $0x14] ss:$8 sps:$4 sm:$0xff]  }
   0x5   :  { %v1697_v11 = vld [vmem:[%s2418_s1 + $0x40] sm:$0xff]   ;;  %v1706_v15 = vld [vmem:[%s2419_s0 + $0x114] ss:$8 sps:$4 sm:$0xff]   ;;  %v1708_v16 = vld [vmem:[%s2419_s0 + $0x10] ss:$8 sps:$4 sm:$0xff]  }
   0x6   :  { %667 = vmatpush1.bf16.msra.mxu0 %v1690_v2  ;;  %1680 = vmatpush1.bf16.msra.mxu1 %v1690_v2  ;;  %v1701_v13 = vld [vmem:[%s2419_s0 + $0x100] ss:$8 sps:$4 sm:$0xff]   ;;  %v1709_v17 = vld [vmem:[%s2419_s0 + $0x110] ss:$8 sps:$4 sm:$0xff]   ;;  %v1710_v18 = vld [vmem:[%s2419_s0 + $0x24] ss:$8 sps:$4 sm:$0xff]  }
   0x7   :  { %668 = vmatprep.subr.bf16.mxu0 %v1794_v0  ;;  %1672 = vmatprep.subr.bf16.mxu1 %v1794_v0  ;;  %v1712_v19 = vld [vmem:[%s2419_s0 + $0x124] ss:$8 sps:$4 sm:$0xff]   ;;  %v1714_v20 = vld [vmem:[%s2419_s0 + $0x20] ss:$8 sps:$4 sm:$0xff]   ;;  %v1716_v22 = vld [vmem:[%s2419_s0 + $0x34] ss:$8 sps:$4 sm:$0xff]  }
   0x8   :  { %v1715_v21 = vld [vmem:[%s2419_s0 + $0x120] ss:$8 sps:$4 sm:$0xff]   ;;  %v1718_v23 = vld [vmem:[%s2419_s0 + $0x134] ss:$8 sps:$4 sm:$0xff]   ;;  %v1720_v24 = vld [vmem:[%s2419_s0 + $0x30] ss:$8 sps:$4 sm:$0xff]  }
   0x9   :  { %v1721_v25 = vld [vmem:[%s2419_s0 + $0x130] ss:$8 sps:$4 sm:$0xff]   ;;  %v1722_v26 = vld [vmem:[%s2419_s0 + $0x44] ss:$8 sps:$4 sm:$0xff]   ;;  %v1726_v28 = vld [vmem:[%s2419_s0 + $0x40] ss:$8 sps:$4 sm:$0xff]  }
   0xa   :  { %669 = vmatpush1.bf16.msra.mxu0 %v1691_v3  ;;  %1681 = vmatpush1.bf16.msra.mxu1 %v1691_v3  ;;  %v1724_v27 = vld [vmem:[%s2419_s0 + $0x144] ss:$8 sps:$4 sm:$0xff]   ;;  %v1727_v29 = vld [vmem:[%s2419_s0 + $0x140] ss:$8 sps:$4 sm:$0xff]   ;;  %v1728_v30 = vld [vmem:[%s2419_s0 + $0x54] ss:$8 sps:$4 sm:$0xff]  }
   0xb   :  { %670 = vmatprep.subr.bf16.mxu0 %v1794_v0  ;;  %1673 = vmatprep.subr.bf16.mxu1 %v1794_v0  ;;  %v1730_v31 = vld [vmem:[%s2419_s0 + $0x154] ss:$8 sps:$4 sm:$0xff]   ;;  %v1732_v32 = vld [vmem:[%s2419_s0 + $0x50] ss:$8 sps:$4 sm:$0xff]   ;;  %v1734_v34 = vld [vmem:[%s2419_s0 + $0x64] ss:$8 sps:$4 sm:$0xff]  }
   0xc   :  { %v1733_v33 = vld [vmem:[%s2419_s0 + $0x150] ss:$8 sps:$4 sm:$0xff]   ;;  %v1736_v35 = vld [vmem:[%s2419_s0 + $0x164] ss:$8 sps:$4 sm:$0xff]   ;;  %v1738_v36 = vld [vmem:[%s2419_s0 + $0x60] ss:$8 sps:$4 sm:$0xff]  }
   0xd   :  { %v1739_v37 = vld [vmem:[%s2419_s0 + $0x160] ss:$8 sps:$4 sm:$0xff]   ;;  %v1740_v38 = vld [vmem:[%s2419_s0 + $0x74] ss:$8 sps:$4 sm:$0xff]   ;;  %v1744_v40 = vld [vmem:[%s2419_s0 + $0x70] ss:$8 sps:$4 sm:$0xff]  }
   0xe   :  { %671 = vmatpush1.bf16.msra.mxu0 %v1692_v4  ;;  %1682 = vmatpush1.bf16.msra.mxu1 %v1692_v4  ;;  %v1742_v39 = vld [vmem:[%s2419_s0 + $0x174] ss:$8 sps:$4 sm:$0xff]   ;;  %v1745_v41 = vld [vmem:[%s2419_s0 + $0x170] ss:$8 sps:$4 sm:$0xff]   ;;  %v1746_v42 = vld [vmem:[%s2419_s0 + $0x84] ss:$8 sps:$4 sm:$0xff]  }
   0xf   :  { %672 = vmatprep.subr.bf16.mxu0 %v1794_v0  ;;  %1674 = vmatprep.subr.bf16.mxu1 %v1794_v0  ;;  %v1748_v43 = vld [vmem:[%s2419_s0 + $0x184] ss:$8 sps:$4 sm:$0xff]   ;;  %v1750_v44 = vld [vmem:[%s2419_s0 + $0x80] ss:$8 sps:$4 sm:$0xff]   ;;  %v1752_v46 = vld [vmem:[%s2419_s0 + $0x94] ss:$8 sps:$4 sm:$0xff]  }
  0x10   :  { %v1751_v45 = vld [vmem:[%s2419_s0 + $0x180] ss:$8 sps:$4 sm:$0xff]   ;;  %v1754_v47 = vld [vmem:[%s2419_s0 + $0x194] ss:$8 sps:$4 sm:$0xff]   ;;  %v1756_v48 = vld [vmem:[%s2419_s0 + $0x90] ss:$8 sps:$4 sm:$0xff]  }
  0x11   :  { %v1757_v49 = vld [vmem:[%s2419_s0 + $0x190] ss:$8 sps:$4 sm:$0xff]   ;;  %v1758_v50 = vld [vmem:[%s2419_s0 + $0xa4] ss:$8 sps:$4 sm:$0xff]   ;;  %v1762_v52 = vld [vmem:[%s2419_s0 + $0xa0] ss:$8 sps:$4 sm:$0xff]  }
  0x12   :  { %673 = vmatpush1.bf16.msra.mxu0 %v1693_v7  ;;  %1683 = vmatpush1.bf16.msra.mxu1 %v1693_v7  ;;  %v1760_v51 = vld [vmem:[%s2419_s0 + $0x1a4] ss:$8 sps:$4 sm:$0xff]   ;;  %v1763_v53 = vld [vmem:[%s2419_s0 + $0x1a0] ss:$8 sps:$4 sm:$0xff]   ;;  %v1764_v54 = vld [vmem:[%s2419_s0 + $0xb4] ss:$8 sps:$4 sm:$0xff]  }
  0x13   :  { %674 = vmatprep.subr.bf16.mxu0 %v1794_v0  ;;  %1675 = vmatprep.subr.bf16.mxu1 %v1794_v0  ;;  %v1766_v55 = vld [vmem:[%s2419_s0 + $0x1b4] ss:$8 sps:$4 sm:$0xff]   ;;  %v1768_v56 = vld [vmem:[%s2419_s0 + $0xb0] ss:$8 sps:$4 sm:$0xff]   ;;  %v1770_v58 = vld [vmem:[%s2419_s0 + $0xc4] ss:$8 sps:$4 sm:$0xff]  }
  0x14   :  { %v1769_v57 = vld [vmem:[%s2419_s0 + $0x1b0] ss:$8 sps:$4 sm:$0xff]   ;;  %v1772_v59 = vld [vmem:[%s2419_s0 + $0x1c4] ss:$8 sps:$4 sm:$0xff]   ;;  %v1774_v60 = vld [vmem:[%s2419_s0 + $0xc0] ss:$8 sps:$4 sm:$0xff]  }
  0x15   :  { %v1775_v61 = vld [vmem:[%s2419_s0 + $0x1c0] ss:$8 sps:$4 sm:$0xff]   ;;  %v1776_v62 = vld [vmem:[%s2419_s0 + $0xd4] ss:$8 sps:$4 sm:$0xff]   ;;  %v1781_v1 = vld [vmem:[%s2419_s0 + $0x1d0] ss:$8 sps:$4 sm:$0xff]  }
  0x16   :  { %675 = vmatpush1.bf16.msra.mxu0 %v1694_v8  ;;  %1684 = vmatpush1.bf16.msra.mxu1 %v1694_v8  ;;  %v1778_v63 = vld [vmem:[%s2419_s0 + $0x1d4] ss:$8 sps:$4 sm:$0xff]   ;;  %v1782_v2 = vld [vmem:[%s2419_s0 + $0xe4] ss:$8 sps:$4 sm:$0xff]   ;;  %v1786_v4 = vld [vmem:[%s2419_s0 + $0xe0] ss:$8 sps:$4 sm:$0xff]  }
  0x17   :  { %676 = vmatprep.subr.bf16.mxu0 %v1794_v0  ;;  %1676 = vmatprep.subr.bf16.mxu1 %v1794_v0  ;;  %v1784_v3 = vld [vmem:[%s2419_s0 + $0x1e4] ss:$8 sps:$4 sm:$0xff]   ;;  %v1787_v5 = vld [vmem:[%s2419_s0 + $0x1e0] ss:$8 sps:$4 sm:$0xff]   ;;  %v1788_v6 = vld [vmem:[%s2419_s0 + $0xf4] ss:$8 sps:$4 sm:$0xff]  }
  0x18   :  { %v1790_v7 = vld [vmem:[%s2419_s0 + $0x1f4] ss:$8 sps:$4 sm:$0xff]   ;;  %v1792_v8 = vld [vmem:[%s2419_s0 + $0xf0] ss:$8 sps:$4 sm:$0xff]  }
  0x1a   :  { %677 = vmatpush1.bf16.msra.mxu0 %v1695_v9  ;;  %1685 = vmatpush1.bf16.msra.mxu1 %v1695_v9  ;;  %v1793_v9 = vld [vmem:[%s2419_s0 + $0x1f0] ss:$8 sps:$4 sm:$0xff]  }
  0x1b   :  { %678 = vmatprep.subr.bf16.mxu0 %v1794_v0  ;;  %1677 = vmatprep.subr.bf16.mxu1 %v1794_v0 }
  0x1e   :  { %679 = vmatpush1.bf16.msra.mxu0 %v1696_v10  ;;  %1686 = vmatpush1.bf16.msra.mxu1 %v1696_v10  ;;  %v1512_v10 = vld [vmem:[%s2420_s2] sm:$0xff]  }
  0x1f   :  { %680 = vmatprep.subr.bf16.mxu0 %v1794_v0  ;;  %1678 = vmatprep.subr.bf16.mxu1 %v1794_v0  ;;  %v1780_v0 = vld [vmem:[%s2419_s0 + $0xd0] ss:$8 sps:$4 sm:$0xff]  }
  0x22   :  { %681 = vmatpush1.bf16.msra.mxu0 %v1697_v11  ;;  %1687 = vmatpush1.bf16.msra.mxu1 %v1697_v11  ;;  %v1654_v11 = vld [vmem:[%s2420_s2 + $0x80] sm:$0xff]  }
  0x25   :  { %697 = vmatmul.mubr.bf16.vlgmr.msra.gmra.mrb[0].mxu0 %v1698_v12  ;;  %825 = vmatmul.mubr.bf16.vlgmr.msra.gmra.mrb[0].mxu1 %v1701_v13  ;;  %v1513_v12 = vunpack.c.l.bf16 %v1512_v10  ;;  %v1577_v13 = vunpack.c.l.bf16 %v1654_v11 }
  0x26   :  { %1352 = vmatprep.mubr.msk.bf16.mxu0 %vm567_vm0, %v1704_v14  ;;  %1368 = vmatprep.mubr.msk.bf16.mxu1 %vm567_vm0, %v1706_v15  ;;  %v1514_v14 = vunpack.c.h.bf16 %v1512_v10  ;;  %v1578_v15 = vunpack.c.h.bf16 %v1654_v11 }
  0x2d   :  { %705 = vmatmul.mubr.bf16.gmra.mrb[4].mxu0 %v1708_v16  ;;  %833 = vmatmul.mubr.bf16.gmra.mrb[4].mxu1 %v1709_v17 }
  0x2e   :  { %1353 = vmatprep.mubr.msk.bf16.mxu0 %vm567_vm0, %v1710_v18  ;;  %1369 = vmatprep.mubr.msk.bf16.mxu1 %vm567_vm0, %v1712_v19 }
  0x35   :  { %713 = vmatmul.mubr.bf16.gmra.mrb[8].mxu0 %v1714_v20  ;;  %841 = vmatmul.mubr.bf16.gmra.mrb[8].mxu1 %v1715_v21 }
  0x36   :  { %1354 = vmatprep.mubr.msk.bf16.mxu0 %vm567_vm0, %v1716_v22  ;;  %1370 = vmatprep.mubr.msk.bf16.mxu1 %vm567_vm0, %v1718_v23 }
  0x3d   :  { %721 = vmatmul.mubr.bf16.gmra.mrb[12].mxu0 %v1720_v24  ;;  %849 = vmatmul.mubr.bf16.gmra.mrb[12].mxu1 %v1721_v25  ;;  %v1639_v24 = vld [vmem:[%s2420_s2 + $0x8] sm:$0xff]  }
  0x3e   :  { %1355 = vmatprep.mubr.msk.bf16.mxu0 %vm567_vm0, %v1722_v26  ;;  %1371 = vmatprep.mubr.msk.bf16.mxu1 %vm567_vm0, %v1724_v27  ;;  %v1655_v25 = vld [vmem:[%s2420_s2 + $0x88] sm:$0xff]  }
  0x45   :  { %729 = vmatmul.mubr.bf16.gmra.mrb[16].mxu0 %v1726_v28  ;;  %857 = vmatmul.mubr.bf16.gmra.mrb[16].mxu1 %v1727_v29 }
  0x46   :  { %1356 = vmatprep.mubr.msk.bf16.mxu0 %vm567_vm0, %v1728_v30  ;;  %1372 = vmatprep.mubr.msk.bf16.mxu1 %vm567_vm0, %v1730_v31 }
  0x4d   :  { %737 = vmatmul.mubr.bf16.gmra.mrb[20].mxu0 %v1732_v32  ;;  %865 = vmatmul.mubr.bf16.gmra.mrb[20].mxu1 %v1733_v33 }
  0x4e   :  { %1357 = vmatprep.mubr.msk.bf16.mxu0 %vm567_vm0, %v1734_v34  ;;  %1373 = vmatprep.mubr.msk.bf16.mxu1 %vm567_vm0, %v1736_v35  ;;  %v1517_v34 = vunpack.c.l.bf16 %v1639_v24  ;;  %v1581_v35 = vunpack.c.l.bf16 %v1655_v25 }
  0x55   :  { %745 = vmatmul.mubr.bf16.gmra.mrb[24].mxu0 %v1738_v36  ;;  %873 = vmatmul.mubr.bf16.gmra.mrb[24].mxu1 %v1739_v37  ;;  %v1518_v36 = vunpack.c.h.bf16 %v1639_v24  ;;  %v1582_v37 = vunpack.c.h.bf16 %v1655_v25 }
  0x56   :  { %1358 = vmatprep.mubr.msk.bf16.mxu0 %vm567_vm0, %v1740_v38  ;;  %1374 = vmatprep.mubr.msk.bf16.mxu1 %vm567_vm0, %v1742_v39 }
  0x5d   :  { %753 = vmatmul.mubr.bf16.gmra.mrb[28].mxu0 %v1744_v40  ;;  %881 = vmatmul.mubr.bf16.gmra.mrb[28].mxu1 %v1745_v41 }
  0x5e   :  { %1359 = vmatprep.mubr.msk.bf16.mxu0 %vm567_vm0, %v1746_v42  ;;  %1375 = vmatprep.mubr.msk.bf16.mxu1 %vm567_vm0, %v1748_v43 }
  0x65   :  { %761 = vmatmul.mubr.bf16.gmra.mrb[32].mxu0 %v1750_v44  ;;  %889 = vmatmul.mubr.bf16.gmra.mrb[32].mxu1 %v1751_v45 }
  0x66   :  { %1360 = vmatprep.mubr.msk.bf16.mxu0 %vm567_vm0, %v1752_v46  ;;  %1376 = vmatprep.mubr.msk.bf16.mxu1 %vm567_vm0, %v1754_v47  ;;  %v1640_v46 = vld [vmem:[%s2420_s2 + $0x10] sm:$0xff]  }
  0x67   :  { %v1656_v47 = vld [vmem:[%s2420_s2 + $0x90] sm:$0xff]  }
  0x6d   :  { %769 = vmatmul.mubr.bf16.gmra.mrb[36].mxu0 %v1756_v48  ;;  %897 = vmatmul.mubr.bf16.gmra.mrb[36].mxu1 %v1757_v49 }
  0x6e   :  { %1361 = vmatprep.mubr.msk.bf16.mxu0 %vm567_vm0, %v1758_v50  ;;  %1377 = vmatprep.mubr.msk.bf16.mxu1 %vm567_vm0, %v1760_v51 }
  0x75   :  { %777 = vmatmul.mubr.bf16.gmra.mrb[40].mxu0 %v1762_v52  ;;  %905 = vmatmul.mubr.bf16.gmra.mrb[40].mxu1 %v1763_v53 }
  0x76   :  { %1362 = vmatprep.mubr.msk.bf16.mxu0 %vm567_vm0, %v1764_v54  ;;  %1378 = vmatprep.mubr.msk.bf16.mxu1 %vm567_vm0, %v1766_v55 }
  0x7d   :  { %785 = vmatmul.mubr.bf16.gmra.mrb[44].mxu0 %v1768_v56  ;;  %913 = vmatmul.mubr.bf16.gmra.mrb[44].mxu1 %v1769_v57  ;;  %v1521_v56 = vunpack.c.l.bf16 %v1640_v46  ;;  %v1585_v57 = vunpack.c.l.bf16 %v1656_v47 }
  0x7e   :  { %1363 = vmatprep.mubr.msk.bf16.mxu0 %vm567_vm0, %v1770_v58  ;;  %1379 = vmatprep.mubr.msk.bf16.mxu1 %vm567_vm0, %v1772_v59  ;;  %v1522_v58 = vunpack.c.h.bf16 %v1640_v46  ;;  %v1586_v59 = vunpack.c.h.bf16 %v1656_v47 }
  0x85   :  { %793 = vmatmul.mubr.bf16.gmra.mrb[48].mxu0 %v1774_v60  ;;  %921 = vmatmul.mubr.bf16.gmra.mrb[48].mxu1 %v1775_v61 }
  0x86   :  { %1364 = vmatprep.mubr.msk.bf16.mxu0 %vm567_vm0, %v1776_v62  ;;  %1380 = vmatprep.mubr.msk.bf16.mxu1 %vm567_vm0, %v1778_v63 }
  0x8d   :  { %801 = vmatmul.mubr.bf16.gmra.mrb[52].mxu0 %v1780_v0  ;;  %929 = vmatmul.mubr.bf16.gmra.mrb[52].mxu1 %v1781_v1 }
  0x8e   :  { %1365 = vmatprep.mubr.msk.bf16.mxu0 %vm567_vm0, %v1782_v2  ;;  %1381 = vmatprep.mubr.msk.bf16.mxu1 %vm567_vm0, %v1784_v3 }
  0x95   :  { %809 = vmatmul.mubr.bf16.gmra.mrb[56].mxu0 %v1786_v4  ;;  %937 = vmatmul.mubr.bf16.gmra.mrb[56].mxu1 %v1787_v5  ;;  %v1641_v4 = vld [vmem:[%s2420_s2 + $0x18] sm:$0xff]  }
  0x96   :  { %1366 = vmatprep.mubr.msk.bf16.mxu0 %vm567_vm0, %v1788_v6  ;;  %1382 = vmatprep.mubr.msk.bf16.mxu1 %vm567_vm0, %v1790_v7  ;;  %v1657_v5 = vld [vmem:[%s2420_s2 + $0x98] sm:$0xff]  }
  0x9d   :  { %817 = vmatmul.mubr.bf16.gmra.mrb[60].mxu0 %v1792_v8  ;;  %945 = vmatmul.mubr.bf16.gmra.mrb[60].mxu1 %v1793_v9 }
  0xf8   :  { %v698_v16 = vpop.f32.mrb[0].mxu0  ;;  %v826_v17 = vpop.f32.mrb[0].mxu1 }
  0xf9   :  { %v699_v18 = vadd.f32 %v1513_v12, %v698_v16  ;;  %v827_v19 = vadd.f32 %v1577_v13, %v826_v17  ;;  %v700_v20 = vpop.f32.mrb[1].mxu0  ;;  %v828_v21 = vpop.f32.mrb[1].mxu1  ;;  %v1526_v16 = vunpack.c.h.bf16 %v1641_v4  ;;  %v1590_v17 = vunpack.c.h.bf16 %v1657_v5 }
  0xfa   :  { %v701_v22 = vpop.f32.mrb[2].mxu0  ;;  %v829_v23 = vpop.f32.mrb[2].mxu1 }
  0xfb   :  { %v1447_v26 = vpack.c.bf16 %v699_v18, %v699_v18  ;;  %v1479_v27 = vpack.c.bf16 %v827_v19, %v827_v19  ;;  %v702_v28 = vadd.f32 %v1514_v14, %v701_v22  ;;  %v830_v29 = vadd.f32 %v1578_v15, %v829_v23  ;;  %v703_v30 = vpop.f32.mrb[3].mxu0  ;;  %v831_v31 = vpop.f32.mrb[3].mxu1 }
  0xfc   :  { %v1525_v14 = vunpack.c.l.bf16 %v1641_v4  ;;  %v1589_v15 = vunpack.c.l.bf16 %v1657_v5 }
  0xfd   :  { %1210 = vst.msk [vmem:[%s2421_s3] sm:$0xf] %vm1209_vm1, %v1447_v26  ;;  %1242 = vst.msk [vmem:[%s2421_s3 + $0x80] sm:$0xf] %vm1209_vm1, %v1479_v27  ;;  %v1448_v32 = vpack.c.bf16 %v702_v28, %v702_v28  ;;  %v1480_v33 = vpack.c.bf16 %v830_v29, %v830_v29  ;;  %v1642_v26 = vld [vmem:[%s2420_s2 + $0x20] sm:$0xff]  }
  0xfe   :  { %v1658_v27 = vld [vmem:[%s2420_s2 + $0xa0] sm:$0xff]  }
  0xff   :  { %1211 = vst.msk [vmem:[%s2421_s3 + $0x4] sm:$0xf] %vm1209_vm1, %v1448_v32  ;;  %1243 = vst.msk [vmem:[%s2421_s3 + $0x84] sm:$0xf] %vm1209_vm1, %v1480_v33 }
 0x100   :  { %v706_v38 = vpop.f32.mrb[4].mxu0  ;;  %v834_v39 = vpop.f32.mrb[4].mxu1 }
 0x101   :  { %v707_v40 = vadd.f32 %v1517_v34, %v706_v38  ;;  %v835_v41 = vadd.f32 %v1581_v35, %v834_v39  ;;  %v708_v42 = vpop.f32.mrb[5].mxu0  ;;  %v836_v43 = vpop.f32.mrb[5].mxu1  ;;  %v1530_v38 = vunpack.c.h.bf16 %v1642_v26  ;;  %v1594_v39 = vunpack.c.h.bf16 %v1658_v27 }
 0x102   :  { %v709_v44 = vpop.f32.mrb[6].mxu0  ;;  %v837_v45 = vpop.f32.mrb[6].mxu1 }
 0x103   :  { %v1449_v48 = vpack.c.bf16 %v707_v40, %v707_v40  ;;  %v1481_v49 = vpack.c.bf16 %v835_v41, %v835_v41  ;;  %v710_v50 = vadd.f32 %v1518_v36, %v709_v44  ;;  %v838_v51 = vadd.f32 %v1582_v37, %v837_v45  ;;  %v711_v52 = vpop.f32.mrb[7].mxu0  ;;  %v839_v53 = vpop.f32.mrb[7].mxu1 }
 0x104   :  { %v1529_v36 = vunpack.c.l.bf16 %v1642_v26  ;;  %v1593_v37 = vunpack.c.l.bf16 %v1658_v27 }
 0x105   :  { %1212 = vst.msk [vmem:[%s2421_s3 + $0x8] sm:$0xf] %vm1209_vm1, %v1449_v48  ;;  %1244 = vst.msk [vmem:[%s2421_s3 + $0x88] sm:$0xf] %vm1209_vm1, %v1481_v49  ;;  %v1450_v54 = vpack.c.bf16 %v710_v50, %v710_v50  ;;  %v1482_v55 = vpack.c.bf16 %v838_v51, %v838_v51  ;;  %v1643_v48 = vld [vmem:[%s2420_s2 + $0x28] sm:$0xff]  }
 0x106   :  { %v1659_v49 = vld [vmem:[%s2420_s2 + $0xa8] sm:$0xff]  }
 0x107   :  { %1213 = vst.msk [vmem:[%s2421_s3 + $0xc] sm:$0xf] %vm1209_vm1, %v1450_v54  ;;  %1245 = vst.msk [vmem:[%s2421_s3 + $0x8c] sm:$0xf] %vm1209_vm1, %v1482_v55 }
 0x108   :  { %v714_v60 = vpop.f32.mrb[8].mxu0  ;;  %v842_v61 = vpop.f32.mrb[8].mxu1 }
 0x109   :  { %v715_v62 = vadd.f32 %v1521_v56, %v714_v60  ;;  %v843_v63 = vadd.f32 %v1585_v57, %v842_v61  ;;  %v716_v0 = vpop.f32.mrb[9].mxu0  ;;  %v844_v1 = vpop.f32.mrb[9].mxu1  ;;  %v1534_v60 = vunpack.c.h.bf16 %v1643_v48  ;;  %v1598_v61 = vunpack.c.h.bf16 %v1659_v49 }
 0x10a   :  { %v717_v2 = vpop.f32.mrb[10].mxu0  ;;  %v845_v3 = vpop.f32.mrb[10].mxu1 }
 0x10b   :  { %v1451_v6 = vpack.c.bf16 %v715_v62, %v715_v62  ;;  %v1483_v7 = vpack.c.bf16 %v843_v63, %v843_v63  ;;  %v718_v8 = vadd.f32 %v1522_v58, %v717_v2  ;;  %v846_v9 = vadd.f32 %v1586_v59, %v845_v3  ;;  %v719_v10 = vpop.f32.mrb[11].mxu0  ;;  %v847_v11 = vpop.f32.mrb[11].mxu1 }
 0x10c   :  { %v1533_v58 = vunpack.c.l.bf16 %v1643_v48  ;;  %v1597_v59 = vunpack.c.l.bf16 %v1659_v49 }
 0x10d   :  { %1214 = vst.msk [vmem:[%s2421_s3 + $0x10] sm:$0xf] %vm1209_vm1, %v1451_v6  ;;  %1246 = vst.msk [vmem:[%s2421_s3 + $0x90] sm:$0xf] %vm1209_vm1, %v1483_v7  ;;  %v1452_v12 = vpack.c.bf16 %v718_v8, %v718_v8  ;;  %v1484_v13 = vpack.c.bf16 %v846_v9, %v846_v9  ;;  %v1644_v6 = vld [vmem:[%s2420_s2 + $0x30] sm:$0xff]  }
 0x10e   :  { %v1660_v7 = vld [vmem:[%s2420_s2 + $0xb0] sm:$0xff]  }
 0x10f   :  { %1215 = vst.msk [vmem:[%s2421_s3 + $0x14] sm:$0xf] %vm1209_vm1, %v1452_v12  ;;  %1247 = vst.msk [vmem:[%s2421_s3 + $0x94] sm:$0xf] %vm1209_vm1, %v1484_v13 }
 0x110   :  { %v722_v18 = vpop.f32.mrb[12].mxu0  ;;  %v850_v19 = vpop.f32.mrb[12].mxu1 }
 0x111   :  { %v723_v20 = vadd.f32 %v1525_v14, %v722_v18  ;;  %v851_v21 = vadd.f32 %v1589_v15, %v850_v19  ;;  %v724_v22 = vpop.f32.mrb[13].mxu0  ;;  %v852_v23 = vpop.f32.mrb[13].mxu1  ;;  %v1538_v18 = vunpack.c.h.bf16 %v1644_v6  ;;  %v1602_v19 = vunpack.c.h.bf16 %v1660_v7 }
 0x112   :  { %v725_v24 = vpop.f32.mrb[14].mxu0  ;;  %v853_v25 = vpop.f32.mrb[14].mxu1 }
 0x113   :  { %v1453_v28 = vpack.c.bf16 %v723_v20, %v723_v20  ;;  %v1485_v29 = vpack.c.bf16 %v851_v21, %v851_v21  ;;  %v726_v30 = vadd.f32 %v1526_v16, %v725_v24  ;;  %v854_v31 = vadd.f32 %v1590_v17, %v853_v25  ;;  %v727_v32 = vpop.f32.mrb[15].mxu0  ;;  %v855_v33 = vpop.f32.mrb[15].mxu1 }
 0x114   :  { %v1537_v16 = vunpack.c.l.bf16 %v1644_v6  ;;  %v1601_v17 = vunpack.c.l.bf16 %v1660_v7 }
 0x115   :  { %1216 = vst.msk [vmem:[%s2421_s3 + $0x18] sm:$0xf] %vm1209_vm1, %v1453_v28  ;;  %1248 = vst.msk [vmem:[%s2421_s3 + $0x98] sm:$0xf] %vm1209_vm1, %v1485_v29  ;;  %v1454_v34 = vpack.c.bf16 %v726_v30, %v726_v30  ;;  %v1486_v35 = vpack.c.bf16 %v854_v31, %v854_v31  ;;  %v1645_v28 = vld [vmem:[%s2420_s2 + $0x38] sm:$0xff]  }
 0x116   :  { %v1661_v29 = vld [vmem:[%s2420_s2 + $0xb8] sm:$0xff]  }
 0x117   :  { %1217 = vst.msk [vmem:[%s2421_s3 + $0x1c] sm:$0xf] %vm1209_vm1, %v1454_v34  ;;  %1249 = vst.msk [vmem:[%s2421_s3 + $0x9c] sm:$0xf] %vm1209_vm1, %v1486_v35 }
 0x118   :  { %v730_v40 = vpop.f32.mrb[16].mxu0  ;;  %v858_v41 = vpop.f32.mrb[16].mxu1 }
 0x119   :  { %v731_v42 = vadd.f32 %v1529_v36, %v730_v40  ;;  %v859_v43 = vadd.f32 %v1593_v37, %v858_v41  ;;  %v732_v44 = vpop.f32.mrb[17].mxu0  ;;  %v860_v45 = vpop.f32.mrb[17].mxu1  ;;  %v1542_v40 = vunpack.c.h.bf16 %v1645_v28  ;;  %v1606_v41 = vunpack.c.h.bf16 %v1661_v29 }
 0x11a   :  { %v733_v46 = vpop.f32.mrb[18].mxu0  ;;  %v861_v47 = vpop.f32.mrb[18].mxu1 }
 0x11b   :  { %v1455_v50 = vpack.c.bf16 %v731_v42, %v731_v42  ;;  %v1487_v51 = vpack.c.bf16 %v859_v43, %v859_v43  ;;  %v734_v52 = vadd.f32 %v1530_v38, %v733_v46  ;;  %v862_v53 = vadd.f32 %v1594_v39, %v861_v47  ;;  %v735_v54 = vpop.f32.mrb[19].mxu0  ;;  %v863_v55 = vpop.f32.mrb[19].mxu1 }
 0x11c   :  { %v1541_v38 = vunpack.c.l.bf16 %v1645_v28  ;;  %v1605_v39 = vunpack.c.l.bf16 %v1661_v29 }
 0x11d   :  { %1218 = vst.msk [vmem:[%s2421_s3 + $0x20] sm:$0xf] %vm1209_vm1, %v1455_v50  ;;  %1250 = vst.msk [vmem:[%s2421_s3 + $0xa0] sm:$0xf] %vm1209_vm1, %v1487_v51  ;;  %v1456_v56 = vpack.c.bf16 %v734_v52, %v734_v52  ;;  %v1488_v57 = vpack.c.bf16 %v862_v53, %v862_v53  ;;  %v1646_v50 = vld [vmem:[%s2420_s2 + $0x40] sm:$0xff]  }
 0x11e   :  { %v1662_v51 = vld [vmem:[%s2420_s2 + $0xc0] sm:$0xff]  }
 0x11f   :  { %1219 = vst.msk [vmem:[%s2421_s3 + $0x24] sm:$0xf] %vm1209_vm1, %v1456_v56  ;;  %1251 = vst.msk [vmem:[%s2421_s3 + $0xa4] sm:$0xf] %vm1209_vm1, %v1488_v57 }
 0x120   :  { %v738_v62 = vpop.f32.mrb[20].mxu0  ;;  %v866_v63 = vpop.f32.mrb[20].mxu1 }
 0x121   :  { %v739_v0 = vadd.f32 %v1533_v58, %v738_v62  ;;  %v867_v1 = vadd.f32 %v1597_v59, %v866_v63  ;;  %v740_v2 = vpop.f32.mrb[21].mxu0  ;;  %v868_v3 = vpop.f32.mrb[21].mxu1  ;;  %v1546_v62 = vunpack.c.h.bf16 %v1646_v50  ;;  %v1610_v63 = vunpack.c.h.bf16 %v1662_v51 }
 0x122   :  { %v741_v4 = vpop.f32.mrb[22].mxu0  ;;  %v869_v5 = vpop.f32.mrb[22].mxu1 }
 0x123   :  { %v1457_v8 = vpack.c.bf16 %v739_v0, %v739_v0  ;;  %v1489_v9 = vpack.c.bf16 %v867_v1, %v867_v1  ;;  %v742_v10 = vadd.f32 %v1534_v60, %v741_v4  ;;  %v870_v11 = vadd.f32 %v1598_v61, %v869_v5  ;;  %v743_v12 = vpop.f32.mrb[23].mxu0  ;;  %v871_v13 = vpop.f32.mrb[23].mxu1 }
 0x124   :  { %v1545_v60 = vunpack.c.l.bf16 %v1646_v50  ;;  %v1609_v61 = vunpack.c.l.bf16 %v1662_v51 }
 0x125   :  { %1220 = vst.msk [vmem:[%s2421_s3 + $0x28] sm:$0xf] %vm1209_vm1, %v1457_v8  ;;  %1252 = vst.msk [vmem:[%s2421_s3 + $0xa8] sm:$0xf] %vm1209_vm1, %v1489_v9  ;;  %v1458_v14 = vpack.c.bf16 %v742_v10, %v742_v10  ;;  %v1490_v15 = vpack.c.bf16 %v870_v11, %v870_v11  ;;  %v1647_v8 = vld [vmem:[%s2420_s2 + $0x48] sm:$0xff]  }
 0x126   :  { %v1663_v9 = vld [vmem:[%s2420_s2 + $0xc8] sm:$0xff]  }
 0x127   :  { %1221 = vst.msk [vmem:[%s2421_s3 + $0x2c] sm:$0xf] %vm1209_vm1, %v1458_v14  ;;  %1253 = vst.msk [vmem:[%s2421_s3 + $0xac] sm:$0xf] %vm1209_vm1, %v1490_v15 }
 0x128   :  { %v746_v20 = vpop.f32.mrb[24].mxu0  ;;  %v874_v21 = vpop.f32.mrb[24].mxu1 }
 0x129   :  { %v747_v22 = vadd.f32 %v1537_v16, %v746_v20  ;;  %v875_v23 = vadd.f32 %v1601_v17, %v874_v21  ;;  %v748_v24 = vpop.f32.mrb[25].mxu0  ;;  %v876_v25 = vpop.f32.mrb[25].mxu1  ;;  %v1550_v20 = vunpack.c.h.bf16 %v1647_v8  ;;  %v1614_v21 = vunpack.c.h.bf16 %v1663_v9 }
 0x12a   :  { %v749_v26 = vpop.f32.mrb[26].mxu0  ;;  %v877_v27 = vpop.f32.mrb[26].mxu1 }
 0x12b   :  { %v1459_v30 = vpack.c.bf16 %v747_v22, %v747_v22  ;;  %v1491_v31 = vpack.c.bf16 %v875_v23, %v875_v23  ;;  %v750_v32 = vadd.f32 %v1538_v18, %v749_v26  ;;  %v878_v33 = vadd.f32 %v1602_v19, %v877_v27  ;;  %v751_v34 = vpop.f32.mrb[27].mxu0  ;;  %v879_v35 = vpop.f32.mrb[27].mxu1 }
 0x12c   :  { %v1549_v18 = vunpack.c.l.bf16 %v1647_v8  ;;  %v1613_v19 = vunpack.c.l.bf16 %v1663_v9 }
 0x12d   :  { %1222 = vst.msk [vmem:[%s2421_s3 + $0x30] sm:$0xf] %vm1209_vm1, %v1459_v30  ;;  %1254 = vst.msk [vmem:[%s2421_s3 + $0xb0] sm:$0xf] %vm1209_vm1, %v1491_v31  ;;  %v1460_v36 = vpack.c.bf16 %v750_v32, %v750_v32  ;;  %v1492_v37 = vpack.c.bf16 %v878_v33, %v878_v33  ;;  %v1648_v30 = vld [vmem:[%s2420_s2 + $0x50] sm:$0xff]  }
 0x12e   :  { %v1664_v31 = vld [vmem:[%s2420_s2 + $0xd0] sm:$0xff]  }
 0x12f   :  { %1223 = vst.msk [vmem:[%s2421_s3 + $0x34] sm:$0xf] %vm1209_vm1, %v1460_v36  ;;  %1255 = vst.msk [vmem:[%s2421_s3 + $0xb4] sm:$0xf] %vm1209_vm1, %v1492_v37 }
 0x130   :  { %v754_v42 = vpop.f32.mrb[28].mxu0  ;;  %v882_v43 = vpop.f32.mrb[28].mxu1 }
 0x131   :  { %v755_v44 = vadd.f32 %v1541_v38, %v754_v42  ;;  %v883_v45 = vadd.f32 %v1605_v39, %v882_v43  ;;  %v756_v46 = vpop.f32.mrb[29].mxu0  ;;  %v884_v47 = vpop.f32.mrb[29].mxu1  ;;  %v1554_v42 = vunpack.c.h.bf16 %v1648_v30  ;;  %v1618_v43 = vunpack.c.h.bf16 %v1664_v31 }
 0x132   :  { %v757_v48 = vpop.f32.mrb[30].mxu0  ;;  %v885_v49 = vpop.f32.mrb[30].mxu1 }
 0x133   :  { %v1461_v52 = vpack.c.bf16 %v755_v44, %v755_v44  ;;  %v1493_v53 = vpack.c.bf16 %v883_v45, %v883_v45  ;;  %v758_v54 = vadd.f32 %v1542_v40, %v757_v48  ;;  %v886_v55 = vadd.f32 %v1606_v41, %v885_v49  ;;  %v759_v56 = vpop.f32.mrb[31].mxu0  ;;  %v887_v57 = vpop.f32.mrb[31].mxu1 }
 0x134   :  { %v1553_v40 = vunpack.c.l.bf16 %v1648_v30  ;;  %v1617_v41 = vunpack.c.l.bf16 %v1664_v31 }
 0x135   :  { %1224 = vst.msk [vmem:[%s2421_s3 + $0x38] sm:$0xf] %vm1209_vm1, %v1461_v52  ;;  %1256 = vst.msk [vmem:[%s2421_s3 + $0xb8] sm:$0xf] %vm1209_vm1, %v1493_v53  ;;  %v1462_v58 = vpack.c.bf16 %v758_v54, %v758_v54  ;;  %v1494_v59 = vpack.c.bf16 %v886_v55, %v886_v55  ;;  %v1649_v52 = vld [vmem:[%s2420_s2 + $0x58] sm:$0xff]  }
 0x136   :  { %v1665_v53 = vld [vmem:[%s2420_s2 + $0xd8] sm:$0xff]  }
 0x137   :  { %1225 = vst.msk [vmem:[%s2421_s3 + $0x3c] sm:$0xf] %vm1209_vm1, %v1462_v58  ;;  %1257 = vst.msk [vmem:[%s2421_s3 + $0xbc] sm:$0xf] %vm1209_vm1, %v1494_v59 }
 0x138   :  { %v762_v0 = vpop.f32.mrb[32].mxu0  ;;  %v890_v1 = vpop.f32.mrb[32].mxu1 }
 0x139   :  { %v763_v2 = vadd.f32 %v1545_v60, %v762_v0  ;;  %v891_v3 = vadd.f32 %v1609_v61, %v890_v1  ;;  %v764_v4 = vpop.f32.mrb[33].mxu0  ;;  %v892_v5 = vpop.f32.mrb[33].mxu1  ;;  %v1558_v0 = vunpack.c.h.bf16 %v1649_v52  ;;  %v1622_v1 = vunpack.c.h.bf16 %v1665_v53 }
 0x13a   :  { %v765_v6 = vpop.f32.mrb[34].mxu0  ;;  %v893_v7 = vpop.f32.mrb[34].mxu1 }
 0x13b   :  { %v1463_v10 = vpack.c.bf16 %v763_v2, %v763_v2  ;;  %v1495_v11 = vpack.c.bf16 %v891_v3, %v891_v3  ;;  %v766_v12 = vadd.f32 %v1546_v62, %v765_v6  ;;  %v894_v13 = vadd.f32 %v1610_v63, %v893_v7  ;;  %v767_v14 = vpop.f32.mrb[35].mxu0  ;;  %v895_v15 = vpop.f32.mrb[35].mxu1 }
 0x13c   :  { %v1557_v62 = vunpack.c.l.bf16 %v1649_v52  ;;  %v1621_v63 = vunpack.c.l.bf16 %v1665_v53 }
 0x13d   :  { %1226 = vst.msk [vmem:[%s2421_s3 + $0x40] sm:$0xf] %vm1209_vm1, %v1463_v10  ;;  %1258 = vst.msk [vmem:[%s2421_s3 + $0xc0] sm:$0xf] %vm1209_vm1, %v1495_v11  ;;  %v1464_v16 = vpack.c.bf16 %v766_v12, %v766_v12  ;;  %v1496_v17 = vpack.c.bf16 %v894_v13, %v894_v13  ;;  %v1650_v10 = vld [vmem:[%s2420_s2 + $0x60] sm:$0xff]  }
 0x13e   :  { %v1666_v11 = vld [vmem:[%s2420_s2 + $0xe0] sm:$0xff]  }
 0x13f   :  { %1227 = vst.msk [vmem:[%s2421_s3 + $0x44] sm:$0xf] %vm1209_vm1, %v1464_v16  ;;  %1259 = vst.msk [vmem:[%s2421_s3 + $0xc4] sm:$0xf] %vm1209_vm1, %v1496_v17 }
 0x140   :  { %v770_v22 = vpop.f32.mrb[36].mxu0  ;;  %v898_v23 = vpop.f32.mrb[36].mxu1 }
 0x141   :  { %v771_v24 = vadd.f32 %v1549_v18, %v770_v22  ;;  %v899_v25 = vadd.f32 %v1613_v19, %v898_v23  ;;  %v772_v26 = vpop.f32.mrb[37].mxu0  ;;  %v900_v27 = vpop.f32.mrb[37].mxu1  ;;  %v1562_v22 = vunpack.c.h.bf16 %v1650_v10  ;;  %v1626_v23 = vunpack.c.h.bf16 %v1666_v11 }
 0x142   :  { %v773_v28 = vpop.f32.mrb[38].mxu0  ;;  %v901_v29 = vpop.f32.mrb[38].mxu1 }
 0x143   :  { %v1465_v32 = vpack.c.bf16 %v771_v24, %v771_v24  ;;  %v1497_v33 = vpack.c.bf16 %v899_v25, %v899_v25  ;;  %v774_v34 = vadd.f32 %v1550_v20, %v773_v28  ;;  %v902_v35 = vadd.f32 %v1614_v21, %v901_v29  ;;  %v775_v36 = vpop.f32.mrb[39].mxu0  ;;  %v903_v37 = vpop.f32.mrb[39].mxu1 }
 0x144   :  { %v1561_v20 = vunpack.c.l.bf16 %v1650_v10  ;;  %v1625_v21 = vunpack.c.l.bf16 %v1666_v11 }
 0x145   :  { %1228 = vst.msk [vmem:[%s2421_s3 + $0x48] sm:$0xf] %vm1209_vm1, %v1465_v32  ;;  %1260 = vst.msk [vmem:[%s2421_s3 + $0xc8] sm:$0xf] %vm1209_vm1, %v1497_v33  ;;  %v1466_v38 = vpack.c.bf16 %v774_v34, %v774_v34  ;;  %v1498_v39 = vpack.c.bf16 %v902_v35, %v902_v35  ;;  %v1651_v32 = vld [vmem:[%s2420_s2 + $0x68] sm:$0xff]  }
 0x146   :  { %v1667_v33 = vld [vmem:[%s2420_s2 + $0xe8] sm:$0xff]  }
 0x147   :  { %1229 = vst.msk [vmem:[%s2421_s3 + $0x4c] sm:$0xf] %vm1209_vm1, %v1466_v38  ;;  %1261 = vst.msk [vmem:[%s2421_s3 + $0xcc] sm:$0xf] %vm1209_vm1, %v1498_v39 }
 0x148   :  { %v778_v44 = vpop.f32.mrb[40].mxu0  ;;  %v906_v45 = vpop.f32.mrb[40].mxu1 }
 0x149   :  { %v779_v46 = vadd.f32 %v1553_v40, %v778_v44  ;;  %v907_v47 = vadd.f32 %v1617_v41, %v906_v45  ;;  %v780_v48 = vpop.f32.mrb[41].mxu0  ;;  %v908_v49 = vpop.f32.mrb[41].mxu1  ;;  %v1566_v44 = vunpack.c.h.bf16 %v1651_v32  ;;  %v1630_v45 = vunpack.c.h.bf16 %v1667_v33 }
 0x14a   :  { %v781_v50 = vpop.f32.mrb[42].mxu0  ;;  %v909_v51 = vpop.f32.mrb[42].mxu1 }
 0x14b   :  { %v1467_v54 = vpack.c.bf16 %v779_v46, %v779_v46  ;;  %v1499_v55 = vpack.c.bf16 %v907_v47, %v907_v47  ;;  %v782_v56 = vadd.f32 %v1554_v42, %v781_v50  ;;  %v910_v57 = vadd.f32 %v1618_v43, %v909_v51  ;;  %v783_v58 = vpop.f32.mrb[43].mxu0  ;;  %v911_v59 = vpop.f32.mrb[43].mxu1 }
 0x14c   :  { %v1565_v42 = vunpack.c.l.bf16 %v1651_v32  ;;  %v1629_v43 = vunpack.c.l.bf16 %v1667_v33 }
 0x14d   :  { %1230 = vst.msk [vmem:[%s2421_s3 + $0x50] sm:$0xf] %vm1209_vm1, %v1467_v54  ;;  %1262 = vst.msk [vmem:[%s2421_s3 + $0xd0] sm:$0xf] %vm1209_vm1, %v1499_v55  ;;  %v1468_v60 = vpack.c.bf16 %v782_v56, %v782_v56  ;;  %v1500_v61 = vpack.c.bf16 %v910_v57, %v910_v57  ;;  %v1652_v54 = vld [vmem:[%s2420_s2 + $0x70] sm:$0xff]  }
 0x14e   :  { %v1668_v55 = vld [vmem:[%s2420_s2 + $0xf0] sm:$0xff]  }
 0x14f   :  { %1231 = vst.msk [vmem:[%s2421_s3 + $0x54] sm:$0xf] %vm1209_vm1, %v1468_v60  ;;  %1263 = vst.msk [vmem:[%s2421_s3 + $0xd4] sm:$0xf] %vm1209_vm1, %v1500_v61 }
 0x150   :  { %v786_v2 = vpop.f32.mrb[44].mxu0  ;;  %v914_v3 = vpop.f32.mrb[44].mxu1 }
 0x151   :  { %v787_v4 = vadd.f32 %v1557_v62, %v786_v2  ;;  %v915_v5 = vadd.f32 %v1621_v63, %v914_v3  ;;  %v788_v6 = vpop.f32.mrb[45].mxu0  ;;  %v916_v7 = vpop.f32.mrb[45].mxu1  ;;  %v1570_v2 = vunpack.c.h.bf16 %v1652_v54  ;;  %v1634_v3 = vunpack.c.h.bf16 %v1668_v55 }
 0x152   :  { %v789_v8 = vpop.f32.mrb[46].mxu0  ;;  %v917_v9 = vpop.f32.mrb[46].mxu1 }
 0x153   :  { %v1469_v12 = vpack.c.bf16 %v787_v4, %v787_v4  ;;  %v1501_v13 = vpack.c.bf16 %v915_v5, %v915_v5  ;;  %v790_v14 = vadd.f32 %v1558_v0, %v789_v8  ;;  %v918_v15 = vadd.f32 %v1622_v1, %v917_v9  ;;  %v791_v16 = vpop.f32.mrb[47].mxu0  ;;  %v919_v17 = vpop.f32.mrb[47].mxu1 }
 0x154   :  { %v1569_v0 = vunpack.c.l.bf16 %v1652_v54  ;;  %v1633_v1 = vunpack.c.l.bf16 %v1668_v55 }
 0x155   :  { %1232 = vst.msk [vmem:[%s2421_s3 + $0x58] sm:$0xf] %vm1209_vm1, %v1469_v12  ;;  %1264 = vst.msk [vmem:[%s2421_s3 + $0xd8] sm:$0xf] %vm1209_vm1, %v1501_v13  ;;  %v1470_v18 = vpack.c.bf16 %v790_v14, %v790_v14  ;;  %v1502_v19 = vpack.c.bf16 %v918_v15, %v918_v15  ;;  %v1653_v12 = vld [vmem:[%s2420_s2 + $0x78] sm:$0xff]  }
 0x156   :  { %v1669_v13 = vld [vmem:[%s2420_s2 + $0xf8] sm:$0xff]  }
 0x157   :  { %1233 = vst.msk [vmem:[%s2421_s3 + $0x5c] sm:$0xf] %vm1209_vm1, %v1470_v18  ;;  %1265 = vst.msk [vmem:[%s2421_s3 + $0xdc] sm:$0xf] %vm1209_vm1, %v1502_v19 }
 0x158   :  { %v794_v24 = vpop.f32.mrb[48].mxu0  ;;  %v922_v25 = vpop.f32.mrb[48].mxu1 }
 0x159   :  { %v795_v26 = vadd.f32 %v1561_v20, %v794_v24  ;;  %v923_v27 = vadd.f32 %v1625_v21, %v922_v25  ;;  %v796_v28 = vpop.f32.mrb[49].mxu0  ;;  %v924_v29 = vpop.f32.mrb[49].mxu1  ;;  %v1574_v24 = vunpack.c.h.bf16 %v1653_v12  ;;  %v1638_v25 = vunpack.c.h.bf16 %v1669_v13 }
 0x15a   :  { %v797_v30 = vpop.f32.mrb[50].mxu0  ;;  %v925_v31 = vpop.f32.mrb[50].mxu1 }
 0x15b   :  { %v1471_v34 = vpack.c.bf16 %v795_v26, %v795_v26  ;;  %v1503_v35 = vpack.c.bf16 %v923_v27, %v923_v27  ;;  %v798_v36 = vadd.f32 %v1562_v22, %v797_v30  ;;  %v926_v37 = vadd.f32 %v1626_v23, %v925_v31  ;;  %v799_v38 = vpop.f32.mrb[51].mxu0  ;;  %v927_v39 = vpop.f32.mrb[51].mxu1 }
 0x15c   :  { %v1573_v22 = vunpack.c.l.bf16 %v1653_v12  ;;  %v1637_v23 = vunpack.c.l.bf16 %v1669_v13 }
 0x15d   :  { %1234 = vst.msk [vmem:[%s2421_s3 + $0x60] sm:$0xf] %vm1209_vm1, %v1471_v34  ;;  %1266 = vst.msk [vmem:[%s2421_s3 + $0xe0] sm:$0xf] %vm1209_vm1, %v1503_v35  ;;  %v1472_v40 = vpack.c.bf16 %v798_v36, %v798_v36  ;;  %v1504_v41 = vpack.c.bf16 %v926_v37, %v926_v37 }
 0x15f   :  { %1235 = vst.msk [vmem:[%s2421_s3 + $0x64] sm:$0xf] %vm1209_vm1, %v1472_v40  ;;  %1267 = vst.msk [vmem:[%s2421_s3 + $0xe4] sm:$0xf] %vm1209_vm1, %v1504_v41 }
 0x160   :  { %v802_v46 = vpop.f32.mrb[52].mxu0  ;;  %v930_v47 = vpop.f32.mrb[52].mxu1 }
 0x161   :  { %v803_v48 = vadd.f32 %v1565_v42, %v802_v46  ;;  %v931_v49 = vadd.f32 %v1629_v43, %v930_v47  ;;  %v804_v50 = vpop.f32.mrb[53].mxu0  ;;  %v932_v51 = vpop.f32.mrb[53].mxu1 }
 0x162   :  { %v805_v52 = vpop.f32.mrb[54].mxu0  ;;  %v933_v53 = vpop.f32.mrb[54].mxu1 }
 0x163   :  { %v1473_v56 = vpack.c.bf16 %v803_v48, %v803_v48  ;;  %v1505_v57 = vpack.c.bf16 %v931_v49, %v931_v49  ;;  %v806_v58 = vadd.f32 %v1566_v44, %v805_v52  ;;  %v934_v59 = vadd.f32 %v1630_v45, %v933_v53  ;;  %v807_v60 = vpop.f32.mrb[55].mxu0  ;;  %v935_v61 = vpop.f32.mrb[55].mxu1 }
 0x165   :  { %1236 = vst.msk [vmem:[%s2421_s3 + $0x68] sm:$0xf] %vm1209_vm1, %v1473_v56  ;;  %1268 = vst.msk [vmem:[%s2421_s3 + $0xe8] sm:$0xf] %vm1209_vm1, %v1505_v57  ;;  %v1474_v62 = vpack.c.bf16 %v806_v58, %v806_v58  ;;  %v1506_v63 = vpack.c.bf16 %v934_v59, %v934_v59 }
 0x167   :  { %1237 = vst.msk [vmem:[%s2421_s3 + $0x6c] sm:$0xf] %vm1209_vm1, %v1474_v62  ;;  %1269 = vst.msk [vmem:[%s2421_s3 + $0xec] sm:$0xf] %vm1209_vm1, %v1506_v63 }
 0x168   :  { %v810_v4 = vpop.f32.mrb[56].mxu0  ;;  %v938_v5 = vpop.f32.mrb[56].mxu1 }
 0x169   :  { %v811_v6 = vadd.f32 %v1569_v0, %v810_v4  ;;  %v939_v7 = vadd.f32 %v1633_v1, %v938_v5  ;;  %v812_v8 = vpop.f32.mrb[57].mxu0  ;;  %v940_v9 = vpop.f32.mrb[57].mxu1 }
 0x16a   :  { %v813_v10 = vpop.f32.mrb[58].mxu0  ;;  %v941_v11 = vpop.f32.mrb[58].mxu1 }
 0x16b   :  { %v1475_v14 = vpack.c.bf16 %v811_v6, %v811_v6  ;;  %v1507_v15 = vpack.c.bf16 %v939_v7, %v939_v7  ;;  %v814_v16 = vadd.f32 %v1570_v2, %v813_v10  ;;  %v942_v17 = vadd.f32 %v1634_v3, %v941_v11  ;;  %v815_v18 = vpop.f32.mrb[59].mxu0  ;;  %v943_v19 = vpop.f32.mrb[59].mxu1 }
 0x16d   :  { %1238 = vst.msk [vmem:[%s2421_s3 + $0x70] sm:$0xf] %vm1209_vm1, %v1475_v14  ;;  %1270 = vst.msk [vmem:[%s2421_s3 + $0xf0] sm:$0xf] %vm1209_vm1, %v1507_v15  ;;  %v1476_v20 = vpack.c.bf16 %v814_v16, %v814_v16  ;;  %v1508_v21 = vpack.c.bf16 %v942_v17, %v942_v17 }
 0x16f   :  { %1239 = vst.msk [vmem:[%s2421_s3 + $0x74] sm:$0xf] %vm1209_vm1, %v1476_v20  ;;  %1271 = vst.msk [vmem:[%s2421_s3 + $0xf4] sm:$0xf] %vm1209_vm1, %v1508_v21 }
 0x170   :  { %v818_v26 = vpop.f32.mrb[60].mxu0  ;;  %v946_v27 = vpop.f32.mrb[60].mxu1 }
 0x171   :  { %v819_v28 = vadd.f32 %v1573_v22, %v818_v26  ;;  %v947_v29 = vadd.f32 %v1637_v23, %v946_v27  ;;  %v820_v30 = vpop.f32.mrb[61].mxu0  ;;  %v948_v31 = vpop.f32.mrb[61].mxu1 }
 0x172   :  { %v821_v32 = vpop.f32.mrb[62].mxu0  ;;  %v949_v33 = vpop.f32.mrb[62].mxu1 }
 0x173   :  { %v1477_v34 = vpack.c.bf16 %v819_v28, %v819_v28  ;;  %v1509_v35 = vpack.c.bf16 %v947_v29, %v947_v29  ;;  %v822_v36 = vadd.f32 %v1574_v24, %v821_v32  ;;  %v950_v37 = vadd.f32 %v1638_v25, %v949_v33  ;;  %v823_v38 = vpop.f32.mrb[63].mxu0  ;;  %v951_v39 = vpop.f32.mrb[63].mxu1 }
 0x175   :  { %1240 = vst.msk [vmem:[%s2421_s3 + $0x78] sm:$0xf] %vm1209_vm1, %v1477_v34  ;;  %1272 = vst.msk [vmem:[%s2421_s3 + $0xf8] sm:$0xf] %vm1209_vm1, %v1509_v35  ;;  %v1478_v40 = vpack.c.bf16 %v822_v36, %v822_v36  ;;  %v1510_v41 = vpack.c.bf16 %v950_v37, %v950_v37 }
 0x177   :  { %1241 = vst.msk [vmem:[%s2421_s3 + $0x7c] sm:$0xf] %vm1209_vm1, %v1478_v40  ;;  %1273 = vst.msk [vmem:[%s2421_s3 + $0xfc] sm:$0xf] %vm1209_vm1, %v1510_v41 }

// kernel: _forward.14
= control target key start
LH: loop header
LB: loop body
LE: loop exit
PB: predicated region body
PF: predicated region fallthrough
CT: control target
= control target key end

     0   :  { %v566_v0 = vmov 0   ;;  %vm178_vm0 = vcmask 130048   ;;  %vm426_vm1 = vcmask 257024   ;;  %s781_s1 = inlined_call_operand.vmem [shape: bf16[144,32], index: 1, kind: input, shape index: {}]   ;;  %s782_s0 = inlined_call_operand.vmem [shape: bf16[128,144], index: 0, kind: input, shape index: {}]   ;;  %s783_s2 = inlined_call_operand.vmem [shape: f32[1,32], index: 2, kind: input, shape index: {}]   ;;  %s784_s3 = inlined_call_operand.vmem [shape: f32[1,32], index: 3, kind: input, shape index: {}]   ;;  %s785_s4 = inlined_call_operand.vmem [shape: bf16[128,32], index: 4, kind: output, shape index: {}]  }
   0x1   :  { %203 = vmatprep.subr.bf16.mxu0 %v566_v0  ;;  %514 = vmatprep.subr.bf16.mxu1 %v566_v0  ;;  %v533_v1 = vld [vmem:[%s781_s1] sm:$0xff]   ;;  %v534_v2 = vld [vmem:[%s781_s1 + $0x8] sm:$0xff]   ;;  %v535_v3 = vld [vmem:[%s781_s1 + $0x10] sm:$0xff]  }
   0x2   :  { %204 = vmatpush1.bf16.msra.mxu0 %v533_v1  ;;  %523 = vmatpush1.bf16.msra.mxu1 %v533_v1  ;;  %v536_v4 = vld [vmem:[%s781_s1 + $0x18] sm:$0xff]   ;;  %v544_v5 = vld [vmem:[%s782_s0 + $0x4] ss:$8 sps:$4 sm:$0xff]   ;;  %v539_v9 = vld [vmem:[%s781_s1 + $0x30] sm:$0xff]  }
   0x3   :  { %205 = vmatprep.subr.bf16.mxu0 %v566_v0  ;;  %515 = vmatprep.subr.bf16.mxu1 %v566_v0  ;;  %v547_v6 = vld [vmem:[%s782_s0 + $0x44] ss:$8 sps:$4 sm:$0xff]   ;;  %v540_v10 = vld [vmem:[%s781_s1 + $0x38] sm:$0xff]   ;;  %v542_v12 = vld [vmem:[%s782_s0] ss:$8 sps:$4 sm:$0xff]  }
   0x4   :  { %472 = vmatprep.mubr.msk.bf16.mxu0 %vm178_vm0, %v544_v5  ;;  %476 = vmatprep.mubr.msk.bf16.mxu1 %vm178_vm0, %v547_v6  ;;  %v537_v7 = vld [vmem:[%s781_s1 + $0x20] sm:$0xff]   ;;  %v538_v8 = vld [vmem:[%s781_s1 + $0x28] sm:$0xff]   ;;  %v548_v14 = vld [vmem:[%s782_s0 + $0x14] ss:$8 sps:$4 sm:$0xff]  }
   0x5   :  { %v541_v11 = vld [vmem:[%s781_s1 + $0x40] sm:$0xff]   ;;  %v550_v15 = vld [vmem:[%s782_s0 + $0x54] ss:$8 sps:$4 sm:$0xff]   ;;  %v552_v16 = vld [vmem:[%s782_s0 + $0x10] ss:$8 sps:$4 sm:$0xff]  }
   0x6   :  { %206 = vmatpush1.bf16.msra.mxu0 %v534_v2  ;;  %524 = vmatpush1.bf16.msra.mxu1 %v534_v2  ;;  %v545_v13 = vld [vmem:[%s782_s0 + $0x40] ss:$8 sps:$4 sm:$0xff]   ;;  %v553_v17 = vld [vmem:[%s782_s0 + $0x50] ss:$8 sps:$4 sm:$0xff]   ;;  %v554_v18 = vld [vmem:[%s782_s0 + $0x24] ss:$8 sps:$4 sm:$0xff]  }
   0x7   :  { %207 = vmatprep.subr.bf16.mxu0 %v566_v0  ;;  %516 = vmatprep.subr.bf16.mxu1 %v566_v0  ;;  %v556_v19 = vld [vmem:[%s782_s0 + $0x64] ss:$8 sps:$4 sm:$0xff]   ;;  %v558_v20 = vld [vmem:[%s782_s0 + $0x20] ss:$8 sps:$4 sm:$0xff]   ;;  %v560_v22 = vld [vmem:[%s782_s0 + $0x34] ss:$8 sps:$4 sm:$0xff]  }
   0x8   :  { %v559_v21 = vld [vmem:[%s782_s0 + $0x60] ss:$8 sps:$4 sm:$0xff]   ;;  %v562_v23 = vld [vmem:[%s782_s0 + $0x74] ss:$8 sps:$4 sm:$0xff]   ;;  %v564_v24 = vld [vmem:[%s782_s0 + $0x30] ss:$8 sps:$4 sm:$0xff]  }
   0x9   :  { %v565_v25 = vld [vmem:[%s782_s0 + $0x70] ss:$8 sps:$4 sm:$0xff]   ;;  %v678_v26 = vld [vmem:[%s783_s2] ss:$0 sm:$0xff] }
   0xa   :  { %208 = vmatpush1.bf16.msra.mxu0 %v535_v3  ;;  %525 = vmatpush1.bf16.msra.mxu1 %v535_v3  ;;  %v683_v28 = vld [vmem:[%s784_s3] ss:$0 sm:$0xff] }
   0xb   :  { %209 = vmatprep.subr.bf16.mxu0 %v566_v0  ;;  %517 = vmatprep.subr.bf16.mxu1 %v566_v0 }
   0xe   :  { %210 = vmatpush1.bf16.msra.mxu0 %v536_v4  ;;  %526 = vmatpush1.bf16.msra.mxu1 %v536_v4 }
   0xf   :  { %211 = vmatprep.subr.bf16.mxu0 %v566_v0  ;;  %518 = vmatprep.subr.bf16.mxu1 %v566_v0 }
  0x12   :  { %212 = vmatpush1.bf16.msra.mxu0 %v537_v7  ;;  %527 = vmatpush1.bf16.msra.mxu1 %v537_v7 }
  0x13   :  { %213 = vmatprep.subr.bf16.mxu0 %v566_v0  ;;  %519 = vmatprep.subr.bf16.mxu1 %v566_v0 }
  0x16   :  { %214 = vmatpush1.bf16.msra.mxu0 %v538_v8  ;;  %528 = vmatpush1.bf16.msra.mxu1 %v538_v8 }
  0x17   :  { %215 = vmatprep.subr.bf16.mxu0 %v566_v0  ;;  %520 = vmatprep.subr.bf16.mxu1 %v566_v0 }
  0x1a   :  { %216 = vmatpush1.bf16.msra.mxu0 %v539_v9  ;;  %529 = vmatpush1.bf16.msra.mxu1 %v539_v9 }
  0x1b   :  { %217 = vmatprep.subr.bf16.mxu0 %v566_v0  ;;  %521 = vmatprep.subr.bf16.mxu1 %v566_v0 }
  0x1e   :  { %218 = vmatpush1.bf16.msra.mxu0 %v540_v10  ;;  %530 = vmatpush1.bf16.msra.mxu1 %v540_v10 }
  0x1f   :  { %219 = vmatprep.subr.bf16.mxu0 %v566_v0  ;;  %522 = vmatprep.subr.bf16.mxu1 %v566_v0 }
  0x22   :  { %220 = vmatpush1.bf16.msra.mxu0 %v541_v11  ;;  %531 = vmatpush1.bf16.msra.mxu1 %v541_v11 }
  0x25   :  { %236 = vmatmul.mubr.bf16.vlgmr.msra.gmra.mrb[0].mxu0 %v542_v12  ;;  %268 = vmatmul.mubr.bf16.vlgmr.msra.gmra.mrb[0].mxu1 %v545_v13 }
  0x26   :  { %473 = vmatprep.mubr.msk.bf16.mxu0 %vm178_vm0, %v548_v14  ;;  %477 = vmatprep.mubr.msk.bf16.mxu1 %vm178_vm0, %v550_v15 }
  0x2d   :  { %244 = vmatmul.mubr.bf16.gmra.mrb[4].mxu0 %v552_v16  ;;  %276 = vmatmul.mubr.bf16.gmra.mrb[4].mxu1 %v553_v17 }
  0x2e   :  { %474 = vmatprep.mubr.msk.bf16.mxu0 %vm178_vm0, %v554_v18  ;;  %478 = vmatprep.mubr.msk.bf16.mxu1 %vm178_vm0, %v556_v19 }
  0x35   :  { %252 = vmatmul.mubr.bf16.gmra.mrb[8].mxu0 %v558_v20  ;;  %284 = vmatmul.mubr.bf16.gmra.mrb[8].mxu1 %v559_v21 }
  0x36   :  { %475 = vmatprep.mubr.msk.bf16.mxu0 %vm178_vm0, %v560_v22  ;;  %479 = vmatprep.mubr.msk.bf16.mxu1 %vm178_vm0, %v562_v23 }
  0x3d   :  { %260 = vmatmul.mubr.bf16.gmra.mrb[12].mxu0 %v564_v24  ;;  %292 = vmatmul.mubr.bf16.gmra.mrb[12].mxu1 %v565_v25 }
  0xf8   :  { %v237_v27 = vpop.f32.mrb[0].mxu0  ;;  %v269_v29 = vpop.f32.mrb[0].mxu1 }
  0xf9   :  { %v307_v30 = vmul.f32 %v678_v26, %v237_v27  ;;  %v315_v31 = vmul.f32 %v678_v26, %v269_v29  ;;  %v239_v32 = vpop.f32.mrb[1].mxu0  ;;  %v271_v33 = vpop.f32.mrb[1].mxu1 }
  0xfa   :  { %v240_v34 = vpop.f32.mrb[2].mxu0  ;;  %v272_v35 = vpop.f32.mrb[2].mxu1 }
  0xfb   :  { %v330_v36 = vadd.f32 %v683_v28, %v307_v30  ;;  %v338_v37 = vadd.f32 %v683_v28, %v315_v31  ;;  %v308_v38 = vmul.f32 %v678_v26, %v240_v34  ;;  %v316_v39 = vmul.f32 %v678_v26, %v272_v35  ;;  %v242_v40 = vpop.f32.mrb[3].mxu0  ;;  %v274_v41 = vpop.f32.mrb[3].mxu1 }
  0xfd   :  { %v346_v42 = vmax.f32 %v330_v36, 0.0  ;;  %v354_v43 = vmax.f32 %v338_v37, 0.0  ;;  %v331_v44 = vadd.f32 %v683_v28, %v308_v38  ;;  %v339_v45 = vadd.f32 %v683_v28, %v316_v39 }
  0xff   :  { %v498_v46 = vpack.c.bf16 %v346_v42, %v346_v42  ;;  %v506_v47 = vpack.c.bf16 %v354_v43, %v354_v43  ;;  %v347_v48 = vmax.f32 %v331_v44, 0.0  ;;  %v355_v49 = vmax.f32 %v339_v45, 0.0 }
 0x100   :  { %v245_v50 = vpop.f32.mrb[4].mxu0  ;;  %v277_v51 = vpop.f32.mrb[4].mxu1 }
 0x101   :  { %427 = vst.msk [vmem:[%s785_s4] sm:$0xf] %vm426_vm1, %v498_v46  ;;  %435 = vst.msk [vmem:[%s785_s4 + $0x20] sm:$0xf] %vm426_vm1, %v506_v47  ;;  %v499_v52 = vpack.c.bf16 %v347_v48, %v347_v48  ;;  %v507_v53 = vpack.c.bf16 %v355_v49, %v355_v49  ;;  %v309_v54 = vmul.f32 %v678_v26, %v245_v50  ;;  %v247_v56 = vpop.f32.mrb[5].mxu0  ;;  %v279_v57 = vpop.f32.mrb[5].mxu1 }
 0x102   :  { %v317_v55 = vmul.f32 %v678_v26, %v277_v51  ;;  %v248_v58 = vpop.f32.mrb[6].mxu0  ;;  %v280_v59 = vpop.f32.mrb[6].mxu1 }
 0x103   :  { %428 = vst.msk [vmem:[%s785_s4 + $0x4] sm:$0xf] %vm426_vm1, %v499_v52  ;;  %436 = vst.msk [vmem:[%s785_s4 + $0x24] sm:$0xf] %vm426_vm1, %v507_v53  ;;  %v332_v60 = vadd.f32 %v683_v28, %v309_v54  ;;  %v310_v62 = vmul.f32 %v678_v26, %v248_v58  ;;  %v318_v63 = vmul.f32 %v678_v26, %v280_v59  ;;  %v250_v0 = vpop.f32.mrb[7].mxu0  ;;  %v282_v1 = vpop.f32.mrb[7].mxu1 }
 0x104   :  { %v340_v61 = vadd.f32 %v683_v28, %v317_v55 }
 0x105   :  { %v348_v2 = vmax.f32 %v332_v60, 0.0  ;;  %v333_v4 = vadd.f32 %v683_v28, %v310_v62  ;;  %v341_v5 = vadd.f32 %v683_v28, %v318_v63 }
 0x106   :  { %v356_v3 = vmax.f32 %v340_v61, 0.0 }
 0x107   :  { %v500_v6 = vpack.c.bf16 %v348_v2, %v348_v2  ;;  %v349_v8 = vmax.f32 %v333_v4, 0.0  ;;  %v357_v9 = vmax.f32 %v341_v5, 0.0 }
 0x108   :  { %v508_v7 = vpack.c.bf16 %v356_v3, %v356_v3  ;;  %v253_v10 = vpop.f32.mrb[8].mxu0  ;;  %v285_v11 = vpop.f32.mrb[8].mxu1 }
 0x109   :  { %429 = vst.msk [vmem:[%s785_s4 + $0x8] sm:$0xf] %vm426_vm1, %v500_v6  ;;  %v501_v12 = vpack.c.bf16 %v349_v8, %v349_v8  ;;  %v509_v13 = vpack.c.bf16 %v357_v9, %v357_v9  ;;  %v311_v14 = vmul.f32 %v678_v26, %v253_v10  ;;  %v319_v15 = vmul.f32 %v678_v26, %v285_v11  ;;  %v255_v16 = vpop.f32.mrb[9].mxu0  ;;  %v287_v17 = vpop.f32.mrb[9].mxu1 }
 0x10a   :  { %437 = vst.msk [vmem:[%s785_s4 + $0x28] sm:$0xf] %vm426_vm1, %v508_v7  ;;  %v256_v18 = vpop.f32.mrb[10].mxu0  ;;  %v288_v19 = vpop.f32.mrb[10].mxu1 }
 0x10b   :  { %430 = vst.msk [vmem:[%s785_s4 + $0xc] sm:$0xf] %vm426_vm1, %v501_v12  ;;  %438 = vst.msk [vmem:[%s785_s4 + $0x2c] sm:$0xf] %vm426_vm1, %v509_v13  ;;  %v334_v20 = vadd.f32 %v683_v28, %v311_v14  ;;  %v342_v21 = vadd.f32 %v683_v28, %v319_v15  ;;  %v312_v22 = vmul.f32 %v678_v26, %v256_v18  ;;  %v258_v24 = vpop.f32.mrb[11].mxu0  ;;  %v290_v25 = vpop.f32.mrb[11].mxu1 }
 0x10c   :  { %v320_v23 = vmul.f32 %v678_v26, %v288_v19 }
 0x10d   :  { %v350_v27 = vmax.f32 %v334_v20, 0.0  ;;  %v358_v29 = vmax.f32 %v342_v21, 0.0  ;;  %v335_v30 = vadd.f32 %v683_v28, %v312_v22 }
 0x10e   :  { %v343_v31 = vadd.f32 %v683_v28, %v320_v23 }
 0x10f   :  { %v502_v32 = vpack.c.bf16 %v350_v27, %v350_v27  ;;  %v510_v33 = vpack.c.bf16 %v358_v29, %v358_v29  ;;  %v351_v34 = vmax.f32 %v335_v30, 0.0 }
 0x110   :  { %v359_v35 = vmax.f32 %v343_v31, 0.0  ;;  %v261_v36 = vpop.f32.mrb[12].mxu0  ;;  %v293_v37 = vpop.f32.mrb[12].mxu1 }
 0x111   :  { %431 = vst.msk [vmem:[%s785_s4 + $0x10] sm:$0xf] %vm426_vm1, %v502_v32  ;;  %439 = vst.msk [vmem:[%s785_s4 + $0x30] sm:$0xf] %vm426_vm1, %v510_v33  ;;  %v503_v38 = vpack.c.bf16 %v351_v34, %v351_v34  ;;  %v313_v40 = vmul.f32 %v678_v26, %v261_v36  ;;  %v321_v41 = vmul.f32 %v678_v26, %v293_v37  ;;  %v263_v42 = vpop.f32.mrb[13].mxu0  ;;  %v295_v43 = vpop.f32.mrb[13].mxu1 }
 0x112   :  { %v511_v39 = vpack.c.bf16 %v359_v35, %v359_v35  ;;  %v264_v44 = vpop.f32.mrb[14].mxu0  ;;  %v296_v45 = vpop.f32.mrb[14].mxu1 }
 0x113   :  { %432 = vst.msk [vmem:[%s785_s4 + $0x14] sm:$0xf] %vm426_vm1, %v503_v38  ;;  %v336_v46 = vadd.f32 %v683_v28, %v313_v40  ;;  %v344_v47 = vadd.f32 %v683_v28, %v321_v41  ;;  %v314_v48 = vmul.f32 %v678_v26, %v264_v44  ;;  %v322_v49 = vmul.f32 %v678_v26, %v296_v45  ;;  %v266_v50 = vpop.f32.mrb[15].mxu0  ;;  %v298_v51 = vpop.f32.mrb[15].mxu1 }
 0x114   :  { %440 = vst.msk [vmem:[%s785_s4 + $0x34] sm:$0xf] %vm426_vm1, %v511_v39 }
 0x115   :  { %v352_v52 = vmax.f32 %v336_v46, 0.0  ;;  %v360_v53 = vmax.f32 %v344_v47, 0.0  ;;  %v337_v54 = vadd.f32 %v683_v28, %v314_v48  ;;  %v345_v55 = vadd.f32 %v683_v28, %v322_v49 }
 0x117   :  { %v504_v56 = vpack.c.bf16 %v352_v52, %v352_v52  ;;  %v512_v57 = vpack.c.bf16 %v360_v53, %v360_v53  ;;  %v353_v58 = vmax.f32 %v337_v54, 0.0  ;;  %v361_v59 = vmax.f32 %v345_v55, 0.0 }
 0x119   :  { %433 = vst.msk [vmem:[%s785_s4 + $0x18] sm:$0xf] %vm426_vm1, %v504_v56  ;;  %441 = vst.msk [vmem:[%s785_s4 + $0x38] sm:$0xf] %vm426_vm1, %v512_v57  ;;  %v505_v26 = vpack.c.bf16 %v353_v58, %v353_v58  ;;  %v513_v60 = vpack.c.bf16 %v361_v59, %v361_v59 }
 0x11b   :  { %434 = vst.msk [vmem:[%s785_s4 + $0x1c] sm:$0xf] %vm426_vm1, %v505_v26  ;;  %442 = vst.msk [vmem:[%s785_s4 + $0x3c] sm:$0xf] %vm426_vm1, %v513_v60 }

// kernel: _forward.13
= control target key start
LH: loop header
LB: loop body
LE: loop exit
PB: predicated region body
PF: predicated region fallthrough
CT: control target
= control target key end

     0   :  { %vm76_vm0 = vcmask 130048   ;;  %vm262_vm1 = vcmask 257024   ;;  %s484_s1 = inlined_call_operand.vmem [shape: bf16[16,32], index: 1, kind: input, shape index: {}]   ;;  %s485_s0 = inlined_call_operand.vmem [shape: bf16[128,16], index: 0, kind: input, shape index: {}]   ;;  %s486_s2 = inlined_call_operand.vmem [shape: bf16[128,32], index: 2, kind: output, shape index: {}]  }
   0x1   :  { %v361_v0 = vld [vmem:[%s484_s1] sm:$0xff]   ;;  %v364_v3 = vld [vmem:[%s485_s0 + $0x8] sm:$0xff]   ;;  %v366_v5 = vld [vmem:[%s485_s0 + $0x10] sm:$0xff]  }
   0x2   :  { %v362_v1 = vld [vmem:[%s485_s0] sm:$0xff]   ;;  %341 = vmatprep.subr.bf16.mxu0 %v361_v0  ;;  %359 = vmatprep.subr.bf16.mxu1 %v361_v0  ;;  %v365_v4 = vld [vmem:[%s485_s0 + $0x28] sm:$0xff]   ;;  %v367_v6 = vld [vmem:[%s485_s0 + $0x30] sm:$0xff]  }
   0x3   :  { %v363_v2 = vld [vmem:[%s485_s0 + $0x20] sm:$0xff]   ;;  %342 = vmatpush3.bf16.msra.mxu0 %v361_v0  ;;  %360 = vmatpush3.bf16.msra.mxu1 %v361_v0  ;;  %v368_v7 = vld [vmem:[%s485_s0 + $0x18] sm:$0xff]  }
   0x4   :  { %343 = vmatprep.mubr.msk.bf16.mxu0 %vm76_vm0, %v362_v1  ;;  %351 = vmatprep.mubr.msk.bf16.mxu1 %vm76_vm0, %v363_v2  ;;  %v369_v8 = vld [vmem:[%s485_s0 + $0x38] sm:$0xff]  }
   0x6   :  { %344 = vmatmul.mubr.msk.bf16.vlgmr.msra.gmra.mrb[0].mxu0 %vm76_vm0, %v364_v3  ;;  %352 = vmatmul.mubr.msk.bf16.vlgmr.msra.gmra.mrb[0].mxu1 %vm76_vm0, %v365_v4 }
   0x7   :  { %347 = vmatprep.mubr.msk.bf16.mxu0 %vm76_vm0, %v366_v5  ;;  %355 = vmatprep.mubr.msk.bf16.mxu1 %vm76_vm0, %v367_v6 }
   0xe   :  { %348 = vmatmul.mubr.msk.bf16.gmra.mrb[4].mxu0 %vm76_vm0, %v368_v7  ;;  %356 = vmatmul.mubr.msk.bf16.gmra.mrb[4].mxu1 %vm76_vm0, %v369_v8 }
  0xd9   :  { %v345_v9 = vpop.f32.mrb[0].mxu0  ;;  %v353_v10 = vpop.f32.mrb[0].mxu1 }
  0xda   :  { %v318_v11 = vpack.c.bf16 %v345_v9, %v345_v9  ;;  %v326_v12 = vpack.c.bf16 %v353_v10, %v353_v10  ;;  %v135_v13 = vpop.f32.mrb[1].mxu0  ;;  %v167_v14 = vpop.f32.mrb[1].mxu1 }
  0xdb   :  { %v316_v15 = vpack.c.bf16 %v135_v13, %v135_v13  ;;  %v324_v16 = vpack.c.bf16 %v167_v14, %v167_v14  ;;  %v346_v17 = vpop.f32.mrb[2].mxu0  ;;  %v354_v18 = vpop.f32.mrb[2].mxu1 }
  0xdc   :  { %265 = vst.msk [vmem:[%s486_s2 + $0x8] sm:$0xf] %vm262_vm1, %v318_v11  ;;  %273 = vst.msk [vmem:[%s486_s2 + $0x28] sm:$0xf] %vm262_vm1, %v326_v12  ;;  %v319_v19 = vpack.c.bf16 %v346_v17, %v346_v17  ;;  %v327_v20 = vpack.c.bf16 %v354_v18, %v354_v18  ;;  %v138_v21 = vpop.f32.mrb[3].mxu0  ;;  %v170_v22 = vpop.f32.mrb[3].mxu1 }
  0xdd   :  { %263 = vst.msk [vmem:[%s486_s2] sm:$0xf] %vm262_vm1, %v316_v15  ;;  %271 = vst.msk [vmem:[%s486_s2 + $0x20] sm:$0xf] %vm262_vm1, %v324_v16  ;;  %v317_v23 = vpack.c.bf16 %v138_v21, %v138_v21  ;;  %v325_v24 = vpack.c.bf16 %v170_v22, %v170_v22 }
  0xde   :  { %266 = vst.msk [vmem:[%s486_s2 + $0xc] sm:$0xf] %vm262_vm1, %v319_v19  ;;  %274 = vst.msk [vmem:[%s486_s2 + $0x2c] sm:$0xf] %vm262_vm1, %v327_v20 }
  0xdf   :  { %264 = vst.msk [vmem:[%s486_s2 + $0x4] sm:$0xf] %vm262_vm1, %v317_v23  ;;  %272 = vst.msk [vmem:[%s486_s2 + $0x24] sm:$0xf] %vm262_vm1, %v325_v24 }
  0xe1   :  { %v349_v25 = vpop.f32.mrb[4].mxu0  ;;  %v357_v26 = vpop.f32.mrb[4].mxu1 }
  0xe2   :  { %v322_v27 = vpack.c.bf16 %v349_v25, %v349_v25  ;;  %v330_v28 = vpack.c.bf16 %v357_v26, %v357_v26  ;;  %v151_v29 = vpop.f32.mrb[5].mxu0  ;;  %v183_v30 = vpop.f32.mrb[5].mxu1 }
  0xe3   :  { %v320_v31 = vpack.c.bf16 %v151_v29, %v151_v29  ;;  %v328_v32 = vpack.c.bf16 %v183_v30, %v183_v30  ;;  %v350_v33 = vpop.f32.mrb[6].mxu0  ;;  %v358_v34 = vpop.f32.mrb[6].mxu1 }
  0xe4   :  { %269 = vst.msk [vmem:[%s486_s2 + $0x18] sm:$0xf] %vm262_vm1, %v322_v27  ;;  %277 = vst.msk [vmem:[%s486_s2 + $0x38] sm:$0xf] %vm262_vm1, %v330_v28  ;;  %v323_v35 = vpack.c.bf16 %v350_v33, %v350_v33  ;;  %v331_v36 = vpack.c.bf16 %v358_v34, %v358_v34  ;;  %v154_v37 = vpop.f32.mrb[7].mxu0  ;;  %v186_v38 = vpop.f32.mrb[7].mxu1 }
  0xe5   :  { %267 = vst.msk [vmem:[%s486_s2 + $0x10] sm:$0xf] %vm262_vm1, %v320_v31  ;;  %275 = vst.msk [vmem:[%s486_s2 + $0x30] sm:$0xf] %vm262_vm1, %v328_v32  ;;  %v321_v39 = vpack.c.bf16 %v154_v37, %v154_v37  ;;  %v329_v40 = vpack.c.bf16 %v186_v38, %v186_v38 }
  0xe6   :  { %270 = vst.msk [vmem:[%s486_s2 + $0x1c] sm:$0xf] %vm262_vm1, %v323_v35  ;;  %278 = vst.msk [vmem:[%s486_s2 + $0x3c] sm:$0xf] %vm262_vm1, %v331_v36 }
  0xe7   :  { %268 = vst.msk [vmem:[%s486_s2 + $0x14] sm:$0xf] %vm262_vm1, %v321_v39  ;;  %276 = vst.msk [vmem:[%s486_s2 + $0x34] sm:$0xf] %vm262_vm1, %v329_v40 }

// kernel: _forward.15
= control target key start
LH: loop header
LB: loop body
LE: loop exit
PB: predicated region body
PF: predicated region fallthrough
CT: control target
= control target key end

     0   :  { %vm343_vm0 = vcmask 261120   ;;  %vm626_vm1 = vcmask 257024   ;;  %s1182_s1 = inlined_call_operand.vmem [shape: bf16[288,32], index: 1, kind: input, shape index: {}]   ;;  %s1183_s0 = inlined_call_operand.vmem [shape: bf16[128,288], index: 0, kind: input, shape index: {}]   ;;  %s1184_s2 = inlined_call_operand.vmem [shape: bf16[128,32], index: 2, kind: input, shape index: {}]   ;;  %s1185_s3 = inlined_call_operand.vmem [shape: bf16[128,32], index: 3, kind: output, shape index: {}]  }
   0x1   :  { %v878_v0 = vld [vmem:[%s1182_s1 + $0x40] sm:$0xff]   ;;  %v880_v2 = vld [vmem:[%s1182_s1 + $0x48] sm:$0xff]   ;;  %v882_v4 = vld [vmem:[%s1182_s1 + $0x50] sm:$0xff]  }
   0x2   :  { %v879_v1 = vld [vmem:[%s1182_s1] sm:$0xff]   ;;  %768 = vmatprep.subr.bf16.mxu0 %v878_v0  ;;  %862 = vmatprep.subr.bf16.mxu1 %v878_v0  ;;  %v881_v3 = vld [vmem:[%s1182_s1 + $0x8] sm:$0xff]   ;;  %v883_v5 = vld [vmem:[%s1182_s1 + $0x10] sm:$0xff]  }
   0x3   :  { %769 = vmatpush3.bf16.msra.mxu0 %v879_v1  ;;  %870 = vmatpush3.bf16.msra.mxu1 %v879_v1  ;;  %v884_v6 = vld [vmem:[%s1182_s1 + $0x58] sm:$0xff]   ;;  %v886_v8 = vld [vmem:[%s1182_s1 + $0x60] sm:$0xff]   ;;  %v888_v10 = vld [vmem:[%s1182_s1 + $0x68] sm:$0xff]  }
   0x4   :  { %770 = vmatprep.subr.bf16.mxu0 %v880_v2  ;;  %863 = vmatprep.subr.bf16.mxu1 %v880_v2  ;;  %v885_v7 = vld [vmem:[%s1182_s1 + $0x18] sm:$0xff]   ;;  %v887_v9 = vld [vmem:[%s1182_s1 + $0x20] sm:$0xff]   ;;  %v889_v13 = vld [vmem:[%s1182_s1 + $0x28] sm:$0xff]  }
   0x5   :  { %v896_v11 = vld [vmem:[%s1183_s0 + $0x4] ss:$12 sps:$4 sm:$0xff]   ;;  %v899_v12 = vld [vmem:[%s1183_s0 + $0x94] ss:$12 sps:$4 sm:$0xff]   ;;  %v892_v16 = vld [vmem:[%s1182_s1 + $0x78] sm:$0xff]  }
   0x6   :  { %v890_v14 = vld [vmem:[%s1182_s1 + $0x70] sm:$0xff]   ;;  %400 = vmatprep.mubr.bf16.mxu0 %v896_v11  ;;  %448 = vmatprep.mubr.bf16.mxu1 %v899_v12  ;;  %v893_v17 = vld [vmem:[%s1182_s1 + $0x38] sm:$0xff]   ;;  %v894_v18 = vld [vmem:[%s1183_s0] ss:$12 sps:$4 sm:$0xff]  }
   0x7   :  { %771 = vmatpush3.bf16.msra.mxu0 %v881_v3  ;;  %871 = vmatpush3.bf16.msra.mxu1 %v881_v3  ;;  %v891_v15 = vld [vmem:[%s1182_s1 + $0x30] sm:$0xff]   ;;  %v900_v19 = vld [vmem:[%s1182_s1 + $0x80] sm:$0xff]   ;;  %v901_v21 = vld [vmem:[%s1183_s0 + $0x1c] ss:$12 sps:$4 sm:$0xff]  }
   0x8   :  { %772 = vmatprep.subr.bf16.mxu0 %v882_v4  ;;  %864 = vmatprep.subr.bf16.mxu1 %v882_v4  ;;  %v897_v20 = vld [vmem:[%s1183_s0 + $0x90] ss:$12 sps:$4 sm:$0xff]   ;;  %v903_v22 = vld [vmem:[%s1183_s0 + $0xac] ss:$12 sps:$4 sm:$0xff]   ;;  %v906_v25 = vld [vmem:[%s1183_s0 + $0xa8] ss:$12 sps:$4 sm:$0xff]  }
   0x9   :  { %v907_v23 = vld [vmem:[%s1182_s1 + $0x88] sm:$0xff]   ;;  %v905_v24 = vld [vmem:[%s1183_s0 + $0x18] ss:$12 sps:$4 sm:$0xff]   ;;  %v908_v26 = vld [vmem:[%s1183_s0 + $0x34] ss:$12 sps:$4 sm:$0xff]  }
   0xa   :  { %v910_v27 = vld [vmem:[%s1183_s0 + $0x8] ss:$12 sps:$4 sm:$0xff]   ;;  %v911_v28 = vld [vmem:[%s1183_s0 + $0x30] ss:$12 sps:$4 sm:$0xff]   ;;  %v912_v29 = vld [vmem:[%s1183_s0 + $0x20] ss:$12 sps:$4 sm:$0xff]  }
   0xb   :  { %773 = vmatpush3.bf16.msra.mxu0 %v883_v5  ;;  %872 = vmatpush3.bf16.msra.mxu1 %v883_v5  ;;  %v913_v30 = vld [vmem:[%s1183_s0 + $0x4c] ss:$12 sps:$4 sm:$0xff]   ;;  %v916_v32 = vld [vmem:[%s1183_s0 + $0x48] ss:$12 sps:$4 sm:$0xff]   ;;  %v917_v33 = vld [vmem:[%s1183_s0 + $0x50] ss:$12 sps:$4 sm:$0xff]  }
   0xc   :  { %774 = vmatprep.subr.bf16.mxu0 %v884_v6  ;;  %865 = vmatprep.subr.bf16.mxu1 %v884_v6  ;;  %v915_v31 = vld [vmem:[%s1183_s0 + $0x38] ss:$12 sps:$4 sm:$0xff]   ;;  %v920_v35 = vld [vmem:[%s1183_s0 + $0x68] ss:$12 sps:$4 sm:$0xff]   ;;  %v921_v36 = vld [vmem:[%s1183_s0 + $0x60] ss:$12 sps:$4 sm:$0xff]  }
   0xd   :  { %v918_v34 = vld [vmem:[%s1183_s0 + $0x64] ss:$12 sps:$4 sm:$0xff]   ;;  %v922_v37 = vld [vmem:[%s1183_s0 + $0x80] ss:$12 sps:$4 sm:$0xff]   ;;  %v923_v38 = vld [vmem:[%s1183_s0 + $0x7c] ss:$12 sps:$4 sm:$0xff]  }
   0xe   :  { %v925_v39 = vld [vmem:[%s1183_s0 + $0x98] ss:$12 sps:$4 sm:$0xff]   ;;  %v927_v41 = vld [vmem:[%s1183_s0 + $0xb0] ss:$12 sps:$4 sm:$0xff]   ;;  %v761_v56 = vld [vmem:[%s1184_s2 + $0x8] sm:$0xff]  }
   0xf   :  { %775 = vmatpush3.bf16.msra.mxu0 %v885_v7  ;;  %873 = vmatpush3.bf16.msra.mxu1 %v885_v7  ;;  %v926_v40 = vld [vmem:[%s1183_s0 + $0x78] ss:$12 sps:$4 sm:$0xff]   ;;  %v735_v2 = vunpack.c.l.bf16 %v761_v56  ;;  %v736_v6 = vunpack.c.h.bf16 %v761_v56 }
  0x10   :  { %776 = vmatprep.subr.bf16.mxu0 %v886_v8  ;;  %866 = vmatprep.subr.bf16.mxu1 %v886_v8  ;;  %v730_v59 = vld [vmem:[%s1184_s2] sm:$0xff]  }
  0x11   :  { %v731_v5 = vunpack.c.l.bf16 %v730_v59  ;;  %v732_v7 = vunpack.c.h.bf16 %v730_v59 }
  0x13   :  { %777 = vmatpush3.bf16.msra.mxu0 %v887_v9  ;;  %874 = vmatpush3.bf16.msra.mxu1 %v887_v9 }
  0x14   :  { %778 = vmatprep.subr.bf16.mxu0 %v888_v10  ;;  %867 = vmatprep.subr.bf16.mxu1 %v888_v10 }
  0x17   :  { %779 = vmatpush3.bf16.msra.mxu0 %v889_v13  ;;  %875 = vmatpush3.bf16.msra.mxu1 %v889_v13 }
  0x18   :  { %780 = vmatprep.subr.bf16.mxu0 %v890_v14  ;;  %868 = vmatprep.subr.bf16.mxu1 %v890_v14 }
  0x1b   :  { %781 = vmatpush3.bf16.msra.mxu0 %v891_v15  ;;  %876 = vmatpush3.bf16.msra.mxu1 %v891_v15 }
  0x1c   :  { %782 = vmatprep.subr.bf16.mxu0 %v892_v16  ;;  %869 = vmatprep.subr.bf16.mxu1 %v892_v16  ;;  %v762_v16 = vld [vmem:[%s1184_s2 + $0x10] sm:$0xff]  }
  0x1f   :  { %783 = vmatpush3.bf16.msra.mxu0 %v893_v17  ;;  %877 = vmatpush3.bf16.msra.mxu1 %v893_v17 }
  0x20   :  { %842 = vmatprep.subr.bf16.mxu1 %v900_v19 }
  0x22   :  { %401 = vmatmul.mubr.bf16.vlgmr.msra.gmra.mrb[0].mxu0 %v894_v18  ;;  %449 = vmatmul.mubr.bf16.vlgmr.msra.gmra.mrb[0].mxu1 %v897_v20 }
  0x23   :  { %843 = vmatpush3.bf16.msra.mxu1 %v900_v19  ;;  %408 = vmatprep.mubr.bf16.mxu0 %v901_v21 }
  0x24   :  { %456 = vmatprep.mubr.bf16.mxu1 %v903_v22  ;;  %844 = vmatprep.subr.bf16.mxu1 %v907_v23 }
  0x27   :  { %845 = vmatpush3.bf16.msra.mxu1 %v907_v23 }
  0x2a   :  { %409 = vmatmul.mubr.bf16.gmra.mrb[4].mxu0 %v905_v24  ;;  %457 = vmatmul.mubr.bf16.gmra.mrb[4].mxu1 %v906_v25 }
  0x2b   :  { %416 = vmatprep.mubr.bf16.mxu0 %v908_v26  ;;  %846 = vmatprep.mubr.msk.bf16.mxu1 %vm343_vm0, %v910_v27 }
  0x32   :  { %417 = vmatmul.mubr.bf16.gmra.mrb[8].mxu0 %v911_v28  ;;  %847 = vmatmul.mubr.msk.bf16.vlgmr.msra.gmra.mrb[8].mxu1 %vm343_vm0, %v912_v29  ;;  %v739_v29 = vunpack.c.l.bf16 %v762_v16 }
  0x33   :  { %424 = vmatprep.mubr.bf16.mxu0 %v913_v30  ;;  %850 = vmatprep.mubr.msk.bf16.mxu1 %vm343_vm0, %v915_v31  ;;  %v763_v31 = vld [vmem:[%s1184_s2 + $0x18] sm:$0xff]  }
  0x3a   :  { %425 = vmatmul.mubr.bf16.gmra.mrb[12].mxu0 %v916_v32  ;;  %851 = vmatmul.mubr.msk.bf16.gmra.mrb[12].mxu1 %vm343_vm0, %v917_v33  ;;  %v740_v33 = vunpack.c.h.bf16 %v762_v16  ;;  %v765_v16 = vld [vmem:[%s1184_s2 + $0x28] sm:$0xff]  }
  0x3b   :  { %432 = vmatprep.mubr.bf16.mxu0 %v918_v34  ;;  %854 = vmatprep.mubr.msk.bf16.mxu1 %vm343_vm0, %v920_v35 }
  0x42   :  { %433 = vmatmul.mubr.bf16.gmra.mrb[16].mxu0 %v921_v36  ;;  %855 = vmatmul.mubr.msk.bf16.gmra.mrb[16].mxu1 %vm343_vm0, %v922_v37  ;;  %v743_v36 = vunpack.c.l.bf16 %v763_v31 }
  0x43   :  { %440 = vmatprep.mubr.bf16.mxu0 %v923_v38  ;;  %858 = vmatprep.mubr.msk.bf16.mxu1 %vm343_vm0, %v925_v39 }
  0x4a   :  { %441 = vmatmul.mubr.bf16.gmra.mrb[20].mxu0 %v926_v40  ;;  %859 = vmatmul.mubr.msk.bf16.gmra.mrb[20].mxu1 %vm343_vm0, %v927_v41 }
  0xf5   :  { %v784_v42 = vpop.f32.mrb[0].mxu0  ;;  %v820_v43 = vpop.f32.mrb[0].mxu1 }
  0xf6   :  { %v785_v44 = vpop.f32.mrb[1].mxu0  ;;  %v821_v45 = vpop.f32.mrb[1].mxu1 }
  0xf7   :  { %v786_v46 = vadd.f32 %v785_v44, %v784_v42  ;;  %v787_v47 = vpop.f32.mrb[2].mxu0  ;;  %v1082_v48 = vadd.f32 %v821_v45, %v820_v43  ;;  %v823_v49 = vpop.f32.mrb[2].mxu1  ;;  %v744_v44 = vunpack.c.h.bf16 %v763_v31 }
  0xf8   :  { %v788_v50 = vpop.f32.mrb[3].mxu0  ;;  %v824_v51 = vpop.f32.mrb[3].mxu1 }
  0xf9   :  { %v789_v52 = vadd.f32 %v788_v50, %v787_v47  ;;  %v1084_v53 = vadd.f32 %v824_v51, %v823_v49  ;;  %v403_v11 = vadd.f32 %v786_v46, %v731_v5 }
  0xfb   :  { %v406_v21 = vadd.f32 %v789_v52, %v732_v7 }
  0xfd   :  { %v790_v54 = vpop.f32.mrb[4].mxu0  ;;  %v826_v55 = vpop.f32.mrb[4].mxu1 }
  0xfe   :  { %v791_v57 = vpop.f32.mrb[5].mxu0  ;;  %v827_v58 = vpop.f32.mrb[5].mxu1 }
  0xff   :  { %v792_v60 = vadd.f32 %v791_v57, %v790_v54  ;;  %v793_v61 = vpop.f32.mrb[6].mxu0  ;;  %v1092_v62 = vadd.f32 %v827_v58, %v826_v55  ;;  %v829_v63 = vpop.f32.mrb[6].mxu1  ;;  %v764_v54 = vld [vmem:[%s1184_s2 + $0x20] sm:$0xff]  }
 0x100   :  { %v794_v0 = vpop.f32.mrb[7].mxu0  ;;  %v830_v1 = vpop.f32.mrb[7].mxu1 }
 0x101   :  { %v795_v3 = vadd.f32 %v794_v0, %v793_v61  ;;  %v1094_v4 = vadd.f32 %v830_v1, %v829_v63  ;;  %v411_v8 = vadd.f32 %v792_v60, %v735_v2  ;;  %v747_v63 = vunpack.c.l.bf16 %v764_v54  ;;  %v767_v0 = vld [vmem:[%s1184_s2 + $0x38] sm:$0xff]  }
 0x103   :  { %v414_v15 = vadd.f32 %v795_v3, %v736_v6  ;;  %v766_v3 = vld [vmem:[%s1184_s2 + $0x30] sm:$0xff]  }
 0x105   :  { %v796_v9 = vpop.f32.mrb[8].mxu0  ;;  %v848_v10 = vpop.f32.mrb[8].mxu1 }
 0x106   :  { %v508_v12 = vadd.f32 %v848_v10, %v411_v8  ;;  %v797_v13 = vpop.f32.mrb[9].mxu0  ;;  %v499_v14 = vpop.f32.mrb[9].mxu1 }
 0x107   :  { %v798_v17 = vadd.f32 %v797_v13, %v796_v9  ;;  %v500_v18 = vadd.f32 %v499_v14, %v403_v11  ;;  %v799_v19 = vpop.f32.mrb[10].mxu0  ;;  %v849_v20 = vpop.f32.mrb[10].mxu1  ;;  %v748_v9 = vunpack.c.h.bf16 %v764_v54 }
 0x108   :  { %v715_v22 = vpack.c.bf16 %v508_v12, %v508_v12  ;;  %v511_v23 = vadd.f32 %v849_v20, %v414_v15  ;;  %v800_v24 = vpop.f32.mrb[11].mxu0  ;;  %v502_v25 = vpop.f32.mrb[11].mxu1  ;;  %v759_v12 = vunpack.c.l.bf16 %v767_v0  ;;  %v755_v15 = vunpack.c.l.bf16 %v766_v3 }
 0x109   :  { %v713_v26 = vpack.c.bf16 %v500_v18, %v500_v18  ;;  %v801_v27 = vadd.f32 %v800_v24, %v799_v19  ;;  %v503_v28 = vadd.f32 %v502_v25, %v406_v21  ;;  %v419_v37 = vadd.f32 %v798_v17, %v739_v29 }
 0x10a   :  { %629 = vst.msk [vmem:[%s1185_s3 + $0x8] sm:$0xf] %vm626_vm1, %v715_v22  ;;  %v716_v30 = vpack.c.bf16 %v511_v23, %v511_v23  ;;  %v760_v17 = vunpack.c.h.bf16 %v767_v0  ;;  %v756_v20 = vunpack.c.h.bf16 %v766_v3  ;;  %v459_v21 = vadd.f32 %v1092_v62, %v759_v12 }
 0x10b   :  { %627 = vst.msk [vmem:[%s1185_s3] sm:$0xf] %vm626_vm1, %v713_v26  ;;  %v714_v32 = vpack.c.bf16 %v503_v28, %v503_v28  ;;  %v422_v45 = vadd.f32 %v801_v27, %v740_v33  ;;  %v751_v26 = vunpack.c.l.bf16 %v765_v16  ;;  %v451_v27 = vadd.f32 %v1082_v48, %v755_v15 }
 0x10c   :  { %630 = vst.msk [vmem:[%s1185_s3 + $0xc] sm:$0xf] %vm626_vm1, %v716_v30  ;;  %v462_v31 = vadd.f32 %v1094_v4, %v760_v17 }
 0x10d   :  { %628 = vst.msk [vmem:[%s1185_s3 + $0x4] sm:$0xf] %vm626_vm1, %v714_v32  ;;  %v802_v34 = vpop.f32.mrb[12].mxu0  ;;  %v852_v35 = vpop.f32.mrb[12].mxu1  ;;  %v752_v32 = vunpack.c.h.bf16 %v765_v16 }
 0x10e   :  { %v803_v38 = vpop.f32.mrb[13].mxu0  ;;  %v515_v39 = vpop.f32.mrb[13].mxu1 }
 0x10f   :  { %v804_v40 = vadd.f32 %v803_v38, %v802_v34  ;;  %v516_v41 = vadd.f32 %v515_v39, %v419_v37  ;;  %v805_v42 = vpop.f32.mrb[14].mxu0  ;;  %v853_v43 = vpop.f32.mrb[14].mxu1  ;;  %v454_v37 = vadd.f32 %v1084_v53, %v756_v20 }
 0x110   :  { %v806_v46 = vpop.f32.mrb[15].mxu0  ;;  %v518_v47 = vpop.f32.mrb[15].mxu1 }
 0x111   :  { %v427_v49 = vadd.f32 %v804_v40, %v743_v36  ;;  %v717_v50 = vpack.c.bf16 %v516_v41, %v516_v41  ;;  %v807_v51 = vadd.f32 %v806_v46, %v805_v42  ;;  %v519_v52 = vadd.f32 %v518_v47, %v422_v45 }
 0x113   :  { %v524_v55 = vadd.f32 %v852_v35, %v427_v49  ;;  %631 = vst.msk [vmem:[%s1185_s3 + $0x10] sm:$0xf] %vm626_vm1, %v717_v50  ;;  %v430_v56 = vadd.f32 %v807_v51, %v744_v44  ;;  %v718_v57 = vpack.c.bf16 %v519_v52, %v519_v52 }
 0x115   :  { %v719_v58 = vpack.c.bf16 %v524_v55, %v524_v55  ;;  %v527_v59 = vadd.f32 %v853_v43, %v430_v56  ;;  %632 = vst.msk [vmem:[%s1185_s3 + $0x14] sm:$0xf] %vm626_vm1, %v718_v57  ;;  %v808_v60 = vpop.f32.mrb[16].mxu0  ;;  %v856_v61 = vpop.f32.mrb[16].mxu1 }
 0x116   :  { %v809_v1 = vpop.f32.mrb[17].mxu0  ;;  %v531_v2 = vpop.f32.mrb[17].mxu1 }
 0x117   :  { %633 = vst.msk [vmem:[%s1185_s3 + $0x18] sm:$0xf] %vm626_vm1, %v719_v58  ;;  %v720_v5 = vpack.c.bf16 %v527_v59, %v527_v59  ;;  %v810_v6 = vadd.f32 %v809_v1, %v808_v60  ;;  %v811_v7 = vpop.f32.mrb[18].mxu0  ;;  %v857_v8 = vpop.f32.mrb[18].mxu1 }
 0x118   :  { %v812_v10 = vpop.f32.mrb[19].mxu0  ;;  %v534_v11 = vpop.f32.mrb[19].mxu1 }
 0x119   :  { %634 = vst.msk [vmem:[%s1185_s3 + $0x1c] sm:$0xf] %vm626_vm1, %v720_v5  ;;  %v435_v13 = vadd.f32 %v810_v6, %v747_v63  ;;  %v813_v14 = vadd.f32 %v812_v10, %v811_v7 }
 0x11b   :  { %v532_v18 = vadd.f32 %v531_v2, %v435_v13  ;;  %v438_v19 = vadd.f32 %v813_v14, %v748_v9 }
 0x11d   :  { %v721_v22 = vpack.c.bf16 %v532_v18, %v532_v18  ;;  %v535_v23 = vadd.f32 %v534_v11, %v438_v19  ;;  %v814_v24 = vpop.f32.mrb[20].mxu0  ;;  %v860_v25 = vpop.f32.mrb[20].mxu1 }
 0x11e   :  { %v556_v28 = vadd.f32 %v860_v25, %v459_v21  ;;  %v815_v29 = vpop.f32.mrb[21].mxu0  ;;  %v547_v30 = vpop.f32.mrb[21].mxu1 }
 0x11f   :  { %635 = vst.msk [vmem:[%s1185_s3 + $0x20] sm:$0xf] %vm626_vm1, %v721_v22  ;;  %v722_v33 = vpack.c.bf16 %v535_v23, %v535_v23  ;;  %v816_v62 = vadd.f32 %v815_v29, %v814_v24  ;;  %v548_v34 = vadd.f32 %v547_v30, %v451_v27  ;;  %v817_v35 = vpop.f32.mrb[22].mxu0  ;;  %v861_v36 = vpop.f32.mrb[22].mxu1 }
 0x120   :  { %v727_v38 = vpack.c.bf16 %v556_v28, %v556_v28  ;;  %v559_v48 = vadd.f32 %v861_v36, %v462_v31  ;;  %v818_v39 = vpop.f32.mrb[23].mxu0  ;;  %v550_v40 = vpop.f32.mrb[23].mxu1 }
 0x121   :  { %636 = vst.msk [vmem:[%s1185_s3 + $0x24] sm:$0xf] %vm626_vm1, %v722_v33  ;;  %v443_v4 = vadd.f32 %v816_v62, %v751_v26  ;;  %v725_v41 = vpack.c.bf16 %v548_v34, %v548_v34  ;;  %v819_v42 = vadd.f32 %v818_v39, %v817_v35  ;;  %v551_v43 = vadd.f32 %v550_v40, %v454_v37 }
 0x122   :  { %641 = vst.msk [vmem:[%s1185_s3 + $0x38] sm:$0xf] %vm626_vm1, %v727_v38  ;;  %v728_v44 = vpack.c.bf16 %v559_v48, %v559_v48 }
 0x123   :  { %v540_v53 = vadd.f32 %v856_v61, %v443_v4  ;;  %639 = vst.msk [vmem:[%s1185_s3 + $0x30] sm:$0xf] %vm626_vm1, %v725_v41  ;;  %v446_v45 = vadd.f32 %v819_v42, %v752_v32  ;;  %v726_v46 = vpack.c.bf16 %v551_v43, %v551_v43 }
 0x124   :  { %642 = vst.msk [vmem:[%s1185_s3 + $0x3c] sm:$0xf] %vm626_vm1, %v728_v44 }
 0x125   :  { %v723_v47 = vpack.c.bf16 %v540_v53, %v540_v53  ;;  %v543_v49 = vadd.f32 %v857_v8, %v446_v45  ;;  %640 = vst.msk [vmem:[%s1185_s3 + $0x34] sm:$0xf] %vm626_vm1, %v726_v46 }
 0x127   :  { %637 = vst.msk [vmem:[%s1185_s3 + $0x28] sm:$0xf] %vm626_vm1, %v723_v47  ;;  %v724_v50 = vpack.c.bf16 %v543_v49, %v543_v49 }
 0x129   :  { %638 = vst.msk [vmem:[%s1185_s3 + $0x2c] sm:$0xf] %vm626_vm1, %v724_v50 }

// kernel: _forward.17
= control target key start
LH: loop header
LB: loop body
LE: loop exit
PB: predicated region body
PF: predicated region fallthrough
CT: control target
= control target key end

     0   :  { %vm200_vm0 = vcmask 261120   ;;  %vm347_vm1 = vcmask 519168   ;;  %s577_s1 = inlined_call_operand.vmem [shape: bf16[288,64], index: 1, kind: input, shape index: {}]   ;;  %s578_s0 = inlined_call_operand.vmem [shape: bf16[32,288], index: 0, kind: input, shape index: {}]   ;;  %s579_s2 = inlined_call_operand.vmem [shape: f32[1,64], index: 2, kind: input, shape index: {}]   ;;  %s580_s3 = inlined_call_operand.vmem [shape: f32[1,64], index: 3, kind: input, shape index: {}]   ;;  %s581_s4 = inlined_call_operand.vmem [shape: bf16[32,64], index: 4, kind: output, shape index: {}]  }
   0x1   :  { %v432_v0 = vld [vmem:[%s577_s1 + $0x40] sm:$0xff]   ;;  %v434_v2 = vld [vmem:[%s577_s1 + $0x48] sm:$0xff]   ;;  %v436_v4 = vld [vmem:[%s577_s1 + $0x50] sm:$0xff]  }
   0x2   :  { %v433_v1 = vld [vmem:[%s577_s1] sm:$0xff]   ;;  %392 = vmatprep.subr.bf16.mxu0 %v432_v0  ;;  %v435_v3 = vld [vmem:[%s577_s1 + $0x8] sm:$0xff]   ;;  %v437_v5 = vld [vmem:[%s577_s1 + $0x10] sm:$0xff]  }
   0x3   :  { %393 = vmatpush3.bf16.msra.mxu0 %v433_v1  ;;  %v438_v6 = vld [vmem:[%s577_s1 + $0x58] sm:$0xff]   ;;  %v440_v8 = vld [vmem:[%s577_s1 + $0x60] sm:$0xff]   ;;  %v442_v11 = vld [vmem:[%s577_s1 + $0x68] sm:$0xff]  }
   0x4   :  { %394 = vmatprep.subr.bf16.mxu0 %v434_v2  ;;  %v439_v7 = vld [vmem:[%s577_s1 + $0x18] sm:$0xff]   ;;  %v446_v9 = vld [vmem:[%s577_s1 + $0x80] sm:$0xff]   ;;  %v443_v12 = vld [vmem:[%s577_s1 + $0x28] sm:$0xff]  }
   0x5   :  { %v441_v10 = vld [vmem:[%s577_s1 + $0x20] sm:$0xff]   ;;  %424 = vmatprep.subr.bf16.mxu1 %v446_v9  ;;  %v449_v13 = vld [vmem:[%s577_s1 + $0x88] sm:$0xff]   ;;  %v444_v14 = vld [vmem:[%s577_s1 + $0x70] sm:$0xff]  }
   0x6   :  { %425 = vmatpush3.bf16.msra.mxu1 %v446_v9  ;;  %v452_v15 = vld [vmem:[%s578_s0 + $0x4] ss:$12 sps:$4 sm:$0xff]   ;;  %v453_v16 = vld [vmem:[%s578_s0 + $0x8] ss:$12 sps:$4 sm:$0xff]   ;;  %v454_v17 = vld [vmem:[%s578_s0 + $0x20] ss:$12 sps:$4 sm:$0xff]  }
   0x7   :  { %395 = vmatpush3.bf16.msra.mxu0 %v435_v3  ;;  %426 = vmatprep.subr.bf16.mxu1 %v449_v13  ;;  %v445_v18 = vld [vmem:[%s577_s1 + $0x30] sm:$0xff]   ;;  %v447_v19 = vld [vmem:[%s577_s1 + $0x78] sm:$0xff]   ;;  %v450_v21 = vld [vmem:[%s578_s0] ss:$12 sps:$4 sm:$0xff]  }
   0x8   :  { %396 = vmatprep.subr.bf16.mxu0 %v436_v4  ;;  %239 = vmatprep.mubr.bf16.mxu0 %v452_v15  ;;  %v448_v20 = vld [vmem:[%s577_s1 + $0x38] sm:$0xff]   ;;  %v382_v33 = vld [vmem:[%s579_s2] ss:$0 sm:$0xff] }
   0x9   :  { %428 = vmatprep.mubr.msk.bf16.mxu1 %vm200_vm0, %v453_v16  ;;  %v455_v22 = vld [vmem:[%s578_s0 + $0x1c] ss:$12 sps:$4 sm:$0xff]   ;;  %v457_v23 = vld [vmem:[%s578_s0 + $0x18] ss:$12 sps:$4 sm:$0xff]   ;;  %v383_v36 = vld [vmem:[%s580_s3] ss:$0 sm:$0xff] }
   0xa   :  { %427 = vmatpush3.bf16.msra.mxu1 %v449_v13 }
   0xb   :  { %397 = vmatpush3.bf16.msra.mxu0 %v437_v5 }
   0xc   :  { %398 = vmatprep.subr.bf16.mxu0 %v438_v6 }
   0xd   :  { %429 = vmatmul.mubr.msk.bf16.vlgmr.msra.gmra.mrb[0].mxu1 %vm200_vm0, %v454_v17 }
   0xf   :  { %399 = vmatpush3.bf16.msra.mxu0 %v439_v7 }
  0x10   :  { %400 = vmatprep.subr.bf16.mxu0 %v440_v8 }
  0x13   :  { %401 = vmatpush3.bf16.msra.mxu0 %v441_v10 }
  0x14   :  { %402 = vmatprep.subr.bf16.mxu0 %v442_v11 }
  0x17   :  { %403 = vmatpush3.bf16.msra.mxu0 %v443_v12 }
  0x18   :  { %404 = vmatprep.subr.bf16.mxu0 %v444_v14 }
  0x1b   :  { %405 = vmatpush3.bf16.msra.mxu0 %v445_v18 }
  0x1c   :  { %406 = vmatprep.subr.bf16.mxu0 %v447_v19 }
  0x1f   :  { %407 = vmatpush3.bf16.msra.mxu0 %v448_v20 }
  0x22   :  { %240 = vmatmul.mubr.bf16.vlgmr.msra.gmra.mrb[0].mxu0 %v450_v21 }
  0x23   :  { %247 = vmatprep.mubr.bf16.mxu0 %v455_v22 }
  0x2a   :  { %248 = vmatmul.mubr.bf16.gmra.mrb[4].mxu0 %v457_v23 }
  0xe0   :  { %v430_v24 = vpop.f32.mrb[0].mxu1 }
  0xe1   :  { %v290_v25 = vpop.f32.mrb[1].mxu1 }
  0xe2   :  { %v431_v26 = vpop.f32.mrb[2].mxu1 }
  0xe3   :  { %v293_v27 = vpop.f32.mrb[3].mxu1 }
  0xf5   :  { %v408_v28 = vpop.f32.mrb[0].mxu0 }
  0xf6   :  { %v409_v29 = vpop.f32.mrb[1].mxu0 }
  0xf7   :  { %v410_v30 = vadd.f32 %v409_v29, %v408_v28  ;;  %v411_v31 = vpop.f32.mrb[2].mxu0 }
  0xf8   :  { %v412_v32 = vpop.f32.mrb[3].mxu0 }
  0xf9   :  { %v413_v34 = vadd.f32 %v412_v32, %v411_v31  ;;  %v291_v35 = vadd.f32 %v410_v30, %v290_v25 }
  0xfb   :  { %v312_v37 = vmul.f32 %v382_v33, %v291_v35  ;;  %v294_v38 = vadd.f32 %v413_v34, %v293_v27 }
  0xfd   :  { %v323_v39 = vadd.f32 %v383_v36, %v312_v37  ;;  %v313_v40 = vmul.f32 %v382_v33, %v294_v38  ;;  %v414_v41 = vpop.f32.mrb[4].mxu0 }
  0xfe   :  { %v415_v42 = vpop.f32.mrb[5].mxu0 }
  0xff   :  { %v327_v43 = vmax.f32 %v323_v39, 0.0  ;;  %v324_v44 = vadd.f32 %v383_v36, %v313_v40  ;;  %v416_v45 = vadd.f32 %v415_v42, %v414_v41  ;;  %v417_v46 = vpop.f32.mrb[6].mxu0 }
 0x100   :  { %v418_v47 = vpop.f32.mrb[7].mxu0 }
 0x101   :  { %v388_v48 = vpack.c.bf16 %v327_v43, %v327_v43  ;;  %v328_v49 = vmax.f32 %v324_v44, 0.0  ;;  %v299_v50 = vadd.f32 %v430_v24, %v416_v45  ;;  %v419_v51 = vadd.f32 %v418_v47, %v417_v46 }
 0x103   :  { %348 = vst.msk [vmem:[%s581_s4] sm:$0xf] %vm347_vm1, %v388_v48  ;;  %v389_v52 = vpack.c.bf16 %v328_v49, %v328_v49  ;;  %v314_v53 = vmul.f32 %v382_v33, %v299_v50  ;;  %v302_v54 = vadd.f32 %v431_v26, %v419_v51 }
 0x105   :  { %349 = vst.msk [vmem:[%s581_s4 + $0x4] sm:$0xf] %vm347_vm1, %v389_v52  ;;  %v325_v55 = vadd.f32 %v383_v36, %v314_v53  ;;  %v315_v56 = vmul.f32 %v382_v33, %v302_v54 }
 0x107   :  { %v329_v57 = vmax.f32 %v325_v55, 0.0  ;;  %v326_v58 = vadd.f32 %v383_v36, %v315_v56 }
 0x109   :  { %v390_v59 = vpack.c.bf16 %v329_v57, %v329_v57  ;;  %v330_v60 = vmax.f32 %v326_v58, 0.0 }
 0x10b   :  { %350 = vst.msk [vmem:[%s581_s4 + $0x8] sm:$0xf] %vm347_vm1, %v390_v59  ;;  %v391_v61 = vpack.c.bf16 %v330_v60, %v330_v60 }
 0x10d   :  { %351 = vst.msk [vmem:[%s581_s4 + $0xc] sm:$0xf] %vm347_vm1, %v391_v61 }

// kernel: _forward.16
= control target key start
LH: loop header
LB: loop body
LE: loop exit
PB: predicated region body
PF: predicated region fallthrough
CT: control target
= control target key end

     0   :  { %vm42_vm0 = vcmask 261120   ;;  %vm114_vm1 = vcmask 519168   ;;  %s192_s1 = inlined_call_operand.vmem [shape: bf16[32,64], index: 1, kind: input, shape index: {}]   ;;  %s193_s0 = inlined_call_operand.vmem [shape: bf16[32,32], index: 0, kind: input, shape index: {}]   ;;  %s194_s2 = inlined_call_operand.vmem [shape: bf16[32,64], index: 2, kind: output, shape index: {}]  }
   0x1   :  { %v149_v0 = vld [vmem:[%s192_s1] sm:$0xff]   ;;  %v150_v1 = vld [vmem:[%s192_s1 + $0x8] sm:$0xff]  }
   0x2   :  { %141 = vmatprep.subr.bf16.mxu0 %v149_v0  ;;  %v151_v2 = vld [vmem:[%s193_s0] sm:$0xff]   ;;  %v152_v3 = vld [vmem:[%s193_s0 + $0x8] sm:$0xff]  }
   0x3   :  { %142 = vmatpush3.bf16.msra.mxu0 %v149_v0  ;;  %145 = vmatprep.mubr.msk.bf16.mxu0 %vm42_vm0, %v151_v2 }
   0x4   :  { %143 = vmatprep.subr.bf16.mxu0 %v150_v1 }
   0x7   :  { %144 = vmatpush3.bf16.msra.mxu0 %v150_v1 }
   0xa   :  { %146 = vmatmul.mubr.msk.bf16.vlgmr.msra.gmra.mrb[0].mxu0 %vm42_vm0, %v152_v3 }
  0xdd   :  { %v147_v4 = vpop.f32.mrb[0].mxu0 }
  0xde   :  { %v135_v5 = vpack.c.bf16 %v147_v4, %v147_v4  ;;  %v83_v6 = vpop.f32.mrb[1].mxu0 }
  0xdf   :  { %v133_v7 = vpack.c.bf16 %v83_v6, %v83_v6  ;;  %v148_v8 = vpop.f32.mrb[2].mxu0 }
  0xe0   :  { %117 = vst.msk [vmem:[%s194_s2 + $0x8] sm:$0xf] %vm114_vm1, %v135_v5  ;;  %v136_v9 = vpack.c.bf16 %v148_v8, %v148_v8  ;;  %v86_v10 = vpop.f32.mrb[3].mxu0 }
  0xe1   :  { %115 = vst.msk [vmem:[%s194_s2] sm:$0xf] %vm114_vm1, %v133_v7  ;;  %v134_v11 = vpack.c.bf16 %v86_v10, %v86_v10 }
  0xe2   :  { %118 = vst.msk [vmem:[%s194_s2 + $0xc] sm:$0xf] %vm114_vm1, %v136_v9 }
  0xe3   :  { %116 = vst.msk [vmem:[%s194_s2 + $0x4] sm:$0xf] %vm114_vm1, %v134_v11 }

// kernel: _forward.19
= control target key start
LH: loop header
LB: loop body
LE: loop exit
PB: predicated region body
PF: predicated region fallthrough
CT: control target
= control target key end

     0   :  { %v258_v3 = vmov 0.0|0.0   ;;  %vm259_vm0 = vmmov 0   ;;  %v260_v6 = vmov 0.0   ;;  %vm29_vm1 = vcmask 523264   ;;  %s348_s0 = inlined_call_operand.vmem [shape: bf16[2,16,64], index: 0, kind: input, shape index: {}]   ;;  %s349_s1 = inlined_call_operand.vmem [shape: f32[1,64], index: 1, kind: input, shape index: {}]   ;;  %s350_s2 = inlined_call_operand.vmem [shape: f32[1,64], index: 2, kind: input, shape index: {}]   ;;  %s351_s3 = inlined_call_operand.vmem [shape: f32[64,10], index: 3, kind: input, shape index: {}]   ;;  %s352_s4 = inlined_call_operand.vmem [shape: f32[1,10], index: 4, kind: input, shape index: {}]   ;;  %s353_s5 = inlined_call_operand.hbm [shape: f32[2,10], index: 5, kind: output, shape index: {}]  }
   0x1   :  { %v69_v0 = vld [vmem:[%s351_s3] sm:$0xff]  ;;  %v70_v1 = vld [vmem:[%s351_s3 + $0x8] sm:$0xff]  ;;  %v71_v2 = vld [vmem:[%s351_s3 + $0x10] sm:$0xff]  ;;  %218 = vmatprep.subr.bf16.mxu0 %v258_v3  ;;  %215 = vmatprep.mubr.msk.f32.mxu0 %vm259_vm0, %v260_v6 }
   0x2   :  { %v219_v4 = vpack.c.bf16 %v70_v1, %v69_v0  ;;  %v72_v5 = vld [vmem:[%s351_s3 + $0x18] sm:$0xff]  ;;  %v182_v7 = vld [vmem:[%s348_s0] sm:$0xff]   ;;  %v189_v11 = vld [vmem:[%s348_s0 + $0x8] sm:$0xff]  }
   0x3   :  { %v222_v8 = vpack.c.bf16 %v72_v5, %v71_v2  ;;  %v183_v9 = vunpack.c.l.bf16 %v182_v7  ;;  %v184_v10 = vunpack.c.h.bf16 %v182_v7  ;;  %v73_v12 = vld [vmem:[%s351_s3 + $0x20] sm:$0xff]  ;;  %v74_v13 = vld [vmem:[%s351_s3 + $0x28] sm:$0xff]  ;;  %v187_v14 = vunpack.c.l.bf16 %v189_v11 }
   0x4   :  { %220 = vmatpush3.bf16.msra.mxu0 %v219_v4  ;;  %v188_v15 = vunpack.c.h.bf16 %v189_v11 }
   0x5   :  { %221 = vmatprep.subr.bf16.mxu0 %v258_v3 }
   0x6   :  { %10 = vsyncpa [#allocation3], 0  ;;  %v30_v16 = vsel %vm29_vm1, %v183_v9, 0.0  ;;  %v31_v17 = vsel %vm29_vm1, %v184_v10, 0.0  ;;  %v39_v19 = vsel %vm29_vm1, %v187_v14, 0.0  ;;  %v40_v20 = vsel %vm29_vm1, %v188_v15, 0.0 }
   0x7   :  { %v32_v18 = vadd.f32 %v31_v17, %v30_v16  ;;  %v225_v21 = vpack.c.bf16 %v74_v13, %v73_v12  ;;  %v41_v22 = vadd.f32 %v40_v20, %v39_v19  ;;  %v75_v23 = vld [vmem:[%s351_s3 + $0x30] sm:$0xff]  ;;  %v76_v24 = vld [vmem:[%s351_s3 + $0x38] sm:$0xff]  ;;  %v177_v39 = vld [vmem:[%s349_s1] ss:$0 sm:$0xff]  ;;  %vm87_vm2 = vcmask 1041409   ;;  %s261_s17 = smov [#allocation2]  }
   0x8   :  { %223 = vmatpush3.bf16.msra.mxu0 %v222_v8  ;;  %v228_v28 = vpack.c.bf16 %v76_v24, %v75_v23  ;;  %v178_v42 = vld [vmem:[%s350_s2] ss:$0 sm:$0xff]  ;;  %s169_s1 = sshll.u32 %s261_s17, 4  ;;  %vm161_vm3 = vcmask 74752   ;;  %s170_s1 = int_to_ptr.vmem [resolvable:$true] %s169_s1 }
   0x9   :  { %224 = vmatprep.subr.bf16.mxu0 %v258_v3  ;;  %v33_v25 = vrot.slane %v32_v18, 4  ;;  %v42_v26 = vrot.slane %v41_v22, 4  ;;  %v179_v48 = vld [vmem:[%s352_s4] ss:$0 sm:$0xff]  ;;  %s234_s2 = scalar_lea.vmem %s170_s1, 32  ;;  %p239_p1 = scmp.lt.s32.totalorder %s170_s1, %s170_s1 }
   0xa   :  { %p235_p0 = scmp.ne.s32.totalorder %s170_s1, %s234_s2  ;;  %p240_p2 = scmp.lt.s32.totalorder %s234_s2, %s234_s2 }
   0xb   :  { %v34_v27 = vadd.f32 %v33_v25, %v32_v18  ;;  %v43_v29 = vadd.f32 %v42_v26, %v41_v22 }
   0xc   :  { %226 = vmatpush3.bf16.msra.mxu0 %v225_v21  ;;  %p241_p3 = por %p240_p2, %p239_p1 }
   0xd   :  { %227 = vmatprep.subr.bf16.mxu0 %v258_v3  ;;  %v35_v30 = vrot.slane %v34_v27, 2  ;;  %v44_v31 = vrot.slane %v43_v29, 2 }
   0xe   :  { %p242_p4 = pnand %p241_p3, %p235_p0 }
   0xf   :  { %v36_v32 = vadd.f32 %v35_v30, %v34_v27  ;;  %v45_v33 = vadd.f32 %v44_v31, %v43_v29 }
  0x10   :  { %229 = vmatpush3.bf16.msra.mxu0 %v228_v28 }
  0x11   :  { %v37_v34 = vrot.slane %v36_v32, 1  ;;  %v46_v35 = vrot.slane %v45_v33, 1 }
  0x13   :  { %v38_v36 = vadd.f32 %v37_v34, %v36_v32  ;;  %v47_v37 = vadd.f32 %v46_v35, %v45_v33 }
  0x15   :  { %v49_v38 = vmul.f32 0.0625, %v38_v36  ;;  %v50_v40 = vmul.f32 0.0625, %v47_v37 }
  0x17   :  { %v58_v41 = vmul.f32 %v177_v39, %v49_v38  ;;  %v59_v43 = vmul.f32 %v177_v39, %v50_v40 }
  0x19   :  { %v67_v44 = vadd.f32 %v178_v42, %v58_v41  ;;  %v68_v45 = vadd.f32 %v178_v42, %v59_v43 }
  0x1b   :  { %v86_v46 = vrot.slane %v68_v45, 7 }
  0x1d   :  { %v88_v47 = vsel %vm87_vm2, %v86_v46, %v67_v44 }
  0x1e   :  { %216 = vmatmul.mubr.msk.f32.vlgmr.msra.gmra.mrb[0].mxu0 %vm29_vm1, %v88_v47 }
  0xf1   :  { %v157_v49 = vpop.f32.mrb[0].mxu0 }
  0xf2   :  { %v158_v50 = vadd.f32 %v179_v48, %v157_v49  ;;  %v217_v51 = vpop.f32.mrb[1].mxu0 }
  0xf4   :  { %162 = vst.msk [vmem:[#allocation2] sm:$0x3] %vm161_vm3, %v158_v50 }
  0xf5   :  { %245 = shalt.err (!%p242_p4)
}
  0xf6   :  { %s246_s20 = scalar_lea.hbm %s353_s5, 32 }
  0xf7   :  { %p247_p5 = scmp.ne.s32.totalorder %s353_s5, %s246_s20  ;;  %p250_p6 = scmp.lt.u32.totalorder %s246_s20, %s353_s5 }
  0xf9   :  { %p252_p7 = pnand %p250_p6, %p247_p5 }
  0xfb   :  { %255 = shalt.err (!%p252_p7)
}
  0xfc   :  { %172 = dma.vmem_to_hbm [thread:$0]  %s170_s1, 32, %s353_s5, [#allocation3]  }
  0xfd   :  { %256 = dma.done.wait [#allocation3], 32  }
  0xfe   :  { %257 = vsyncadd [#allocation3], 4294967264 }
  0xff   :  { %176 = vsyncpa [#allocation3], 1 }

// kernel: _forward.18
= control target key start
LH: loop header
LB: loop body
LE: loop exit
PB: predicated region body
PF: predicated region fallthrough
CT: control target
= control target key end

     0   :  { %vm373_vm0 = vcmask 523264   ;;  %vm543_vm1 = vcmask 519168   ;;  %s917_s1 = inlined_call_operand.vmem [shape: bf16[576,64], index: 1, kind: input, shape index: {}]   ;;  %s918_s0 = inlined_call_operand.vmem [shape: bf16[32,576], index: 0, kind: input, shape index: {}]   ;;  %s919_s2 = inlined_call_operand.vmem [shape: bf16[32,64], index: 2, kind: input, shape index: {}]   ;;  %s920_s3 = inlined_call_operand.vmem [shape: bf16[32,64], index: 3, kind: output, shape index: {}]  }
   0x1   :  { %v691_v0 = vld [vmem:[%s917_s1 + $0x40] sm:$0xff]   ;;  %v695_v4 = vld [vmem:[%s917_s1 + $0x48] sm:$0xff]   ;;  %v699_v8 = vld [vmem:[%s917_s1 + $0x50] sm:$0xff]  }
   0x2   :  { %v692_v1 = vld [vmem:[%s917_s1] sm:$0xff]   ;;  %617 = vmatprep.subr.bf16.mxu0 %v691_v0  ;;  %v696_v5 = vld [vmem:[%s917_s1 + $0x8] sm:$0xff]   ;;  %v700_v9 = vld [vmem:[%s917_s1 + $0x10] sm:$0xff]  }
   0x3   :  { %v693_v2 = vld [vmem:[%s917_s1 + $0xc0] sm:$0xff]   ;;  %618 = vmatpush3.bf16.msra.mxu0 %v692_v1  ;;  %v697_v6 = vld [vmem:[%s917_s1 + $0xc8] sm:$0xff]   ;;  %v701_v10 = vld [vmem:[%s917_s1 + $0xd0] sm:$0xff]  }
   0x4   :  { %v694_v3 = vld [vmem:[%s917_s1 + $0x80] sm:$0xff]   ;;  %645 = vmatprep.subr.bf16.mxu1 %v693_v2  ;;  %619 = vmatprep.subr.bf16.mxu0 %v695_v4  ;;  %v698_v7 = vld [vmem:[%s917_s1 + $0x88] sm:$0xff]   ;;  %v702_v11 = vld [vmem:[%s917_s1 + $0x90] sm:$0xff]  }
   0x5   :  { %646 = vmatpush3.bf16.msra.mxu1 %v694_v3  ;;  %v703_v12 = vld [vmem:[%s917_s1 + $0x58] sm:$0xff]   ;;  %v707_v16 = vld [vmem:[%s917_s1 + $0x60] sm:$0xff]   ;;  %v711_v20 = vld [vmem:[%s917_s1 + $0x68] sm:$0xff]  }
   0x6   :  { %647 = vmatprep.subr.bf16.mxu1 %v697_v6  ;;  %v704_v13 = vld [vmem:[%s917_s1 + $0x18] sm:$0xff]   ;;  %v708_v17 = vld [vmem:[%s917_s1 + $0x20] sm:$0xff]   ;;  %v712_v21 = vld [vmem:[%s917_s1 + $0x28] sm:$0xff]  }
   0x7   :  { %620 = vmatpush3.bf16.msra.mxu0 %v696_v5  ;;  %v705_v14 = vld [vmem:[%s917_s1 + $0xd8] sm:$0xff]   ;;  %v709_v18 = vld [vmem:[%s917_s1 + $0xe0] sm:$0xff]   ;;  %v713_v22 = vld [vmem:[%s917_s1 + $0xe8] sm:$0xff]  }
   0x8   :  { %621 = vmatprep.subr.bf16.mxu0 %v699_v8  ;;  %v706_v15 = vld [vmem:[%s917_s1 + $0x98] sm:$0xff]   ;;  %v710_v19 = vld [vmem:[%s917_s1 + $0xa0] sm:$0xff]   ;;  %v714_v23 = vld [vmem:[%s917_s1 + $0xa8] sm:$0xff]  }
   0x9   :  { %648 = vmatpush3.bf16.msra.mxu1 %v698_v7  ;;  %v715_v24 = vld [vmem:[%s917_s1 + $0x70] sm:$0xff]   ;;  %v719_v28 = vld [vmem:[%s917_s1 + $0x78] sm:$0xff]   ;;  %v726_v34 = vld [vmem:[%s917_s1 + $0x100] sm:$0xff]  }
   0xa   :  { %649 = vmatprep.subr.bf16.mxu1 %v701_v10  ;;  %v716_v25 = vld [vmem:[%s917_s1 + $0x30] sm:$0xff]   ;;  %v720_v29 = vld [vmem:[%s917_s1 + $0x38] sm:$0xff]   ;;  %v729_v36 = vld [vmem:[%s918_s0 + $0xc] ss:$20 sps:$4 sm:$0xff]  }
   0xb   :  { %622 = vmatpush3.bf16.msra.mxu0 %v700_v9  ;;  %v717_v26 = vld [vmem:[%s917_s1 + $0xf0] sm:$0xff]   ;;  %v721_v30 = vld [vmem:[%s917_s1 + $0xf8] sm:$0xff]   ;;  %v730_v37 = vld [vmem:[%s917_s1 + $0x108] sm:$0xff]   ;;  %461 = vmatprep.mubr.bf16.mxu1 %v729_v36 }
   0xc   :  { %623 = vmatprep.subr.bf16.mxu0 %v703_v12  ;;  %v718_v27 = vld [vmem:[%s917_s1 + $0xb0] sm:$0xff]   ;;  %v724_v32 = vld [vmem:[%s918_s0 + $0x4] ss:$20 sps:$4 sm:$0xff]   ;;  %v727_v35 = vld [vmem:[%s918_s0 + $0x8] ss:$20 sps:$4 sm:$0xff]  }
   0xd   :  { %650 = vmatpush3.bf16.msra.mxu1 %v702_v11  ;;  %v722_v31 = vld [vmem:[%s918_s0] ss:$20 sps:$4 sm:$0xff]   ;;  %v725_v33 = vld [vmem:[%s917_s1 + $0xb8] sm:$0xff]   ;;  %412 = vmatprep.mubr.bf16.mxu0 %v724_v32  ;;  %v737_v42 = vld [vmem:[%s918_s0 + $0x30] ss:$20 sps:$4 sm:$0xff]  }
   0xe   :  { %651 = vmatprep.subr.bf16.mxu1 %v705_v14  ;;  %v731_v38 = vld [vmem:[%s918_s0 + $0x2c] ss:$20 sps:$4 sm:$0xff]   ;;  %v733_v39 = vld [vmem:[%s918_s0 + $0x28] ss:$20 sps:$4 sm:$0xff]   ;;  %v734_v40 = vld [vmem:[%s917_s1 + $0x110] sm:$0xff]  }
   0xf   :  { %624 = vmatpush3.bf16.msra.mxu0 %v704_v13  ;;  %v735_v41 = vld [vmem:[%s918_s0 + $0x34] ss:$20 sps:$4 sm:$0xff]   ;;  %v738_v43 = vld [vmem:[%s917_s1 + $0x118] sm:$0xff]   ;;  %v739_v44 = vld [vmem:[%s918_s0 + $0x10] ss:$20 sps:$4 sm:$0xff]  }
  0x10   :  { %625 = vmatprep.subr.bf16.mxu0 %v707_v16  ;;  %v740_v45 = vld [vmem:[%s918_s0 + $0x38] ss:$20 sps:$4 sm:$0xff]   ;;  %v609_v46 = vld [vmem:[%s919_s2] sm:$0xff]  }
  0x11   :  { %652 = vmatpush3.bf16.msra.mxu1 %v706_v15  ;;  %v610_v48 = vunpack.c.l.bf16 %v609_v46  ;;  %v611_v52 = vunpack.c.h.bf16 %v609_v46  ;;  %v616_v60 = vld [vmem:[%s919_s2 + $0x8] sm:$0xff]  }
  0x12   :  { %653 = vmatprep.subr.bf16.mxu1 %v709_v18  ;;  %v614_v2 = vunpack.c.l.bf16 %v616_v60  ;;  %v615_v7 = vunpack.c.h.bf16 %v616_v60 }
  0x13   :  { %626 = vmatpush3.bf16.msra.mxu0 %v708_v17 }
  0x14   :  { %627 = vmatprep.subr.bf16.mxu0 %v711_v20 }
  0x15   :  { %654 = vmatpush3.bf16.msra.mxu1 %v710_v19 }
  0x16   :  { %655 = vmatprep.subr.bf16.mxu1 %v713_v22 }
  0x17   :  { %628 = vmatpush3.bf16.msra.mxu0 %v712_v21 }
  0x18   :  { %629 = vmatprep.subr.bf16.mxu0 %v715_v24 }
  0x19   :  { %656 = vmatpush3.bf16.msra.mxu1 %v714_v23 }
  0x1a   :  { %657 = vmatprep.subr.bf16.mxu1 %v717_v26 }
  0x1b   :  { %630 = vmatpush3.bf16.msra.mxu0 %v716_v25 }
  0x1c   :  { %631 = vmatprep.subr.bf16.mxu0 %v719_v28 }
  0x1d   :  { %658 = vmatpush3.bf16.msra.mxu1 %v718_v27 }
  0x1e   :  { %659 = vmatprep.subr.bf16.mxu1 %v721_v30 }
  0x1f   :  { %632 = vmatpush3.bf16.msra.mxu0 %v720_v29 }
  0x20   :  { %679 = vmatprep.subr.bf16.mxu0 %v726_v34 }
  0x21   :  { %660 = vmatpush3.bf16.msra.mxu1 %v725_v33 }
  0x22   :  { %413 = vmatmul.mubr.bf16.vlgmr.msra.gmra.mrb[0].mxu0 %v722_v31 }
  0x23   :  { %680 = vmatpush3.bf16.msra.mxu0 %v726_v34  ;;  %420 = vmatprep.mubr.bf16.mxu0 %v731_v38 }
  0x24   :  { %462 = vmatmul.mubr.bf16.vlgmr.msra.gmra.mrb[0].mxu1 %v727_v35  ;;  %681 = vmatprep.subr.bf16.mxu0 %v730_v37 }
  0x25   :  { %469 = vmatprep.mubr.bf16.mxu1 %v735_v41 }
  0x27   :  { %682 = vmatpush3.bf16.msra.mxu0 %v730_v37 }
  0x28   :  { %683 = vmatprep.subr.bf16.mxu0 %v734_v40 }
  0x2a   :  { %421 = vmatmul.mubr.bf16.gmra.mrb[4].mxu0 %v733_v39 }
  0x2b   :  { %687 = vmatprep.mubr.msk.bf16.mxu0 %vm373_vm0, %v739_v44  ;;  %684 = vmatpush3.bf16.msra.mxu0 %v734_v40 }
  0x2c   :  { %470 = vmatmul.mubr.bf16.gmra.mrb[4].mxu1 %v737_v42  ;;  %685 = vmatprep.subr.bf16.mxu0 %v738_v43 }
  0x2f   :  { %686 = vmatpush3.bf16.msra.mxu0 %v738_v43 }
  0x32   :  { %688 = vmatmul.mubr.msk.bf16.vlgmr.msra.gmra.mrb[8].mxu0 %vm373_vm0, %v740_v45 }
  0xf5   :  { %v633_v47 = vpop.f32.mrb[0].mxu0 }
  0xf6   :  { %v634_v49 = vpop.f32.mrb[1].mxu0 }
  0xf7   :  { %v635_v50 = vadd.f32 %v634_v49, %v633_v47  ;;  %v636_v51 = vpop.f32.mrb[2].mxu0  ;;  %v661_v53 = vpop.f32.mrb[0].mxu1 }
  0xf8   :  { %v637_v54 = vpop.f32.mrb[3].mxu0  ;;  %v662_v57 = vpop.f32.mrb[1].mxu1 }
  0xf9   :  { %v415_v55 = vadd.f32 %v635_v50, %v610_v48  ;;  %v638_v56 = vadd.f32 %v637_v54, %v636_v51  ;;  %v663_v58 = vadd.f32 %v662_v57, %v661_v53  ;;  %v664_v59 = vpop.f32.mrb[2].mxu1 }
  0xfa   :  { %v665_v62 = vpop.f32.mrb[3].mxu1 }
  0xfb   :  { %v418_v61 = vadd.f32 %v638_v56, %v611_v52  ;;  %v666_v63 = vadd.f32 %v665_v62, %v664_v59  ;;  %v464_v0 = vadd.f32 %v663_v58, %v415_v55 }
  0xfd   :  { %v639_v1 = vpop.f32.mrb[4].mxu0  ;;  %v467_v4 = vadd.f32 %v666_v63, %v418_v61 }
  0xfe   :  { %v640_v3 = vpop.f32.mrb[5].mxu0 }
  0xff   :  { %v641_v5 = vadd.f32 %v640_v3, %v639_v1  ;;  %v642_v6 = vpop.f32.mrb[6].mxu0  ;;  %v667_v8 = vpop.f32.mrb[4].mxu1 }
 0x100   :  { %v643_v9 = vpop.f32.mrb[7].mxu0  ;;  %v668_v12 = vpop.f32.mrb[5].mxu1 }
 0x101   :  { %v423_v10 = vadd.f32 %v641_v5, %v614_v2  ;;  %v644_v11 = vadd.f32 %v643_v9, %v642_v6  ;;  %v669_v13 = vadd.f32 %v668_v12, %v667_v8  ;;  %v670_v14 = vpop.f32.mrb[6].mxu1 }
 0x102   :  { %v671_v16 = vpop.f32.mrb[7].mxu1 }
 0x103   :  { %v426_v15 = vadd.f32 %v644_v11, %v615_v7  ;;  %v672_v17 = vadd.f32 %v671_v16, %v670_v14  ;;  %v472_v18 = vadd.f32 %v669_v13, %v423_v10 }
 0x105   :  { %v689_v19 = vpop.f32.mrb[8].mxu0  ;;  %v475_v20 = vadd.f32 %v672_v17, %v426_v15 }
 0x106   :  { %v521_v21 = vadd.f32 %v689_v19, %v472_v18  ;;  %v512_v22 = vpop.f32.mrb[9].mxu0 }
 0x107   :  { %v513_v23 = vadd.f32 %v512_v22, %v464_v0  ;;  %v690_v24 = vpop.f32.mrb[10].mxu0 }
 0x108   :  { %v606_v25 = vpack.c.bf16 %v521_v21, %v521_v21  ;;  %v524_v26 = vadd.f32 %v690_v24, %v475_v20  ;;  %v515_v27 = vpop.f32.mrb[11].mxu0 }
 0x109   :  { %v604_v28 = vpack.c.bf16 %v513_v23, %v513_v23  ;;  %v516_v29 = vadd.f32 %v515_v27, %v467_v4 }
 0x10a   :  { %546 = vst.msk [vmem:[%s920_s3 + $0x8] sm:$0xf] %vm543_vm1, %v606_v25  ;;  %v607_v30 = vpack.c.bf16 %v524_v26, %v524_v26 }
 0x10b   :  { %544 = vst.msk [vmem:[%s920_s3] sm:$0xf] %vm543_vm1, %v604_v28  ;;  %v605_v31 = vpack.c.bf16 %v516_v29, %v516_v29 }
 0x10c   :  { %547 = vst.msk [vmem:[%s920_s3 + $0xc] sm:$0xf] %vm543_vm1, %v607_v30 }
 0x10d   :  { %545 = vst.msk [vmem:[%s920_s3 + $0x4] sm:$0xf] %vm543_vm1, %v605_v31 }

</bundles_post_ra>
